<compile_context>
chip_gen: v5e
topology: v5e:2x2
jax: 0.10.0
libtpu: 0.0.40
codegen_flags: <defaults>
</compile_context>

<pallas_src>
import functools
import math

import jax
import jax.numpy as jnp
from jax.experimental import pallas as pl
from jax.experimental.pallas import tpu as pltpu


# ---------------------------------------------------------------------------
# Kernels
# ---------------------------------------------------------------------------
def _matmul_bias_kernel(x_ref, w_ref, b_ref, o_ref):
    # o = x @ w + b ; bf16 MXU operands, f32 accumulation.
    x = x_ref[...]
    if x.dtype != w_ref.dtype:
        x = x.astype(w_ref.dtype)
    acc = jnp.dot(x, w_ref[...], preferred_element_type=jnp.float32)
    o_ref[...] = (acc + b_ref[...]).astype(o_ref.dtype)


def _attn_single_pass_kernel(q_ref, k_ref, v_ref, o_ref):
    # Whole kv range in one block: plain (non-online) softmax, no scratch.
    # q: (tq, S), k/v: (T, S).  1/sqrt(S) already folded into the q weights.
    s = jax.lax.dot_general(q_ref[...], k_ref[...],
                            (((1,), (1,)), ((), ())),
                            preferred_element_type=jnp.float32)      # (tq, T)
    m = s.max(axis=-1, keepdims=True)
    p = jnp.exp(s - m)
    l = p.sum(axis=-1, keepdims=True)
    ctx = jnp.dot(p.astype(v_ref.dtype), v_ref[...],
                  preferred_element_type=jnp.float32)
    o_ref[...] = (ctx * pl.reciprocal(l, approx=True)).astype(o_ref.dtype)


def _flash_attn_kernel(q_ref, k_ref, v_ref, o_ref, m_sc, l_sc, acc_sc):
    # Online-softmax flash attention; grid = (B, H, q-tiles, kv-tiles).
    ki = pl.program_id(3)

    @pl.when(ki == 0)
    def _():
        m_sc[...] = jnp.full_like(m_sc, -jnp.inf)
        l_sc[...] = jnp.zeros_like(l_sc)
        acc_sc[...] = jnp.zeros_like(acc_sc)

    s = jax.lax.dot_general(q_ref[...], k_ref[...],
                            (((1,), (1,)), ((), ())),
                            preferred_element_type=jnp.float32)      # (tq, tk)
    m_prev = m_sc[...]
    m_new = jnp.maximum(m_prev, s.max(axis=-1, keepdims=True))
    alpha = jnp.exp(m_prev - m_new)
    p = jnp.exp(s - m_new)
    l_sc[...] = alpha * l_sc[...] + p.sum(axis=-1, keepdims=True)
    acc_sc[...] = alpha * acc_sc[...] + jnp.dot(
        p.astype(v_ref.dtype), v_ref[...], preferred_element_type=jnp.float32)
    m_sc[...] = m_new

    @pl.when(ki == pl.num_programs(3) - 1)
    def _():
        o_ref[...] = (acc_sc[...] * pl.reciprocal(l_sc[...], approx=True)
                      ).astype(o_ref.dtype)


# ---------------------------------------------------------------------------
# pallas_call wrappers
# ---------------------------------------------------------------------------
def _pick_row_tile(m, candidates=(512, 256, 128)):
    # Prefer the biggest tile that still leaves >= 2 parallel steps (v7x 2 TCs).
    for tm in candidates:
        if m % tm == 0 and m // tm >= 2:
            return tm
    for tm in candidates:
        if m % tm == 0:
            return tm
    return m


def matmul_bias(x2, w, b, out_dtype):
    """x2: (M, K) -> x2 @ w + b, tiled over rows (weights stay VMEM-resident)."""
    M, K = x2.shape
    Kw, N = w.shape
    assert K == Kw, (K, Kw)
    tm = _pick_row_tile(M)
    assert M % tm == 0, (M, tm)
    return pl.pallas_call(
        _matmul_bias_kernel,
        out_shape=jax.ShapeDtypeStruct((M, N), out_dtype),
        grid=(M // tm,),
        in_specs=[
            pl.BlockSpec((tm, K), lambda i: (i, 0)),
            pl.BlockSpec((K, N), lambda i: (0, 0)),
            pl.BlockSpec((1, N), lambda i: (0, 0)),
        ],
        out_specs=pl.BlockSpec((tm, N), lambda i: (i, 0)),
        compiler_params=pltpu.CompilerParams(dimension_semantics=("parallel",)),
    )(x2, w, b)


def attention(qkv, *, B, T, E, heads, tq=256, tk=256, single_pass_max_t=512):
    """qkv: (B*T, 3E) bf16 (columns: [q | k | v], heads contiguous within each).

    Returns ctx: (B*T, E) bf16 in concatenated-heads layout (ready for out-proj).
    The 1/sqrt(head_dim) scale is assumed folded into the q weights.
    """
    S = E // heads
    M = B * T
    assert qkv.shape == (M, 3 * E), qkv.shape
    tq = min(tq, T)
    assert T % tq == 0, (T, tq)
    nq = T // tq

    if T <= single_pass_max_t:
        # Single-pass softmax: whole kv range resident, no running-max scratch.
        return pl.pallas_call(
            _attn_single_pass_kernel,
            out_shape=jax.ShapeDtypeStruct((M, E), jnp.bfloat16),
            grid=(B, heads, nq),
            in_specs=[
                pl.BlockSpec((tq, S), lambda b, h, qi: (b * nq + qi, h)),
                pl.BlockSpec((T, S), lambda b, h, qi: (b, heads + h)),
                pl.BlockSpec((T, S), lambda b, h, qi: (b, 2 * heads + h)),
            ],
            out_specs=pl.BlockSpec((tq, S), lambda b, h, qi: (b * nq + qi, h)),
            compiler_params=pltpu.CompilerParams(
                dimension_semantics=("parallel", "parallel", "parallel")),
        )(qkv, qkv, qkv)

    # Online-softmax flash path for long sequences.
    tk = min(tk, T)
    assert T % tk == 0, (T, tk)
    nk = T // tk
    return pl.pallas_call(
        _flash_attn_kernel,
        out_shape=jax.ShapeDtypeStruct((M, E), jnp.bfloat16),
        grid=(B, heads, nq, nk),
        in_specs=[
            pl.BlockSpec((tq, S), lambda b, h, qi, ki: (b * nq + qi, h)),
            pl.BlockSpec((tk, S), lambda b, h, qi, ki: (b * nk + ki, heads + h)),
            pl.BlockSpec((tk, S), lambda b, h, qi, ki: (b * nk + ki, 2 * heads + h)),
        ],
        out_specs=pl.BlockSpec((tq, S), lambda b, h, qi, ki: (b * nq + qi, h)),
        scratch_shapes=[
            pltpu.VMEM((tq, 1), jnp.float32),   # running max
            pltpu.VMEM((tq, 1), jnp.float32),   # running denom
            pltpu.VMEM((tq, S), jnp.float32),   # output accumulator
        ],
        compiler_params=pltpu.CompilerParams(
            dimension_semantics=("parallel", "parallel", "parallel", "arbitrary")),
    )(qkv, qkv, qkv)


# ---------------------------------------------------------------------------
# Parameters (kernel layout: weights stored as W^T so y = x @ w) and forward
# ---------------------------------------------------------------------------
def init_params(key, embed):
    ks = jax.random.split(key, 11)

    def nrm(k, shape, scale=0.05):
        return scale * jax.random.normal(k, shape, jnp.float32)

    return {
        # custom bias-free projections (W_q/W_k/W_v of AttentionM), stored as W^T
        "wq_t": nrm(ks[0], (embed, embed)),
        "wk_t": nrm(ks[1], (embed, embed)),
        "wv_t": nrm(ks[2], (embed, embed)),
        # MultiheadAttention in_proj (split into q/k/v chunks), stored as W^T + bias
        "wiq_t": nrm(ks[3], (embed, embed)),
        "wik_t": nrm(ks[4], (embed, embed)),
        "wiv_t": nrm(ks[5], (embed, embed)),
        "biq": nrm(ks[6], (1, embed)),
        "bik": nrm(ks[7], (1, embed)),
        "biv": nrm(ks[8], (1, embed)),
        # MultiheadAttention out_proj, stored as W^T + bias
        "wo_t": nrm(ks[9], (embed, embed)),
        "bo": nrm(ks[10], (1, embed)),
    }


def prepare_params(params, *, heads, embed):
    """Fold (custom Linear -> in_proj) into one weight, fold 1/sqrt(S) into q,
    concatenate q/k/v into a single (E, 3E) weight, cast matmul operands to bf16."""
    S = embed // heads
    scale = 1.0 / math.sqrt(S)
    wq = (params["wq_t"] @ params["wiq_t"]) * scale
    wk = params["wk_t"] @ params["wik_t"]
    wv = params["wv_t"] @ params["wiv_t"]
    w_qkv = jnp.concatenate([wq, wk, wv], axis=1).astype(jnp.bfloat16)   # (E, 3E)
    b_qkv = jnp.concatenate(
        [params["biq"] * scale, params["bik"], params["biv"]],
        axis=1).astype(jnp.float32)                                       # (1, 3E)
    return {
        "w_qkv": w_qkv,
        "b_qkv": b_qkv,
        "wo": params["wo_t"].astype(jnp.bfloat16),
        "bo": params["bo"].astype(jnp.float32),
    }


def attention_m_forward(x, prep, *, heads):
    B, T, E = x.shape
    M = B * T
    x2 = x.reshape(M, E)

    # One fused projection: (x @ W_custom) @ W_in + b, pre-folded -> x @ Wc + b.
    qkv = matmul_bias(x2, prep["w_qkv"], prep["b_qkv"], jnp.bfloat16)   # (M, 3E)

    # Attention reads heads straight out of the qkv columns; output lands in the
    # concatenated-heads layout, no host-side transposes.
    ctx = attention(qkv, B=B, T=T, E=E, heads=heads)                    # (M, E)

    out = matmul_bias(ctx, prep["wo"], prep["bo"], jnp.float32)         # (M, E)
    return out.reshape(B, T, E)


# Pure-JAX f32 reference (mirrors the PyTorch math) for the correctness check.
def attention_m_ref(x, params, *, heads):
    B, T, E = x.shape
    S = E // heads
    q = x @ params["wq_t"]
    k = x @ params["wk_t"]
    v = x @ params["wv_t"]
    qp = q @ params["wiq_t"] + params["biq"]
    kp = k @ params["wik_t"] + params["bik"]
    vp = v @ params["wiv_t"] + params["biv"]

    def split(a):
        return a.reshape(B, T, heads, S).transpose(0, 2, 1, 3)

    qh, kh, vh = split(qp), split(kp), split(vp)
    s = jnp.einsum("bhqd,bhkd->bhqk", qh * (1.0 / math.sqrt(S)), kh)
    p = jax.nn.softmax(s, axis=-1)
    o = jnp.einsum("bhqk,bhkd->bhqd", p, vh)
    o = o.transpose(0, 2, 1, 3).reshape(B, T, E)
    return (o @ params["wo_t"] + params["bo"]).reshape(B, T, E)


def _check(out, ref, tol=5e-2):
    err = float(jnp.max(jnp.abs(out - ref)))
    scale = float(jnp.max(jnp.abs(ref))) + 1e-6
    assert err / scale < tol, (err, scale)


# ---------------------------------------------------------------------------
if __name__ == "__main__":
    # Small shapes consistent with the module (embed divisible by heads);
    # embed=256, heads=2 -> head_dim=128 keeps every tile lane-dense.
    EMBED, HEADS, BATCH, SEQ = 256, 2, 2, 128

    key = jax.random.PRNGKey(0)
    pkey, xkey = jax.random.split(key)
    params = init_params(pkey, EMBED)
    prep = prepare_params(params, heads=HEADS, embed=EMBED)

    fwd = jax.jit(functools.partial(attention_m_forward, heads=HEADS))

    # --- main check (single-pass softmax path, T=128) -----------------------
    x = jax.random.normal(xkey, (BATCH, SEQ, EMBED), jnp.float32)
    out = fwd(x, prep)
    jax.block_until_ready(out)
    assert out.shape == (BATCH, SEQ, EMBED), out.shape
    assert bool(jnp.all(jnp.isfinite(out)))
    _check(out, attention_m_ref(x, params, heads=HEADS))

    # --- secondary check (online-softmax flash path, T=1024) ----------------
    x_long = jax.random.normal(jax.random.PRNGKey(1), (1, 1024, EMBED), jnp.float32)
    out_long = fwd(x_long, prep)
    jax.block_until_ready(out_long)
    assert bool(jnp.all(jnp.isfinite(out_long)))
    _check(out_long, attention_m_ref(x_long, params, heads=HEADS))

    print("KERNEL_OK")
</pallas_src>

<mosaic_0001>
module attributes {stable_mosaic.version = 11 : i64} {
  func.func @_matmul_bias_kernel(%arg0: i32, %arg1: memref<128x256xf32, #tpu.memory_space<vmem>>, %arg2: memref<256x768xbf16, #tpu.memory_space<vmem>>, %arg3: memref<1x768xf32, #tpu.memory_space<vmem>>, %arg4: memref<128x768xbf16, #tpu.memory_space<vmem>>) attributes {dimension_semantics = [#tpu.dimension_semantics<parallel>], iteration_bounds = array<i64: 2>, scalar_prefetch = 0 : i64, scratch_operands = 0 : i64, tpu.core_type = #tpu.core_type<tc>, window_params = [{transform_indices = @transform_0, window_bounds = array<i64: 128, 256>}, {pipeline_mode = #tpu.pipeline_mode<synchronous>, transform_indices = @transform_1, window_bounds = array<i64: 256, 768>}, {pipeline_mode = #tpu.pipeline_mode<synchronous>, transform_indices = @transform_2, window_bounds = array<i64: 1, 768>}, {transform_indices = @transform_3, window_bounds = array<i64: 128, 768>}]} {
    %c0 = arith.constant 0 : index
    %c0_0 = arith.constant 0 : index
    %0 = vector.load %arg1[%c0, %c0_0] : memref<128x256xf32, #tpu.memory_space<vmem>>, vector<128x256xf32>
    %1 = arith.truncf %0 : vector<128x256xf32> to vector<128x256xbf16>
    %c0_1 = arith.constant 0 : index
    %c0_2 = arith.constant 0 : index
    %2 = vector.load %arg2[%c0_1, %c0_2] : memref<256x768xbf16, #tpu.memory_space<vmem>>, vector<256x768xbf16>
    %cst = arith.constant dense<0.000000e+00> : vector<128x768xf32>
    %3 = tpu.matmul %1, %2, %cst {dimension_numbers = #tpu.dot_dimension_numbers<[1], [0], [0], [1], [0, 0, 1, 1], [], []>} : vector<128x256xbf16>, vector<256x768xbf16>, vector<128x768xf32> -> vector<128x768xf32>
    %c0_3 = arith.constant 0 : index
    %c0_4 = arith.constant 0 : index
    %4 = vector.load %arg3[%c0_3, %c0_4] : memref<1x768xf32, #tpu.memory_space<vmem>>, vector<1x768xf32>
    %5 = vector.broadcast %4 : vector<1x768xf32> to vector<128x768xf32>
    %6 = arith.addf %3, %5 : vector<128x768xf32>
    %7 = arith.truncf %6 : vector<128x768xf32> to vector<128x768xbf16>
    %c0_5 = arith.constant 0 : index
    %c0_6 = arith.constant 0 : index
    %8 = vector.load %arg4[%c0_5, %c0_6] : memref<128x768xbf16, #tpu.memory_space<vmem>>, vector<128x768xbf16>
    tpu.vector_store %arg4[%c0_5, %c0_6], %7 {strides = array<i32>} : memref<128x768xbf16, #tpu.memory_space<vmem>>, vector<128x768xbf16>,
    return
  }
  func.func @transform_0(%arg0: i32) -> (i32, i32) {
    %c0_i32 = arith.constant 0 : i32
    %c0_i32_0 = arith.constant 0 : i32
    return %arg0, %c0_i32 : i32, i32
  }
  func.func @transform_1(%arg0: i32) -> (i32, i32) {
    %c0_i32 = arith.constant 0 : i32
    %c0_i32_0 = arith.constant 0 : i32
    %c0_i32_1 = arith.constant 0 : i32
    return %c0_i32, %c0_i32_0 : i32, i32
  }
  func.func @transform_2(%arg0: i32) -> (i32, i32) {
    %c0_i32 = arith.constant 0 : i32
    %c0_i32_0 = arith.constant 0 : i32
    %c0_i32_1 = arith.constant 0 : i32
    return %c0_i32, %c0_i32_0 : i32, i32
  }
  func.func @transform_3(%arg0: i32) -> (i32, i32) {
    %c0_i32 = arith.constant 0 : i32
    %c0_i32_0 = arith.constant 0 : i32
    return %arg0, %c0_i32 : i32, i32
  }
}

module attributes {stable_mosaic.version = 11 : i64} {
  func.func @_matmul_bias_kernel(%arg0: i32, %arg1: memref<128x256xbf16, #tpu.memory_space<vmem>>, %arg2: memref<256x256xbf16, #tpu.memory_space<vmem>>, %arg3: memref<1x256xf32, #tpu.memory_space<vmem>>, %arg4: memref<128x256xf32, #tpu.memory_space<vmem>>) attributes {dimension_semantics = [#tpu.dimension_semantics<parallel>], iteration_bounds = array<i64: 2>, scalar_prefetch = 0 : i64, scratch_operands = 0 : i64, tpu.core_type = #tpu.core_type<tc>, window_params = [{transform_indices = @transform_0, window_bounds = array<i64: 128, 256>}, {pipeline_mode = #tpu.pipeline_mode<synchronous>, transform_indices = @transform_1, window_bounds = array<i64: 256, 256>}, {pipeline_mode = #tpu.pipeline_mode<synchronous>, transform_indices = @transform_2, window_bounds = array<i64: 1, 256>}, {transform_indices = @transform_3, window_bounds = array<i64: 128, 256>}]} {
    %c0 = arith.constant 0 : index
    %c0_0 = arith.constant 0 : index
    %0 = vector.load %arg1[%c0, %c0_0] : memref<128x256xbf16, #tpu.memory_space<vmem>>, vector<128x256xbf16>
    %c0_1 = arith.constant 0 : index
    %c0_2 = arith.constant 0 : index
    %1 = vector.load %arg2[%c0_1, %c0_2] : memref<256x256xbf16, #tpu.memory_space<vmem>>, vector<256x256xbf16>
    %cst = arith.constant dense<0.000000e+00> : vector<128x256xf32>
    %2 = tpu.matmul %0, %1, %cst {dimension_numbers = #tpu.dot_dimension_numbers<[1], [0], [0], [1], [0, 0, 1, 1], [], []>} : vector<128x256xbf16>, vector<256x256xbf16>, vector<128x256xf32> -> vector<128x256xf32>
    %c0_3 = arith.constant 0 : index
    %c0_4 = arith.constant 0 : index
    %3 = vector.load %arg3[%c0_3, %c0_4] : memref<1x256xf32, #tpu.memory_space<vmem>>, vector<1x256xf32>
    %4 = vector.broadcast %3 : vector<1x256xf32> to vector<128x256xf32>
    %5 = arith.addf %2, %4 : vector<128x256xf32>
    %c0_5 = arith.constant 0 : index
    %c0_6 = arith.constant 0 : index
    %6 = vector.load %arg4[%c0_5, %c0_6] : memref<128x256xf32, #tpu.memory_space<vmem>>, vector<128x256xf32>
    tpu.vector_store %arg4[%c0_5, %c0_6], %5 {strides = array<i32>} : memref<128x256xf32, #tpu.memory_space<vmem>>, vector<128x256xf32>,
    return
  }
  func.func @transform_0(%arg0: i32) -> (i32, i32) {
    %c0_i32 = arith.constant 0 : i32
    %c0_i32_0 = arith.constant 0 : i32
    return %arg0, %c0_i32 : i32, i32
  }
  func.func @transform_1(%arg0: i32) -> (i32, i32) {
    %c0_i32 = arith.constant 0 : i32
    %c0_i32_0 = arith.constant 0 : i32
    %c0_i32_1 = arith.constant 0 : i32
    return %c0_i32, %c0_i32_0 : i32, i32
  }
  func.func @transform_2(%arg0: i32) -> (i32, i32) {
    %c0_i32 = arith.constant 0 : i32
    %c0_i32_0 = arith.constant 0 : i32
    %c0_i32_1 = arith.constant 0 : i32
    return %c0_i32, %c0_i32_0 : i32, i32
  }
  func.func @transform_3(%arg0: i32) -> (i32, i32) {
    %c0_i32 = arith.constant 0 : i32
    %c0_i32_0 = arith.constant 0 : i32
    return %arg0, %c0_i32 : i32, i32
  }
}

module attributes {stable_mosaic.version = 11 : i64} {
  func.func @_attn_single_pass_kernel(%arg0: i32, %arg1: i32, %arg2: i32, %arg3: memref<128x128xbf16, #tpu.memory_space<vmem>>, %arg4: memref<128x128xbf16, #tpu.memory_space<vmem>>, %arg5: memref<128x128xbf16, #tpu.memory_space<vmem>>, %arg6: memref<128x128xbf16, #tpu.memory_space<vmem>>) attributes {dimension_semantics = [#tpu.dimension_semantics<parallel>, #tpu.dimension_semantics<parallel>, #tpu.dimension_semantics<parallel>], iteration_bounds = array<i64: 2, 2, 1>, scalar_prefetch = 0 : i64, scratch_operands = 0 : i64, tpu.core_type = #tpu.core_type<tc>, window_params = [{transform_indices = @transform_0, window_bounds = array<i64: 128, 128>}, {transform_indices = @transform_1, window_bounds = array<i64: 128, 128>}, {transform_indices = @transform_2, window_bounds = array<i64: 128, 128>}, {transform_indices = @transform_3, window_bounds = array<i64: 128, 128>}]} {
    %c0 = arith.constant 0 : index
    %c0_0 = arith.constant 0 : index
    %0 = vector.load %arg3[%c0, %c0_0] : memref<128x128xbf16, #tpu.memory_space<vmem>>, vector<128x128xbf16>
    %c0_1 = arith.constant 0 : index
    %c0_2 = arith.constant 0 : index
    %1 = vector.load %arg4[%c0_1, %c0_2] : memref<128x128xbf16, #tpu.memory_space<vmem>>, vector<128x128xbf16>
    %cst = arith.constant dense<0.000000e+00> : vector<128x128xf32>
    %2 = tpu.matmul %0, %1, %cst {dimension_numbers = #tpu.dot_dimension_numbers<[1], [1], [0], [0], [0, 0, 1, 0], [], []>} : vector<128x128xbf16>, vector<128x128xbf16>, vector<128x128xf32> -> vector<128x128xf32>
    %cst_3 = arith.constant dense<0xFF800000> : vector<128xf32>
    %3 = vector.multi_reduction <maximumf>, %2, %cst_3 [1] : vector<128x128xf32> to vector<128xf32>
    %4 = vector.shape_cast %3 : vector<128xf32> to vector<128x1xf32>
    %5 = vector.broadcast %4 : vector<128x1xf32> to vector<128x128xf32>
    %6 = arith.subf %2, %5 : vector<128x128xf32>
    %7 = math.exp %6 : vector<128x128xf32>
    %cst_4 = arith.constant dense<0.000000e+00> : vector<128xf32>
    %8 = vector.multi_reduction <add>, %7, %cst_4 [1] : vector<128x128xf32> to vector<128xf32>
    %9 = vector.shape_cast %8 : vector<128xf32> to vector<128x1xf32>
    %10 = arith.truncf %7 : vector<128x128xf32> to vector<128x128xbf16>
    %c0_5 = arith.constant 0 : index
    %c0_6 = arith.constant 0 : index
    %11 = vector.load %arg5[%c0_5, %c0_6] : memref<128x128xbf16, #tpu.memory_space<vmem>>, vector<128x128xbf16>
    %cst_7 = arith.constant dense<0.000000e+00> : vector<128x128xf32>
    %12 = tpu.matmul %10, %11, %cst_7 {dimension_numbers = #tpu.dot_dimension_numbers<[1], [0], [0], [1], [0, 0, 1, 1], [], []>} : vector<128x128xbf16>, vector<128x128xbf16>, vector<128x128xf32> -> vector<128x128xf32>
    %13 = tpu.reciprocal %9 {approx = true} : vector<128x1xf32> -> vector<128x1xf32>
    %14 = vector.broadcast %13 : vector<128x1xf32> to vector<128x128xf32>
    %15 = arith.mulf %12, %14 : vector<128x128xf32>
    %16 = arith.truncf %15 : vector<128x128xf32> to vector<128x128xbf16>
    %c0_8 = arith.constant 0 : index
    %c0_9 = arith.constant 0 : index
    %17 = vector.load %arg6[%c0_8, %c0_9] : memref<128x128xbf16, #tpu.memory_space<vmem>>, vector<128x128xbf16>
    tpu.vector_store %arg6[%c0_8, %c0_9], %16 {strides = array<i32>} : memref<128x128xbf16, #tpu.memory_space<vmem>>, vector<128x128xbf16>,
    return
  }
  func.func @transform_0(%arg0: i32, %arg1: i32, %arg2: i32) -> (i32, i32) {
    %c1_i32 = arith.constant 1 : i32
    %0 = arith.muli %arg0, %c1_i32 : i32
    %1 = arith.addi %0, %arg2 : i32
    %c0_i32 = arith.constant 0 : i32
    return %1, %arg1 : i32, i32
  }
  func.func @transform_1(%arg0: i32, %arg1: i32, %arg2: i32) -> (i32, i32) {
    %c2_i32 = arith.constant 2 : i32
    %0 = arith.addi %c2_i32, %arg1 : i32
    %c0_i32 = arith.constant 0 : i32
    return %arg0, %0 : i32, i32
  }
  func.func @transform_2(%arg0: i32, %arg1: i32, %arg2: i32) -> (i32, i32) {
    %c4_i32 = arith.constant 4 : i32
    %0 = arith.addi %c4_i32, %arg1 : i32
    %c0_i32 = arith.constant 0 : i32
    return %arg0, %0 : i32, i32
  }
  func.func @transform_3(%arg0: i32, %arg1: i32, %arg2: i32) -> (i32, i32) {
    %c1_i32 = arith.constant 1 : i32
    %0 = arith.muli %arg0, %c1_i32 : i32
    %1 = arith.addi %0, %arg2 : i32
    %c0_i32 = arith.constant 0 : i32
    return %1, %arg1 : i32, i32
  }
}

</mosaic_0001>

<bundles_post_ra>
// kernel: attention_m_forward.5
= control target key start
LH: loop header
LB: loop body
LE: loop exit
PB: predicated region body
PF: predicated region fallthrough
CT: control target
= control target key end

     0   :  { %8 = vsyncpa [#allocation3], 0  ;;  %s1460_s0 = inlined_call_operand.vmem [shape: bf16[256,256], index: 0, kind: input, shape index: {}]   ;;  %s1461_s1 = inlined_call_operand.hbm [shape: bf16[256,256], index: 1, kind: input, shape index: {}]   ;;  %s1462_s2 = inlined_call_operand.vmem [shape: f32[1,256], index: 2, kind: input, shape index: {}]   ;;  %s1463_s3 = inlined_call_operand.hbm [shape: f32[256,256], index: 3, kind: output, shape index: {}]  }
   0x1   :  { %9 = vsyncpa [#allocation4], 0 }
   0x2   :  { %11 = vsyncpa [#allocation4 + $0x1], 0  ;;  %s1241_s12 = smov 0   ;;  %s1243_s13 = smov 0  }
   0x3   :  { %s1245_s14 = smov 0   ;;  %s1247_s15 = smov 0  }
   0x4 LB: > { %s1262_s16 = sadd.s32 4294967295, %s1214_s15   ;;  %s805_s17 = sadd.s32 4294967294, %s1214_s15   ;;  %s1214_s15 = sphi %s1247_s15, %s1470_s15   ;;  %s1210_s14 = sphi %s1245_s14, %s1469_s14   ;;  %s1206_s13 = sphi %s1243_s13, %s1468_s13   ;;  %s1202_s12 = sphi %s1241_s12, %s1467_s12  }
   0x5   : > { %s1266_s18 = sadd.s32 1, %s1214_s15   ;;  %s92_s19 = sadd.s32 1, %s1210_s14 }
   0x6   : > { %s89_s20 = ssub.s32 %s1214_s15, %s1266_s18  ;;  %p102_p0 = scmp.ne.s32.totalorder %s1210_s14, %s1206_s13 }
   0x7   : > { %p90_p1 = scmp.eq.s32.totalorder %s89_s20, 0  ;;  %p103_p2 = scmp.eq.s32.totalorder %s1262_s16, 1 }
   0x8   : > { %p108_p3 = scmp.ne.s32.totalorder %s1206_s13, %s1202_s12  ;;  %p109_p4 = scmp.eq.s32.totalorder %s805_s17, 1 }
   0x9   : > { %s1277_s21 = scalar_select %p90_p1, %s1210_s14, %s92_s19  }
   0xa   : > { %p1279_p5 = por %p103_p2, %p102_p0  ;;  %p1283_p6 = por %p109_p4, %p108_p3 }
   0xb   : > { %p806_p7 = scmp.ge.s32.totalorder %s1214_s15, 1  ;;  %p116_p8 = scmp.lt.s32.totalorder %s1214_s15, 3 }
   0xc   : > { %p1078_p9 = scmp.eq.s32.totalorder %s1262_s16, 0  ;;  %s127_s26 = sshll.u32 %s1461_s1, 4  ;;  %s128_s26 = int_to_ptr.hbm [resolvable:$true] %s127_s26 }
   0xd   : > { %p117_p10 = pnand %p806_p7, %p116_p8  ;;  %s1216_s27 = smov [#allocation2]  }
   0xe   : > { %s129_s28 = sshll.u32 %s1216_s27, 4  ;;  %s1217_s29 = smov 128   ;;  %s130_s28 = int_to_ptr.vmem [resolvable:$true] %s129_s28 }
   0xf   : > { %p1070_p11 = pneg %p117_p10  ;;  %s1218_s30 = smov 8  }
  0x10   : > { %158 = sbr.rel (%p117_p10) target bundleno = 318 (0x13e), region = 32 }
  0x11   : > { %p1071_p12 = pnand %p1078_p9, %p1070_p11 }
  0x13   : > { %1073 = dma.hbm_to_vmem [thread:$0]  (!%p1071_p12), %s128_s26, 4096, %s130_s28, [#allocation3], %s1217_s29, %s1217_s29, %s1218_s30  }
  0x15   : > { %1193 = dma.done.wait (%p1078_p9), [#allocation3], 4096  }
  0x16   : > { %1195 = vsyncadd (%p1078_p9), [#allocation3], 4294963200  ;;  %s812_s4 = sshll.u32 %s1262_s16, 4  ;;  %v937_v0 = vld [vmem:[#allocation2 + $0x70] sm:$0xf]  ;;  %s181_s17 = sand.u32 1, %s1206_s13  }
  0x17   : > { %v1045_v1 = vld [vmem:[#allocation2 + $0x74] sm:$0xf0]  ;;  %v1001_v2 = vld [vmem:[#allocation2 + $0xf0] sm:$0xf]  ;;  %v1044_v5 = vld [vmem:[#allocation2 + $0x74] sm:$0xf] }
  0x18   : > { %v938_v3 = vor.u32 %v1045_v1, %v937_v0  ;;  %v1061_v4 = vld [vmem:[#allocation2 + $0xf4] sm:$0xf0]  ;;  %v939_v6 = vld [vmem:[#allocation2 + $0x78] sm:$0xf0]  ;;  %v1060_v9 = vld [vmem:[#allocation2 + $0xf4] sm:$0xf] }
  0x19   : > { %v1002_v7 = vor.u32 %v1061_v4, %v1001_v2  ;;  %v942_v8 = vor.u32 %v1044_v5, %v939_v6  ;;  %v1003_v10 = vld [vmem:[#allocation2 + $0xf8] sm:$0xf0]  ;;  %v929_v11 = vld [vmem:[#allocation2 + $0x60] sm:$0xf]  ;;  %v1043_v13 = vld [vmem:[#allocation2 + $0x64] sm:$0xf0] }
  0x1a   : > { %486 = vmatpush.bf16.msra.mxu0 %v938_v3  ;;  %v1006_v12 = vor.u32 %v1060_v9, %v1003_v10  ;;  %v993_v14 = vld [vmem:[#allocation2 + $0xe0] sm:$0xf]  ;;  %v1059_v15 = vld [vmem:[#allocation2 + $0xe4] sm:$0xf0]  ;;  %v930_v16 = vor.u32 %v1043_v13, %v929_v11  ;;  %v1042_v18 = vld [vmem:[#allocation2 + $0x64] sm:$0xf] }
  0x1b   : > { %535 = vmatpush.bf16.msra.mxu1 %v1002_v7  ;;  %584 = vmatpush.bf16.msra.mxu2 %v942_v8  ;;  %v994_v17 = vor.u32 %v1059_v15, %v993_v14  ;;  %v931_v19 = vld [vmem:[#allocation2 + $0x68] sm:$0xf0]  ;;  %v1058_v20 = vld [vmem:[#allocation2 + $0xe4] sm:$0xf]  ;;  %v921_v23 = vld [vmem:[#allocation2 + $0x50] sm:$0xf] }
  0x1c   : > { %633 = vmatpush.bf16.msra.mxu3 %v1006_v12  ;;  %v934_v21 = vor.u32 %v1042_v18, %v931_v19  ;;  %v995_v22 = vld [vmem:[#allocation2 + $0xe8] sm:$0xf0]  ;;  %v1041_v24 = vld [vmem:[#allocation2 + $0x54] sm:$0xf0]  ;;  %v985_v26 = vld [vmem:[#allocation2 + $0xd0] sm:$0xf] }
  0x1d   : > { %v998_v25 = vor.u32 %v1058_v20, %v995_v22  ;;  %v1057_v27 = vld [vmem:[#allocation2 + $0xd4] sm:$0xf0]  ;;  %v1040_v28 = vld [vmem:[#allocation2 + $0x54] sm:$0xf]  ;;  %v922_v29 = vor.u32 %v1041_v24, %v921_v23  ;;  %v923_v30 = vld [vmem:[#allocation2 + $0x58] sm:$0xf0] }
  0x1e   : > { %487 = vmatpush.bf16.msra.mxu0 %v930_v16  ;;  %v1056_v31 = vld [vmem:[#allocation2 + $0xd4] sm:$0xf]  ;;  %v987_v32 = vld [vmem:[#allocation2 + $0xd8] sm:$0xf0]  ;;  %v986_v33 = vor.u32 %v1057_v27, %v985_v26  ;;  %v926_v34 = vor.u32 %v1040_v28, %v923_v30  ;;  %v913_v35 = vld [vmem:[#allocation2 + $0x40] sm:$0xf] }
  0x1f   : > { %536 = vmatpush.bf16.msra.mxu1 %v994_v17  ;;  %585 = vmatpush.bf16.msra.mxu2 %v934_v21  ;;  %v1039_v36 = vld [vmem:[#allocation2 + $0x44] sm:$0xf0]  ;;  %v977_v37 = vld [vmem:[#allocation2 + $0xc0] sm:$0xf]  ;;  %v990_v38 = vor.u32 %v1056_v31, %v987_v32  ;;  %v1038_v40 = vld [vmem:[#allocation2 + $0x44] sm:$0xf] }
  0x20   : > { %634 = vmatpush.bf16.msra.mxu3 %v998_v25  ;;  %v1055_v39 = vld [vmem:[#allocation2 + $0xc4] sm:$0xf0]  ;;  %v915_v41 = vld [vmem:[#allocation2 + $0x48] sm:$0xf0]  ;;  %v1054_v42 = vld [vmem:[#allocation2 + $0xc4] sm:$0xf]  ;;  %v914_v44 = vor.u32 %v1039_v36, %v913_v35 }
  0x21   : > { %v979_v43 = vld [vmem:[#allocation2 + $0xc8] sm:$0xf0]  ;;  %p1302_p13 = scmp.lt.s32.totalorder %s812_s4, 31  ;;  %v978_v45 = vor.u32 %v1055_v39, %v977_v37  ;;  %v918_v46 = vor.u32 %v1038_v40, %v915_v41  ;;  %v905_v47 = vld [vmem:[#allocation2 + $0x30] sm:$0xf]  ;;  %s811_s19 = sshll.u32 %s181_s17, 8 }
  0x22   : > { %488 = vmatpush.bf16.msra.mxu0 %v922_v29  ;;  %v1037_v48 = vld [vmem:[#allocation2 + $0x34] sm:$0xf0]  ;;  %v969_v49 = vld [vmem:[#allocation2 + $0xb0] sm:$0xf]  ;;  %v982_v50 = vor.u32 %v1054_v42, %v979_v43  ;;  %v1036_v52 = vld [vmem:[#allocation2 + $0x34] sm:$0xf] }
  0x23   : > { %537 = vmatpush.bf16.msra.mxu1 %v986_v33  ;;  %586 = vmatpush.bf16.msra.mxu2 %v926_v34  ;;  %v1053_v51 = vld [vmem:[#allocation2 + $0xb4] sm:$0xf0]  ;;  %v907_v53 = vld [vmem:[#allocation2 + $0x38] sm:$0xf0]  ;;  %v1052_v54 = vld [vmem:[#allocation2 + $0xb4] sm:$0xf]  ;;  %v906_v56 = vor.u32 %v1037_v48, %v905_v47 }
  0x24   : > { %635 = vmatpush.bf16.msra.mxu3 %v990_v38  ;;  %v971_v55 = vld [vmem:[#allocation2 + $0xb8] sm:$0xf0]  ;;  %s1472_s4 = smov (!%p1302_p13, %s812_s4), 31  ;;  %v970_v57 = vor.u32 %v1053_v51, %v969_v49  ;;  %v910_v58 = vor.u32 %v1036_v52, %v907_v53  ;;  %v897_v59 = vld [vmem:[#allocation2 + $0x20] sm:$0xf]  ;;  %s1361_s20 = scalar_lea.vmem [#allocation5], %s811_s19 }
  0x25   : > { %v1035_v60 = vld [vmem:[#allocation2 + $0x24] sm:$0xf0]  ;;  %v961_v61 = vld [vmem:[#allocation2 + $0xa0] sm:$0xf]  ;;  %v974_v62 = vor.u32 %v1052_v54, %v971_v55  ;;  %v1034_v0 = vld [vmem:[#allocation2 + $0x24] sm:$0xf] }
  0x26   : > { %489 = vmatpush.bf16.msra.mxu0 %v914_v44  ;;  %v1051_v63 = vld [vmem:[#allocation2 + $0xa4] sm:$0xf0]  ;;  %v899_v1 = vld [vmem:[#allocation2 + $0x28] sm:$0xf0]  ;;  %v1050_v2 = vld [vmem:[#allocation2 + $0xa4] sm:$0xf]  ;;  %v898_v4 = vor.u32 %v1035_v60, %v897_v59 }
  0x27   : > { %538 = vmatpush.bf16.msra.mxu1 %v978_v45  ;;  %587 = vmatpush.bf16.msra.mxu2 %v918_v46  ;;  %v963_v3 = vld [vmem:[#allocation2 + $0xa8] sm:$0xf0]  ;;  %s1013_s6 = sshll.u32 %s1472_s4, 3  ;;  %v962_v5 = vor.u32 %v1051_v63, %v961_v61  ;;  %v902_v6 = vor.u32 %v1034_v0, %v899_v1  ;;  %v889_v7 = vld [vmem:[#allocation2 + $0x10] sm:$0xf]  ;;  %s1063_s24 = sshll.u32 %s1262_s16, 8 }
  0x28   : > { %636 = vmatpush.bf16.msra.mxu3 %v982_v50  ;;  %v1033_v8 = vld [vmem:[#allocation2 + $0x14] sm:$0xf0]  ;;  %v953_v9 = vld [vmem:[#allocation2 + $0x90] sm:$0xf]  ;;  %v966_v10 = vor.u32 %v1050_v2, %v963_v3  ;;  %v1032_v12 = vld [vmem:[#allocation2 + $0x14] sm:$0xf]  ;;  %s1316_s9 = scalar_lea.vmem %s1460_s0, %s1013_s6  ;;  %s727_s27 = scalar_lea.hbm %s1463_s3, %s1063_s24 }
  0x29   : > { %v1049_v11 = vld [vmem:[#allocation2 + $0x94] sm:$0xf0]  ;;  %v891_v13 = vld [vmem:[#allocation2 + $0x18] sm:$0xf0]  ;;  %v1048_v14 = vld [vmem:[#allocation2 + $0x94] sm:$0xf]  ;;  %v890_v16 = vor.u32 %v1033_v8, %v889_v7 }
  0x2a   : > { %490 = vmatpush.bf16.msra.mxu0 %v906_v56  ;;  %v955_v15 = vld [vmem:[#allocation2 + $0x98] sm:$0xf0]  ;;  %v954_v17 = vor.u32 %v1049_v11, %v953_v9  ;;  %v894_v18 = vor.u32 %v1032_v12, %v891_v13  ;;  %v881_v19 = vld [vmem:[#allocation2] sm:$0xf]  ;;  %v1031_v20 = vld [vmem:[#allocation2 + $0x4] sm:$0xf0] }
  0x2b   : > { %539 = vmatpush.bf16.msra.mxu1 %v970_v57  ;;  %588 = vmatpush.bf16.msra.mxu2 %v910_v58  ;;  %v945_v21 = vld [vmem:[#allocation2 + $0x80] sm:$0xf]  ;;  %v958_v22 = vor.u32 %v1048_v14, %v955_v15  ;;  %v1047_v23 = vld [vmem:[#allocation2 + $0x84] sm:$0xf0]  ;;  %v1030_v24 = vld [vmem:[#allocation2 + $0x4] sm:$0xf]  ;;  %v882_v28 = vor.u32 %v1031_v20, %v881_v19 }
  0x2c   : > { %637 = vmatpush.bf16.msra.mxu3 %v974_v62  ;;  %v883_v25 = vld [vmem:[#allocation2 + $0x8] sm:$0xf0]  ;;  %v1046_v26 = vld [vmem:[#allocation2 + $0x84] sm:$0xf]  ;;  %v817_v29 = vld [vmem:[%s1316_s9] sm:$0xf]  ;;  %v946_v31 = vor.u32 %v1047_v23, %v945_v21 }
  0x2d   : > { %v947_v27 = vld [vmem:[#allocation2 + $0x88] sm:$0xf0]  ;;  %v1015_v30 = vld [vmem:[%s1316_s9 + $0x4] sm:$0xf0]  ;;  %v886_v32 = vor.u32 %v1030_v24, %v883_v25  ;;  %v1014_v33 = vld [vmem:[%s1316_s9 + $0x4] sm:$0xf] }
  0x2e   : > { %491 = vmatpush.bf16.msra.mxu0 %v898_v4  ;;  %v819_v34 = vld [vmem:[%s1316_s9 + $0x8] sm:$0xf0]  ;;  %v950_v35 = vor.u32 %v1046_v26, %v947_v27  ;;  %v818_v36 = vor.u32 %v1015_v30, %v817_v29  ;;  %v825_v38 = vld [vmem:[%s1316_s9 + $0x10] sm:$0xf]  ;;  %v1017_v39 = vld [vmem:[%s1316_s9 + $0x14] sm:$0xf0] }
  0x2f   : > { %540 = vmatpush.bf16.msra.mxu1 %v962_v5  ;;  %589 = vmatpush.bf16.msra.mxu2 %v902_v6  ;;  %v822_v37 = vor.u32 %v1014_v33, %v819_v34  ;;  %v1016_v40 = vld [vmem:[%s1316_s9 + $0x14] sm:$0xf]  ;;  %v827_v41 = vld [vmem:[%s1316_s9 + $0x18] sm:$0xf0]  ;;  %v826_v42 = vor.u32 %v1017_v39, %v825_v38  ;;  %v833_v44 = vld [vmem:[%s1316_s9 + $0x20] sm:$0xf] }
  0x30   : > { %638 = vmatpush.bf16.msra.mxu3 %v966_v10  ;;  %v830_v43 = vor.u32 %v1016_v40, %v827_v41  ;;  %v1019_v45 = vld [vmem:[%s1316_s9 + $0x24] sm:$0xf0]  ;;  %v1018_v46 = vld [vmem:[%s1316_s9 + $0x24] sm:$0xf]  ;;  %v835_v47 = vld [vmem:[%s1316_s9 + $0x28] sm:$0xf0] }
  0x31   : > { %v834_v48 = vor.u32 %v1019_v45, %v833_v44  ;;  %v838_v49 = vor.u32 %v1018_v46, %v835_v47  ;;  %v841_v50 = vld [vmem:[%s1316_s9 + $0x30] sm:$0xf]  ;;  %v1021_v51 = vld [vmem:[%s1316_s9 + $0x34] sm:$0xf0]  ;;  %v1020_v52 = vld [vmem:[%s1316_s9 + $0x34] sm:$0xf] }
  0x32   : > { %492 = vmatpush.bf16.msra.mxu0 %v890_v16  ;;  %v843_v53 = vld [vmem:[%s1316_s9 + $0x38] sm:$0xf0]  ;;  %v842_v54 = vor.u32 %v1021_v51, %v841_v50  ;;  %v849_v56 = vld [vmem:[%s1316_s9 + $0x40] sm:$0xf]  ;;  %v1023_v57 = vld [vmem:[%s1316_s9 + $0x44] sm:$0xf0] }
  0x33   : > { %541 = vmatpush.bf16.msra.mxu1 %v954_v17  ;;  %590 = vmatpush.bf16.msra.mxu2 %v894_v18  ;;  %v846_v55 = vor.u32 %v1020_v52, %v843_v53  ;;  %v1022_v58 = vld [vmem:[%s1316_s9 + $0x44] sm:$0xf]  ;;  %v851_v59 = vld [vmem:[%s1316_s9 + $0x48] sm:$0xf0]  ;;  %v850_v60 = vor.u32 %v1023_v57, %v849_v56  ;;  %v857_v62 = vld [vmem:[%s1316_s9 + $0x50] sm:$0xf] }
  0x34   : > { %639 = vmatpush.bf16.msra.mxu3 %v958_v22  ;;  %v854_v61 = vor.u32 %v1022_v58, %v851_v59  ;;  %v1025_v63 = vld [vmem:[%s1316_s9 + $0x54] sm:$0xf0]  ;;  %v1024_v0 = vld [vmem:[%s1316_s9 + $0x54] sm:$0xf]  ;;  %v859_v1 = vld [vmem:[%s1316_s9 + $0x58] sm:$0xf0] }
  0x35   : > { %v858_v2 = vor.u32 %v1025_v63, %v857_v62  ;;  %v862_v3 = vor.u32 %v1024_v0, %v859_v1  ;;  %v865_v4 = vld [vmem:[%s1316_s9 + $0x60] sm:$0xf]  ;;  %v1027_v5 = vld [vmem:[%s1316_s9 + $0x64] sm:$0xf0]  ;;  %v1026_v6 = vld [vmem:[%s1316_s9 + $0x64] sm:$0xf] }
  0x36   : > { %493 = vmatpush.bf16.msra.mxu0 %v882_v28  ;;  %v867_v7 = vld [vmem:[%s1316_s9 + $0x68] sm:$0xf0]  ;;  %v866_v8 = vor.u32 %v1027_v5, %v865_v4  ;;  %v873_v10 = vld [vmem:[%s1316_s9 + $0x70] sm:$0xf]  ;;  %v1029_v11 = vld [vmem:[%s1316_s9 + $0x74] sm:$0xf0] }
  0x37   : > { %542 = vmatpush.bf16.msra.mxu1 %v946_v31  ;;  %591 = vmatpush.bf16.msra.mxu2 %v886_v32  ;;  %v870_v9 = vor.u32 %v1026_v6, %v867_v7  ;;  %v1028_v12 = vld [vmem:[%s1316_s9 + $0x74] sm:$0xf]  ;;  %v875_v13 = vld [vmem:[%s1316_s9 + $0x78] sm:$0xf0]  ;;  %v874_v14 = vor.u32 %v1029_v11, %v873_v10  ;;  %v240_v16 = vld [vmem:[%s1462_s2] sm:$0x3] }
  0x38   : > { %640 = vmatpush.bf16.msra.mxu3 %v950_v35  ;;  %v878_v15 = vor.u32 %v1028_v12, %v875_v13  ;;  %v1354_v17 = vperm.slane %v240_v16, 0  ;;  %v1359_v22 = vperm.slane %v240_v16, 1  ;;  %s728_s28 = sshll.u32 %s1361_s20, 4  ;;  %s730_s29 = sshll.u32 %s727_s27, 4  ;;  %s729_s28 = int_to_ptr.vmem [resolvable:$true] %s728_s28  ;;  %s731_s29 = int_to_ptr.hbm [resolvable:$true] %s730_s29 }
  0x39   : > { %494 = vmatmul.bf16.vlgmr.msra.gmra.mxu0 %v818_v36  ;;  %s715_s16 = scalar_lea.sflag [#allocation4], %s181_s17  ;;  %s1162_s30 = sshra.s32 %s731_s29, 4  ;;  %s1163_s30 = int_to_ptr.hbm [resolvable:$true] %s1162_s30 }
  0x3a   : > { %543 = vmatmul.bf16.vlgmr.msra.gmra.mxu1 %v822_v37  ;;  %592 = vmatmul.bf16.vlgmr.msra.gmra.mxu2 %v818_v36  ;;  %s1164_s4 = scalar_lea.hbm %s1163_s30, 256  ;;  %s1168_s7 = scalar_lea.hbm %s1463_s3, 512 }
  0x3b   : > { %641 = vmatmul.bf16.vlgmr.msra.gmra.mxu3 %v822_v37  ;;  %p1165_p0 = scmp.ne.s32.totalorder %s1163_s30, %s1164_s4  ;;  %p1169_p3 = scmp.lt.s32.totalorder %s1163_s30, %s1463_s3 }
  0x3c   : > { %p1170_p4 = scmp.lt.s32.totalorder %s1168_s7, %s1164_s4 }
  0x3d   : > { %p1166_p1 = pnand %p1165_p0, %p1279_p5 }
  0x3e   : > { %p1171_p7 = por %p1170_p4, %p1169_p3 }
  0x3f   : > { %p1167_p2 = pneg %p1166_p1 }
  0x41   : > { %p1172_p8 = pnand %p1171_p7, %p1167_p2 }
  0x49   : > { %499 = vmatmul.bf16.gmra.mxu0 %v826_v42 }
  0x4a   : > { %548 = vmatmul.bf16.gmra.mxu1 %v830_v43  ;;  %597 = vmatmul.bf16.gmra.mxu2 %v826_v42 }
  0x4b   : > { %646 = vmatmul.bf16.gmra.mxu3 %v830_v43 }
  0x59   : > { %504 = vmatmul.bf16.gmra.mxu0 %v834_v48 }
  0x5a   : > { %553 = vmatmul.bf16.gmra.mxu1 %v838_v49  ;;  %602 = vmatmul.bf16.gmra.mxu2 %v834_v48 }
  0x5b   : > { %651 = vmatmul.bf16.gmra.mxu3 %v838_v49 }
  0x69   : > { %509 = vmatmul.bf16.gmra.mxu0 %v842_v54 }
  0x6a   : > { %558 = vmatmul.bf16.gmra.mxu1 %v846_v55  ;;  %607 = vmatmul.bf16.gmra.mxu2 %v842_v54 }
  0x6b   : > { %656 = vmatmul.bf16.gmra.mxu3 %v846_v55 }
  0x79   : > { %514 = vmatmul.bf16.gmra.mxu0 %v850_v60 }
  0x7a   : > { %563 = vmatmul.bf16.gmra.mxu1 %v854_v61  ;;  %612 = vmatmul.bf16.gmra.mxu2 %v850_v60 }
  0x7b   : > { %661 = vmatmul.bf16.gmra.mxu3 %v854_v61 }
  0x89   : > { %519 = vmatmul.bf16.gmra.mxu0 %v858_v2 }
  0x8a   : > { %568 = vmatmul.bf16.gmra.mxu1 %v862_v3  ;;  %617 = vmatmul.bf16.gmra.mxu2 %v858_v2 }
  0x8b   : > { %666 = vmatmul.bf16.gmra.mxu3 %v862_v3 }
  0x99   : > { %524 = vmatmul.bf16.gmra.mxu0 %v866_v8 }
  0x9a   : > { %573 = vmatmul.bf16.gmra.mxu1 %v870_v9  ;;  %622 = vmatmul.bf16.gmra.mxu2 %v866_v8 }
  0x9b   : > { %671 = vmatmul.bf16.gmra.mxu3 %v870_v9 }
  0xa9   : > { %529 = vmatmul.bf16.gmra.mxu0 %v874_v14 }
  0xaa   : > { %578 = vmatmul.bf16.gmra.mxu1 %v878_v15  ;;  %627 = vmatmul.bf16.gmra.mxu2 %v874_v14 }
  0xab   : > { %676 = vmatmul.bf16.gmra.mxu3 %v878_v15 }
  0xb6   : > { %v495_v18 = vpop.f32.mrf.mxu0 }
  0xb7   : > { %v496_v19 = vadd.f32 %v495_v18, %v1354_v17  ;;  %v544_v20 = vpop.f32.mrf.mxu1 }
  0xb9   : > { %v545_v21 = vadd.f32 %v544_v20, %v496_v19 }
  0xbb   : > { %682 = vst [vmem:[%s1361_s20] sm:$0xff] %v545_v21 }
  0xbd   : > { %v593_v23 = vpop.f32.mrf.mxu2 }
  0xbe   : > { %v594_v24 = vadd.f32 %v593_v23, %v1359_v22  ;;  %v642_v25 = vpop.f32.mrf.mxu3  ;;  %v497_v26 = vpop.f32.mrf.mxu0 }
  0xbf   : > { %v498_v27 = vadd.f32 %v497_v26, %v1354_v17  ;;  %v546_v28 = vpop.f32.mrf.mxu1 }
  0xc0   : > { %v643_v29 = vadd.f32 %v642_v25, %v594_v24 }
  0xc1   : > { %v547_v30 = vadd.f32 %v546_v28, %v498_v27 }
  0xc2   : > { %683 = vst [vmem:[%s1361_s20 + $0x8] sm:$0xff] %v643_v29 }
  0xc3   : > { %684 = vst [vmem:[%s1361_s20 + $0x10] sm:$0xff] %v547_v30 }
  0xc5   : > { %v595_v31 = vpop.f32.mrf.mxu2 }
  0xc6   : > { %v596_v32 = vadd.f32 %v595_v31, %v1359_v22  ;;  %v644_v33 = vpop.f32.mrf.mxu3  ;;  %v500_v34 = vpop.f32.mrf.mxu0 }
  0xc7   : > { %v501_v35 = vadd.f32 %v500_v34, %v1354_v17  ;;  %v549_v36 = vpop.f32.mrf.mxu1 }
  0xc8   : > { %v645_v37 = vadd.f32 %v644_v33, %v596_v32 }
  0xc9   : > { %v550_v38 = vadd.f32 %v549_v36, %v501_v35 }
  0xca   : > { %685 = vst [vmem:[%s1361_s20 + $0x18] sm:$0xff] %v645_v37 }
  0xcb   : > { %686 = vst [vmem:[%s1361_s20 + $0x20] sm:$0xff] %v550_v38 }
  0xcd   : > { %v598_v39 = vpop.f32.mrf.mxu2 }
  0xce   : > { %v599_v40 = vadd.f32 %v598_v39, %v1359_v22  ;;  %v647_v41 = vpop.f32.mrf.mxu3  ;;  %v502_v42 = vpop.f32.mrf.mxu0 }
  0xcf   : > { %v503_v43 = vadd.f32 %v502_v42, %v1354_v17  ;;  %v551_v44 = vpop.f32.mrf.mxu1 }
  0xd0   : > { %v648_v45 = vadd.f32 %v647_v41, %v599_v40 }
  0xd1   : > { %v552_v46 = vadd.f32 %v551_v44, %v503_v43 }
  0xd2   : > { %687 = vst [vmem:[%s1361_s20 + $0x28] sm:$0xff] %v648_v45 }
  0xd3   : > { %688 = vst [vmem:[%s1361_s20 + $0x30] sm:$0xff] %v552_v46 }
  0xd5   : > { %v600_v47 = vpop.f32.mrf.mxu2 }
  0xd6   : > { %v601_v48 = vadd.f32 %v600_v47, %v1359_v22  ;;  %v649_v49 = vpop.f32.mrf.mxu3  ;;  %v505_v50 = vpop.f32.mrf.mxu0 }
  0xd7   : > { %v506_v51 = vadd.f32 %v505_v50, %v1354_v17  ;;  %v554_v52 = vpop.f32.mrf.mxu1 }
  0xd8   : > { %v650_v53 = vadd.f32 %v649_v49, %v601_v48 }
  0xd9   : > { %v555_v54 = vadd.f32 %v554_v52, %v506_v51 }
  0xda   : > { %689 = vst [vmem:[%s1361_s20 + $0x38] sm:$0xff] %v650_v53 }
  0xdb   : > { %690 = vst [vmem:[%s1361_s20 + $0x40] sm:$0xff] %v555_v54 }
  0xdd   : > { %v603_v55 = vpop.f32.mrf.mxu2 }
  0xde   : > { %v604_v56 = vadd.f32 %v603_v55, %v1359_v22  ;;  %v652_v57 = vpop.f32.mrf.mxu3  ;;  %v507_v58 = vpop.f32.mrf.mxu0 }
  0xdf   : > { %v508_v59 = vadd.f32 %v507_v58, %v1354_v17  ;;  %v556_v60 = vpop.f32.mrf.mxu1 }
  0xe0   : > { %v653_v61 = vadd.f32 %v652_v57, %v604_v56 }
  0xe1   : > { %v557_v62 = vadd.f32 %v556_v60, %v508_v59 }
  0xe2   : > { %691 = vst [vmem:[%s1361_s20 + $0x48] sm:$0xff] %v653_v61 }
  0xe3   : > { %692 = vst [vmem:[%s1361_s20 + $0x50] sm:$0xff] %v557_v62 }
  0xe5   : > { %v605_v63 = vpop.f32.mrf.mxu2 }
  0xe6   : > { %v606_v0 = vadd.f32 %v605_v63, %v1359_v22  ;;  %v654_v1 = vpop.f32.mrf.mxu3  ;;  %v510_v2 = vpop.f32.mrf.mxu0 }
  0xe7   : > { %v511_v3 = vadd.f32 %v510_v2, %v1354_v17  ;;  %v559_v4 = vpop.f32.mrf.mxu1 }
  0xe8   : > { %v655_v5 = vadd.f32 %v654_v1, %v606_v0 }
  0xe9   : > { %v560_v6 = vadd.f32 %v559_v4, %v511_v3 }
  0xea   : > { %693 = vst [vmem:[%s1361_s20 + $0x58] sm:$0xff] %v655_v5 }
  0xeb   : > { %694 = vst [vmem:[%s1361_s20 + $0x60] sm:$0xff] %v560_v6 }
  0xed   : > { %v608_v7 = vpop.f32.mrf.mxu2 }
  0xee   : > { %v609_v8 = vadd.f32 %v608_v7, %v1359_v22  ;;  %v657_v9 = vpop.f32.mrf.mxu3  ;;  %v512_v10 = vpop.f32.mrf.mxu0 }
  0xef   : > { %v513_v11 = vadd.f32 %v512_v10, %v1354_v17  ;;  %v561_v12 = vpop.f32.mrf.mxu1 }
  0xf0   : > { %v658_v13 = vadd.f32 %v657_v9, %v609_v8 }
  0xf1   : > { %v562_v14 = vadd.f32 %v561_v12, %v513_v11 }
  0xf2   : > { %695 = vst [vmem:[%s1361_s20 + $0x68] sm:$0xff] %v658_v13 }
  0xf3   : > { %696 = vst [vmem:[%s1361_s20 + $0x70] sm:$0xff] %v562_v14 }
  0xf5   : > { %v610_v15 = vpop.f32.mrf.mxu2 }
  0xf6   : > { %v611_v16 = vadd.f32 %v610_v15, %v1359_v22  ;;  %v659_v18 = vpop.f32.mrf.mxu3  ;;  %v515_v19 = vpop.f32.mrf.mxu0 }
  0xf7   : > { %v516_v20 = vadd.f32 %v515_v19, %v1354_v17  ;;  %v564_v21 = vpop.f32.mrf.mxu1 }
  0xf8   : > { %v660_v23 = vadd.f32 %v659_v18, %v611_v16 }
  0xf9   : > { %v565_v24 = vadd.f32 %v564_v21, %v516_v20 }
  0xfa   : > { %697 = vst [vmem:[%s1361_s20 + $0x78] sm:$0xff] %v660_v23 }
  0xfb   : > { %698 = vst [vmem:[%s1361_s20 + $0x80] sm:$0xff] %v565_v24 }
  0xfd   : > { %v613_v25 = vpop.f32.mrf.mxu2 }
  0xfe   : > { %v614_v26 = vadd.f32 %v613_v25, %v1359_v22  ;;  %v662_v27 = vpop.f32.mrf.mxu3  ;;  %v517_v28 = vpop.f32.mrf.mxu0 }
  0xff   : > { %v518_v29 = vadd.f32 %v517_v28, %v1354_v17  ;;  %v566_v30 = vpop.f32.mrf.mxu1 }
 0x100   : > { %v663_v31 = vadd.f32 %v662_v27, %v614_v26 }
 0x101   : > { %v567_v32 = vadd.f32 %v566_v30, %v518_v29 }
 0x102   : > { %699 = vst [vmem:[%s1361_s20 + $0x88] sm:$0xff] %v663_v31 }
 0x103   : > { %700 = vst [vmem:[%s1361_s20 + $0x90] sm:$0xff] %v567_v32 }
 0x105   : > { %v615_v33 = vpop.f32.mrf.mxu2 }
 0x106   : > { %v616_v34 = vadd.f32 %v615_v33, %v1359_v22  ;;  %v664_v35 = vpop.f32.mrf.mxu3  ;;  %v520_v36 = vpop.f32.mrf.mxu0 }
 0x107   : > { %v521_v37 = vadd.f32 %v520_v36, %v1354_v17  ;;  %v569_v38 = vpop.f32.mrf.mxu1 }
 0x108   : > { %v665_v39 = vadd.f32 %v664_v35, %v616_v34 }
 0x109   : > { %v570_v40 = vadd.f32 %v569_v38, %v521_v37 }
 0x10a   : > { %701 = vst [vmem:[%s1361_s20 + $0x98] sm:$0xff] %v665_v39 }
 0x10b   : > { %702 = vst [vmem:[%s1361_s20 + $0xa0] sm:$0xff] %v570_v40 }
 0x10d   : > { %v618_v41 = vpop.f32.mrf.mxu2 }
 0x10e   : > { %v619_v42 = vadd.f32 %v618_v41, %v1359_v22  ;;  %v667_v43 = vpop.f32.mrf.mxu3  ;;  %v522_v44 = vpop.f32.mrf.mxu0 }
 0x10f   : > { %v523_v45 = vadd.f32 %v522_v44, %v1354_v17  ;;  %v571_v46 = vpop.f32.mrf.mxu1 }
 0x110   : > { %v668_v47 = vadd.f32 %v667_v43, %v619_v42 }
 0x111   : > { %v572_v48 = vadd.f32 %v571_v46, %v523_v45 }
 0x112   : > { %703 = vst [vmem:[%s1361_s20 + $0xa8] sm:$0xff] %v668_v47 }
 0x113   : > { %704 = vst [vmem:[%s1361_s20 + $0xb0] sm:$0xff] %v572_v48 }
 0x115   : > { %v620_v49 = vpop.f32.mrf.mxu2 }
 0x116   : > { %v621_v50 = vadd.f32 %v620_v49, %v1359_v22  ;;  %v669_v51 = vpop.f32.mrf.mxu3  ;;  %v525_v52 = vpop.f32.mrf.mxu0 }
 0x117   : > { %v526_v53 = vadd.f32 %v525_v52, %v1354_v17  ;;  %v574_v54 = vpop.f32.mrf.mxu1 }
 0x118   : > { %v670_v55 = vadd.f32 %v669_v51, %v621_v50 }
 0x119   : > { %v575_v56 = vadd.f32 %v574_v54, %v526_v53 }
 0x11a   : > { %705 = vst [vmem:[%s1361_s20 + $0xb8] sm:$0xff] %v670_v55 }
 0x11b   : > { %706 = vst [vmem:[%s1361_s20 + $0xc0] sm:$0xff] %v575_v56 }
 0x11d   : > { %v623_v57 = vpop.f32.mrf.mxu2 }
 0x11e   : > { %v624_v58 = vadd.f32 %v623_v57, %v1359_v22  ;;  %v672_v59 = vpop.f32.mrf.mxu3  ;;  %v527_v60 = vpop.f32.mrf.mxu0 }
 0x11f   : > { %v528_v61 = vadd.f32 %v527_v60, %v1354_v17  ;;  %v576_v62 = vpop.f32.mrf.mxu1 }
 0x120   : > { %v673_v63 = vadd.f32 %v672_v59, %v624_v58 }
 0x121   : > { %v577_v0 = vadd.f32 %v576_v62, %v528_v61 }
 0x122   : > { %707 = vst [vmem:[%s1361_s20 + $0xc8] sm:$0xff] %v673_v63 }
 0x123   : > { %708 = vst [vmem:[%s1361_s20 + $0xd0] sm:$0xff] %v577_v0 }
 0x125   : > { %v625_v1 = vpop.f32.mrf.mxu2 }
 0x126   : > { %v626_v2 = vadd.f32 %v625_v1, %v1359_v22  ;;  %v674_v3 = vpop.f32.mrf.mxu3  ;;  %v530_v4 = vpop.f32.mrf.mxu0 }
 0x127   : > { %v531_v5 = vadd.f32 %v530_v4, %v1354_v17  ;;  %v579_v6 = vpop.f32.mrf.mxu1 }
 0x128   : > { %v675_v7 = vadd.f32 %v674_v3, %v626_v2 }
 0x129   : > { %v580_v8 = vadd.f32 %v579_v6, %v531_v5 }
 0x12a   : > { %709 = vst [vmem:[%s1361_s20 + $0xd8] sm:$0xff] %v675_v7 }
 0x12b   : > { %710 = vst [vmem:[%s1361_s20 + $0xe0] sm:$0xff] %v580_v8 }
 0x12d   : > { %v628_v9 = vpop.f32.mrf.mxu2 }
 0x12e   : > { %v629_v10 = vadd.f32 %v628_v9, %v1359_v22  ;;  %v677_v11 = vpop.f32.mrf.mxu3  ;;  %v532_v12 = vpop.f32.mrf.mxu0 }
 0x12f   : > { %v533_v13 = vadd.f32 %v532_v12, %v1354_v17  ;;  %v581_v15 = vpop.f32.mrf.mxu1 }
 0x130   : > { %v678_v14 = vadd.f32 %v677_v11, %v629_v10 }
 0x131   : > { %v582_v16 = vadd.f32 %v581_v15, %v533_v13 }
 0x132   : > { %711 = vst [vmem:[%s1361_s20 + $0xe8] sm:$0xff] %v678_v14 }
 0x133   : > { %712 = vst [vmem:[%s1361_s20 + $0xf0] sm:$0xff] %v582_v16 }
 0x135   : > { %v630_v18 = vpop.f32.mrf.mxu2 }
 0x136   : > { %v631_v19 = vadd.f32 %v630_v18, %v1359_v22  ;;  %v679_v20 = vpop.f32.mrf.mxu3 }
 0x138   : > { %v680_v17 = vadd.f32 %v679_v20, %v631_v19 }
 0x13a   : > { %713 = vst [vmem:[%s1361_s20 + $0xf8] sm:$0xff] %v680_v17 }
 0x13b   : > { %1175 = shalt.err (!%p1172_p8)
}
 0x13c   : > { %s1219_s10 = smov 256   ;;  %s1220_s11 = smov 16  }
 0x13d   : > { %1068 = dma.vmem_to_hbm [thread:$0]  (%p1279_p5), %s729_s28, 4096, %s731_s29, %s715_s16, %s1219_s10, %s1219_s10, %s1220_s11  }
 0x13e PF: > { %p1080_p9 = scmp.ge.s32.totalorder %s1214_s15, 2  ;;  %s745_s17 = sand.u32 1, %s1202_s12  }
 0x13f   : > { %s746_s19 = scalar_lea.sflag [#allocation4], %s745_s17 }
 0x140   : > { %p1075_p10 = pnand %p1080_p9, %p1283_p6 }
 0x142   : > { %p1076_p11 = pneg %p1075_p10 }
 0x144   : > { %1197 = dma.done.wait (%p1076_p11), %s746_s19, 4096  }
 0x145   : > { %1199 = vsyncadd (%p1076_p11), %s746_s19, 4294963200  ;;  %p14_p12 = scmp.ge.s32.totalorder %s1266_s18, 4   ;;  %s1467_s12 = smov %s1206_s13 }
 0x146   : > { %s1468_s13 = smov %s1210_s14  ;;  %s1469_s14 = smov %s1277_s21 }
 0x147   : > { %s1470_s15 = smov %s1266_s18  ;;  %16 = sbr.rel (!%p14_p12) target bundleno = 4 (0x4), region = 72 }
 0x14c   :  { %752 = vsyncpa [#allocation3], 1 }
 0x14d   :  { %754 = vsyncpa [#allocation3 + $0x1], 1 }
 0x14e   :  { %755 = vsyncpa [#allocation4], 1 }
 0x14f   :  { %757 = vsyncpa [#allocation4 + $0x1], 1 }

// kernel: attention_m_forward.3
= control target key start
LH: loop header
LB: loop body
LE: loop exit
PB: predicated region body
PF: predicated region fallthrough
CT: control target
= control target key end

     0   :  { %8 = vsyncpa [#allocation3], 0  ;;  %s2797_s0 = inlined_call_operand.hbm [shape: f32[256,256], index: 0, kind: input, shape index: {}]   ;;  %s2798_s1 = inlined_call_operand.hbm [shape: bf16[256,768], index: 1, kind: input, shape index: {}]   ;;  %s2799_s2 = inlined_call_operand.hbm [shape: f32[1,768], index: 2, kind: input, shape index: {}]   ;;  %s2800_s3 = inlined_call_operand.vmem [shape: bf16[256,768], index: 3, kind: output, shape index: {}]  }
   0x1   :  { %10 = vsyncpa [#allocation3 + $0x1], 0 }
   0x2   :  { %11 = vsyncpa [#allocation5], 0  ;;  %s2360_s12 = smov 0   ;;  %s2362_s13 = smov 0  }
   0x3   :  { %s2364_s14 = smov 0   ;;  %s2366_s15 = smov 0  }
   0x4 LB: > { %s1639_s16 = sadd.s32 4294967295, %s2332_s15   ;;  %p37_p0 = scmp.ne.s32.totalorder %s2324_s13, %s2320_s12  ;;  %s2332_s15 = sphi %s2366_s15, %s2808_s15   ;;  %s2328_s14 = sphi %s2364_s14, %s2807_s14   ;;  %s2324_s13 = sphi %s2362_s13, %s2806_s13   ;;  %s2320_s12 = sphi %s2360_s12, %s2805_s12  }
   0x5   : > { %p2382_p1 = scmp.eq.s32.totalorder %s1639_s16, 0  ;;  %p1641_p2 = scmp.ge.s32.totalorder %s2332_s15, 1 }
   0x6   : > { %p116_p3 = scmp.lt.s32.totalorder %s2332_s15, 3  ;;  %s127_s21 = sshll.u32 %s2798_s1, 4  ;;  %s128_s21 = int_to_ptr.hbm [resolvable:$true] %s127_s21 }
   0x7   : > { %p2390_p4 = por %p2382_p1, %p37_p0  ;;  %s2334_s23 = smov [#allocation4]  }
   0x8   : > { %p2397_p5 = pnand %p1641_p2, %p116_p3  ;;  %s129_s24 = sshll.u32 %s2334_s23, 4  ;;  %s130_s24 = int_to_ptr.vmem [resolvable:$true] %s129_s24 }
   0x9   : > { %s142_s27 = sshll.u32 %s2799_s2, 4  ;;  %s2335_s28 = smov 384   ;;  %s143_s27 = int_to_ptr.hbm [resolvable:$true] %s142_s27 }
   0xa   : > { %p2150_p6 = pneg %p2397_p5  ;;  %s2336_s29 = smov 24  }
   0xb   : > { %s2337_s30 = smov [#allocation6]   ;;  %s2409_s5 = sadd.s32 1, %s2332_s15  }
   0xc   : > { %p2151_p7 = pnand %p2150_p6, %p2382_p1  ;;  %s144_s4 = sshll.u32 %s2337_s30, 4  ;;  %s145_s4 = int_to_ptr.vmem [resolvable:$true] %s144_s4 }
   0xd   : > { %s24_s6 = sadd.s32 1, %s2328_s14  ;;  %s21_s7 = ssub.s32 %s2332_s15, %s2409_s5 }
   0xe   : > { %2153 = dma.hbm_to_vmem [thread:$0]  (!%p2151_p7), %s128_s21, 12288, %s130_s24, [#allocation5], %s2335_s28, %s2335_s28, %s2336_s29  }
   0xf   : > { %2156 = dma.hbm_to_vmem [thread:$0]  (!%p2151_p7), %s143_s27, 96, %s145_s4, [#allocation5]  }
  0x10   : > { %p31_p8 = scmp.ne.s32.totalorder %s2328_s14, %s2324_s13  ;;  %p22_p9 = scmp.eq.s32.totalorder %s21_s7, 0 }
  0x11   : > { %p32_p10 = scmp.eq.s32.totalorder %s2332_s15, 0  ;;  %p2163_p11 = scmp.lt.s32.totalorder %s2332_s15, 2 }
  0x12   : > { %s155_s8 = sand.u32 1, %s2328_s14   ;;  %s2042_s11 = sshll.u32 %s2332_s15, 8 }
  0x13   : > { %s2420_s9 = scalar_select %p22_p9, %s2328_s14, %s24_s6  }
  0x14   : > { %p33_p12 = por %p32_p10, %p31_p8  ;;  %s1645_s10 = sshll.u32 %s155_s8, 8 }
  0x15   : > { %s165_s20 = scalar_lea.hbm %s2797_s0, %s2042_s11  ;;  %s159_s23 = scalar_lea.vmem [#allocation2], %s1645_s10 }
  0x16   : > { %s166_s21 = sshll.u32 %s165_s20, 4  ;;  %s168_s24 = sshll.u32 %s159_s23, 4  ;;  %s167_s21 = int_to_ptr.hbm [resolvable:$true] %s166_s21  ;;  %s169_s24 = int_to_ptr.vmem [resolvable:$true] %s168_s24 }
  0x17   : > { %p2426_p13 = pnand %p2163_p11, %p33_p12  ;;  %s156_s26 = scalar_lea.sflag [#allocation3], %s155_s8 }
  0x18   : > { %s2264_s27 = sshra.s32 %s167_s21, 4  ;;  %s2271_s4 = scalar_lea.hbm %s2797_s0, 512  ;;  %s2265_s27 = int_to_ptr.hbm [resolvable:$true] %s2264_s27 }
  0x19   : > { %s2266_s28 = scalar_lea.hbm %s2265_s27, 256  ;;  %p2268_p2 = pneg %p2426_p13 }
  0x1a   : > { %p2267_p0 = scmp.ne.s32.totalorder %s2265_s27, %s2266_s28  ;;  %p2272_p7 = scmp.lt.s32.totalorder %s2265_s27, %s2797_s0 }
  0x1b   : > { %p2273_p8 = scmp.lt.s32.totalorder %s2271_s4, %s2266_s28 }
  0x1c   : > { %p2269_p3 = pnand %p2268_p2, %p2267_p0 }
  0x1d   : > { %p2274_p9 = por %p2273_p8, %p2272_p7 }
  0x1e   : > { %p2270_p6 = pneg %p2269_p3 }
  0x20   : > { %p2275_p10 = pnand %p2274_p9, %p2270_p6 }
  0x22   : > { %2278 = shalt.err (!%p2275_p10)
}
  0x23   : > { %s2338_s8 = smov 256   ;;  %s2339_s10 = smov 16  }
  0x24   : > { %2160 = dma.hbm_to_vmem [thread:$0]  (!%p2426_p13), %s167_s21, 4096, %s169_s24, %s156_s26, %s2338_s8, %s2338_s8, %s2339_s10  }
  0x25   : > { %180 = sbr.rel (%p2397_p5) target bundleno = 596 (0x254), region = 32  ;;  %s182_s11 = sand.u32 (!%p2397_p5), 1, %s2324_s13  }
  0x26   : > { %s1650_s12 = sshll.u32 (!%p2397_p5), %s182_s11, 8  ;;  %s183_s19 = scalar_lea.sflag (!%p2397_p5), [#allocation3], %s182_s11 }
  0x27   : > { %s2443_s20 = scalar_lea.vmem (!%p2397_p5), [#allocation2], %s1650_s12 }
  0x2a   : > { %2311 = dma.done.wait (%p2390_p4), %s183_s19, 4096  }
  0x2b   : > { %2313 = vsyncadd (%p2390_p4), %s183_s19, 4294963200 }
  0x2c   : > { %2315 = dma.done.wait (%p2382_p1), [#allocation5], 12384  }
  0x2d   : > { %2317 = vsyncadd (%p2382_p1), [#allocation5], 4294954912  ;;  %v1825_v0 = vld [vmem:[#allocation4 + $0x150] sm:$0xf]  ;;  %v2088_v1 = vld [vmem:[#allocation4 + $0x164] sm:$0xf0] }
  0x2e   : > { %v2017_v2 = vld [vmem:[#allocation4 + $0x2d0] sm:$0xf]  ;;  %v1826_v3 = vor.u32 %v2088_v1, %v1825_v0  ;;  %v2136_v4 = vld [vmem:[#allocation4 + $0x2e4] sm:$0xf0]  ;;  %v2085_v5 = vld [vmem:[#allocation4 + $0x154] sm:$0xf] }
  0x2f   : > { %v1827_v6 = vld [vmem:[#allocation4 + $0x168] sm:$0xf0]  ;;  %v2018_v7 = vor.u32 %v2136_v4, %v2017_v2  ;;  %v2133_v9 = vld [vmem:[#allocation4 + $0x2d4] sm:$0xf]  ;;  %v1801_v11 = vld [vmem:[#allocation4 + $0x120] sm:$0xf] }
  0x30   : > { %v1830_v8 = vor.u32 %v2085_v5, %v1827_v6  ;;  %v2019_v10 = vld [vmem:[#allocation4 + $0x2e8] sm:$0xf0]  ;;  %867 = vmatpush.bf16.msra.mxu0 %v1826_v3  ;;  %v2082_v13 = vld [vmem:[#allocation4 + $0x134] sm:$0xf0]  ;;  %v1993_v14 = vld [vmem:[#allocation4 + $0x2a0] sm:$0xf] }
  0x31   : > { %v2022_v12 = vor.u32 %v2133_v9, %v2019_v10  ;;  %v2130_v15 = vld [vmem:[#allocation4 + $0x2b4] sm:$0xf0]  ;;  %916 = vmatpush.bf16.msra.mxu1 %v2018_v7  ;;  %v1802_v16 = vor.u32 %v2082_v13, %v1801_v11  ;;  %v2079_v18 = vld [vmem:[#allocation4 + $0x124] sm:$0xf]  ;;  %v1803_v19 = vld [vmem:[#allocation4 + $0x138] sm:$0xf0] }
  0x32   : > { %965 = vmatpush.bf16.msra.mxu2 %v1830_v8  ;;  %v1994_v17 = vor.u32 %v2130_v15, %v1993_v14  ;;  %v2127_v20 = vld [vmem:[#allocation4 + $0x2a4] sm:$0xf]  ;;  %v1806_v21 = vor.u32 %v2079_v18, %v1803_v19  ;;  %v1995_v22 = vld [vmem:[#allocation4 + $0x2b8] sm:$0xf0]  ;;  %v1777_v23 = vld [vmem:[#allocation4 + $0xf0] sm:$0xf] }
  0x33   : > { %1014 = vmatpush.bf16.msra.mxu3 %v2022_v12  ;;  %v2076_v24 = vld [vmem:[#allocation4 + $0x104] sm:$0xf0]  ;;  %v1998_v25 = vor.u32 %v2127_v20, %v1995_v22  ;;  %v1969_v26 = vld [vmem:[#allocation4 + $0x270] sm:$0xf]  ;;  %v2073_v28 = vld [vmem:[#allocation4 + $0xf4] sm:$0xf] }
  0x34   : > { %v2124_v27 = vld [vmem:[#allocation4 + $0x284] sm:$0xf0]  ;;  %868 = vmatpush.bf16.msra.mxu0 %v1802_v16  ;;  %v1778_v29 = vor.u32 %v2076_v24, %v1777_v23  ;;  %v1779_v30 = vld [vmem:[#allocation4 + $0x108] sm:$0xf0]  ;;  %v2121_v31 = vld [vmem:[#allocation4 + $0x274] sm:$0xf] }
  0x35   : > { %v1971_v32 = vld [vmem:[#allocation4 + $0x288] sm:$0xf0]  ;;  %917 = vmatpush.bf16.msra.mxu1 %v1994_v17  ;;  %v1970_v33 = vor.u32 %v2124_v27, %v1969_v26  ;;  %v1782_v34 = vor.u32 %v2073_v28, %v1779_v30  ;;  %v1753_v35 = vld [vmem:[#allocation4 + $0xc0] sm:$0xf]  ;;  %v2070_v36 = vld [vmem:[#allocation4 + $0xd4] sm:$0xf0] }
  0x36   : > { %966 = vmatpush.bf16.msra.mxu2 %v1806_v21  ;;  %v1945_v37 = vld [vmem:[#allocation4 + $0x240] sm:$0xf]  ;;  %v1974_v38 = vor.u32 %v2121_v31, %v1971_v32  ;;  %v2118_v39 = vld [vmem:[#allocation4 + $0x254] sm:$0xf0]  ;;  %v2067_v40 = vld [vmem:[#allocation4 + $0xc4] sm:$0xf]  ;;  %v1754_v44 = vor.u32 %v2070_v36, %v1753_v35 }
  0x37   : > { %1015 = vmatpush.bf16.msra.mxu3 %v1998_v25  ;;  %v1755_v41 = vld [vmem:[#allocation4 + $0xd8] sm:$0xf0]  ;;  %v2115_v42 = vld [vmem:[#allocation4 + $0x244] sm:$0xf]  ;;  %v1946_v45 = vor.u32 %v2118_v39, %v1945_v37  ;;  %v1729_v47 = vld [vmem:[#allocation4 + $0x90] sm:$0xf] }
  0x38   : > { %v1947_v43 = vld [vmem:[#allocation4 + $0x258] sm:$0xf0]  ;;  %869 = vmatpush.bf16.msra.mxu0 %v1778_v29  ;;  %v1758_v46 = vor.u32 %v2067_v40, %v1755_v41  ;;  %v2064_v48 = vld [vmem:[#allocation4 + $0xa4] sm:$0xf0]  ;;  %v1921_v49 = vld [vmem:[#allocation4 + $0x210] sm:$0xf] }
  0x39   : > { %918 = vmatpush.bf16.msra.mxu1 %v1970_v33  ;;  %v1950_v50 = vor.u32 %v2115_v42, %v1947_v43  ;;  %v2112_v51 = vld [vmem:[#allocation4 + $0x224] sm:$0xf0]  ;;  %v2061_v52 = vld [vmem:[#allocation4 + $0x94] sm:$0xf]  ;;  %v1731_v53 = vld [vmem:[#allocation4 + $0xa8] sm:$0xf0]  ;;  %v1730_v56 = vor.u32 %v2064_v48, %v1729_v47 }
  0x3a   : > { %967 = vmatpush.bf16.msra.mxu2 %v1782_v34  ;;  %v2109_v54 = vld [vmem:[#allocation4 + $0x214] sm:$0xf]  ;;  %v1923_v55 = vld [vmem:[#allocation4 + $0x228] sm:$0xf0]  ;;  %v1922_v57 = vor.u32 %v2112_v51, %v1921_v49  ;;  %v1734_v58 = vor.u32 %v2061_v52, %v1731_v53  ;;  %v1705_v59 = vld [vmem:[#allocation4 + $0x60] sm:$0xf] }
  0x3b   : > { %1016 = vmatpush.bf16.msra.mxu3 %v1974_v38  ;;  %v2058_v60 = vld [vmem:[#allocation4 + $0x74] sm:$0xf0]  ;;  %v1897_v61 = vld [vmem:[#allocation4 + $0x1e0] sm:$0xf]  ;;  %v1926_v62 = vor.u32 %v2109_v54, %v1923_v55  ;;  %v2055_v0 = vld [vmem:[#allocation4 + $0x64] sm:$0xf] }
  0x3c   : > { %870 = vmatpush.bf16.msra.mxu0 %v1754_v44  ;;  %v2106_v63 = vld [vmem:[#allocation4 + $0x1f4] sm:$0xf0]  ;;  %v1707_v1 = vld [vmem:[#allocation4 + $0x78] sm:$0xf0]  ;;  %v2103_v2 = vld [vmem:[#allocation4 + $0x1e4] sm:$0xf]  ;;  %v1706_v4 = vor.u32 %v2058_v60, %v1705_v59 }
  0x3d   : > { %919 = vmatpush.bf16.msra.mxu1 %v1946_v45  ;;  %v1899_v3 = vld [vmem:[#allocation4 + $0x1f8] sm:$0xf0]  ;;  %v1898_v5 = vor.u32 %v2106_v63, %v1897_v61  ;;  %v1710_v6 = vor.u32 %v2055_v0, %v1707_v1  ;;  %v1681_v7 = vld [vmem:[#allocation4 + $0x30] sm:$0xf]  ;;  %v2052_v8 = vld [vmem:[#allocation4 + $0x44] sm:$0xf0] }
  0x3e   : > { %968 = vmatpush.bf16.msra.mxu2 %v1758_v46  ;;  %v1873_v9 = vld [vmem:[#allocation4 + $0x1b0] sm:$0xf]  ;;  %v1902_v10 = vor.u32 %v2103_v2, %v1899_v3  ;;  %v2100_v11 = vld [vmem:[#allocation4 + $0x1c4] sm:$0xf0]  ;;  %v2049_v12 = vld [vmem:[#allocation4 + $0x34] sm:$0xf]  ;;  %v1682_v16 = vor.u32 %v2052_v8, %v1681_v7 }
  0x3f   : > { %1017 = vmatpush.bf16.msra.mxu3 %v1950_v50  ;;  %v1683_v13 = vld [vmem:[#allocation4 + $0x48] sm:$0xf0]  ;;  %v2097_v14 = vld [vmem:[#allocation4 + $0x1b4] sm:$0xf]  ;;  %v1657_v17 = vld [vmem:[#allocation4] sm:$0xf]  ;;  %v1874_v19 = vor.u32 %v2100_v11, %v1873_v9 }
  0x40   : > { %871 = vmatpush.bf16.msra.mxu0 %v1730_v56  ;;  %v1875_v15 = vld [vmem:[#allocation4 + $0x1c8] sm:$0xf0]  ;;  %v2046_v18 = vld [vmem:[#allocation4 + $0x14] sm:$0xf0]  ;;  %v1686_v20 = vor.u32 %v2049_v12, %v1683_v13  ;;  %v1849_v21 = vld [vmem:[#allocation4 + $0x180] sm:$0xf] }
  0x41   : > { %920 = vmatpush.bf16.msra.mxu1 %v1922_v57  ;;  %v2094_v22 = vld [vmem:[#allocation4 + $0x194] sm:$0xf0]  ;;  %v2043_v23 = vld [vmem:[#allocation4 + $0x4] sm:$0xf]  ;;  %v1878_v24 = vor.u32 %v2097_v14, %v1875_v15  ;;  %v1659_v25 = vld [vmem:[#allocation4 + $0x18] sm:$0xf0]  ;;  %v1658_v31 = vor.u32 %v2046_v18, %v1657_v17 }
  0x42   : > { %969 = vmatpush.bf16.msra.mxu2 %v1734_v58  ;;  %v2091_v26 = vld [vmem:[#allocation4 + $0x184] sm:$0xf]  ;;  %v1851_v27 = vld [vmem:[#allocation4 + $0x198] sm:$0xf0]  ;;  %v1835_v30 = vld [vmem:[#allocation4 + $0x170] sm:$0xf0]  ;;  %v1850_v35 = vor.u32 %v2094_v22, %v1849_v21  ;;  %v1662_v36 = vor.u32 %v2043_v23, %v1659_v25 }
  0x43   : > { %1018 = vmatpush.bf16.msra.mxu3 %v1926_v62  ;;  %v229_v28 = vld [vmem:[%s2443_s20] sm:$0xff]  ;;  %v2086_v29 = vld [vmem:[#allocation4 + $0x15c] sm:$0xf]  ;;  %v231_v32 = vld [vmem:[%s2443_s20 + $0x10] sm:$0xff]  ;;  %v1854_v39 = vor.u32 %v2091_v26, %v1851_v27  ;;  %s1653_s17 = sshll.u32 %s1639_s16, 4 }
  0x44   : > { %872 = vmatpush.bf16.msra.mxu0 %v1706_v4  ;;  %v2134_v33 = vld [vmem:[#allocation4 + $0x2dc] sm:$0xf]  ;;  %v2027_v34 = vld [vmem:[#allocation4 + $0x2f0] sm:$0xf0]  ;;  %v230_v37 = vld [vmem:[%s2443_s20 + $0x8] sm:$0xff]  ;;  %v1838_v40 = vor.u32 %v2086_v29, %v1835_v30  ;;  %v2457_v44 = vpack.c.bf16 %v231_v32, %v229_v28  ;;  %p223_p1 = scmp.lt.s32.totalorder %s1653_s17, 31 }
  0x45   : > { %921 = vmatpush.bf16.msra.mxu1 %v1898_v5  ;;  %v232_v38 = vld [vmem:[%s2443_s20 + $0x18] sm:$0xff]  ;;  %v2089_v42 = vld [vmem:[#allocation4 + $0x16c] sm:$0xf0]  ;;  %v2030_v45 = vor.u32 %v2134_v33, %v2027_v34  ;;  %v2080_v47 = vld [vmem:[#allocation4 + $0x12c] sm:$0xf] }
  0x46   : > { %970 = vmatpush.bf16.msra.mxu2 %v1710_v6  ;;  %v1833_v41 = vld [vmem:[#allocation4 + $0x158] sm:$0xf]  ;;  %v2137_v46 = vld [vmem:[#allocation4 + $0x2ec] sm:$0xf0]  ;;  %v1811_v48 = vld [vmem:[#allocation4 + $0x140] sm:$0xf0]  ;;  %v2459_v49 = vpack.c.bf16 %v232_v38, %v230_v37 }
  0x47   : > { %1019 = vmatpush.bf16.msra.mxu3 %v1902_v10  ;;  %v2025_v43 = vld [vmem:[#allocation4 + $0x2d8] sm:$0xf]  ;;  %v2128_v50 = vld [vmem:[#allocation4 + $0x2ac] sm:$0xf]  ;;  %v2003_v51 = vld [vmem:[#allocation4 + $0x2c0] sm:$0xf0]  ;;  %v1834_v52 = vor.u32 %v2089_v42, %v1833_v41  ;;  %v1814_v54 = vor.u32 %v2080_v47, %v1811_v48 }
  0x48   : > { %873 = vmatpush.bf16.msra.mxu0 %v1682_v16  ;;  %v2026_v53 = vor.u32 %v2137_v46, %v2025_v43  ;;  %v1809_v55 = vld [vmem:[#allocation4 + $0x128] sm:$0xf]  ;;  %v2083_v56 = vld [vmem:[#allocation4 + $0x13c] sm:$0xf0]  ;;  %v2006_v57 = vor.u32 %v2128_v50, %v2003_v51  ;;  %v2074_v61 = vld [vmem:[#allocation4 + $0xfc] sm:$0xf] }
  0x49   : > { %922 = vmatpush.bf16.msra.mxu1 %v1874_v19  ;;  %v2001_v58 = vld [vmem:[#allocation4 + $0x2a8] sm:$0xf]  ;;  %v2131_v59 = vld [vmem:[#allocation4 + $0x2bc] sm:$0xf0]  ;;  %v1810_v60 = vor.u32 %v2083_v56, %v1809_v55  ;;  %v1787_v62 = vld [vmem:[#allocation4 + $0x110] sm:$0xf0] }
  0x4a   : > { %971 = vmatpush.bf16.msra.mxu2 %v1686_v20  ;;  %v2122_v63 = vld [vmem:[#allocation4 + $0x27c] sm:$0xf]  ;;  %v2002_v0 = vor.u32 %v2131_v59, %v2001_v58  ;;  %v1790_v1 = vor.u32 %v2074_v61, %v1787_v62  ;;  %v1979_v2 = vld [vmem:[#allocation4 + $0x290] sm:$0xf0]  ;;  %v1785_v3 = vld [vmem:[#allocation4 + $0xf8] sm:$0xf] }
  0x4b   : > { %1020 = vmatpush.bf16.msra.mxu3 %v1878_v24  ;;  %v2077_v4 = vld [vmem:[#allocation4 + $0x10c] sm:$0xf0]  ;;  %v1982_v5 = vor.u32 %v2122_v63, %v1979_v2  ;;  %v1977_v6 = vld [vmem:[#allocation4 + $0x278] sm:$0xf]  ;;  %v233_v10 = vld [vmem:[%s2443_s20 + $0x20] sm:$0xff]  ;;  %s2810_s17 = smov (!%p223_p1, %s1653_s17), 31 }
  0x4c   : > { %874 = vmatpush.bf16.msra.mxu0 %v1658_v31  ;;  %v2125_v7 = vld [vmem:[#allocation4 + $0x28c] sm:$0xf0]  ;;  %v1786_v8 = vor.u32 %v2077_v4, %v1785_v3  ;;  %v234_v12 = vld [vmem:[%s2443_s20 + $0x28] sm:$0xff]  ;;  %v236_v13 = vld [vmem:[%s2443_s20 + $0x38] sm:$0xff]  ;;  %s2139_s15 = smul.u32 24, %s2810_s17 }
  0x4d   : > { %923 = vmatpush.bf16.msra.mxu1 %v1850_v35  ;;  %v1978_v9 = vor.u32 %v2125_v7, %v1977_v6  ;;  %v235_v11 = vld [vmem:[%s2443_s20 + $0x30] sm:$0xff]  ;;  %v2471_v15 = vpack.c.bf16 %v236_v13, %v234_v12  ;;  %v2068_v16 = vld [vmem:[#allocation4 + $0xcc] sm:$0xf]  ;;  %v1763_v17 = vld [vmem:[#allocation4 + $0xe0] sm:$0xf0] }
  0x4e   : > { %972 = vmatpush.bf16.msra.mxu2 %v1662_v36  ;;  %v2469_v14 = vpack.c.bf16 %v235_v11, %v233_v10  ;;  %v2116_v18 = vld [vmem:[#allocation4 + $0x24c] sm:$0xf]  ;;  %v1766_v19 = vor.u32 %v2068_v16, %v1763_v17  ;;  %v1955_v20 = vld [vmem:[#allocation4 + $0x260] sm:$0xf0]  ;;  %v1761_v21 = vld [vmem:[#allocation4 + $0xc8] sm:$0xf]  ;;  %s2568_s22 = scalar_lea.vmem %s2800_s3, %s2139_s15 }
  0x4f   : > { %1021 = vmatpush.bf16.msra.mxu3 %v1854_v39  ;;  %875 = vmatmul.bf16.vlgmr.msra.gmra.mxu0 %v2457_v44  ;;  %v2071_v22 = vld [vmem:[#allocation4 + $0xdc] sm:$0xf0]  ;;  %v1958_v23 = vor.u32 %v2116_v18, %v1955_v20  ;;  %v1953_v25 = vld [vmem:[#allocation4 + $0x248] sm:$0xf]  ;;  %v239_v29 = vld [vmem:[%s2443_s20 + $0x50] sm:$0xff] }
  0x50   : > { %924 = vmatmul.bf16.vlgmr.msra.gmra.mxu1 %v2459_v49  ;;  %1063 = vmatpush.bf16.msrb.mxu0 %v1834_v52  ;;  %v1762_v24 = vor.u32 %v2071_v22, %v1761_v21  ;;  %v2119_v26 = vld [vmem:[#allocation4 + $0x25c] sm:$0xf0]  ;;  %v238_v30 = vld [vmem:[%s2443_s20 + $0x48] sm:$0xff]  ;;  %v240_v31 = vld [vmem:[%s2443_s20 + $0x58] sm:$0xff] }
  0x51   : > { %973 = vmatmul.bf16.vlgmr.msra.gmra.mxu2 %v2457_v44  ;;  %1112 = vmatpush.bf16.msrb.mxu1 %v2026_v53  ;;  %v1954_v27 = vor.u32 %v2119_v26, %v1953_v25  ;;  %v237_v28 = vld [vmem:[%s2443_s20 + $0x40] sm:$0xff]  ;;  %v2483_v33 = vpack.c.bf16 %v240_v31, %v238_v30  ;;  %v2062_v34 = vld [vmem:[#allocation4 + $0x9c] sm:$0xf]  ;;  %v1739_v35 = vld [vmem:[#allocation4 + $0xb0] sm:$0xf0] }
  0x52   : > { %1161 = vmatpush.bf16.msrb.mxu2 %v1838_v40  ;;  %1022 = vmatmul.bf16.vlgmr.msra.gmra.mxu3 %v2459_v49  ;;  %v2481_v32 = vpack.c.bf16 %v239_v29, %v237_v28  ;;  %v2110_v36 = vld [vmem:[#allocation4 + $0x21c] sm:$0xf]  ;;  %v1742_v37 = vor.u32 %v2062_v34, %v1739_v35  ;;  %v1931_v38 = vld [vmem:[#allocation4 + $0x230] sm:$0xf0]  ;;  %v1737_v39 = vld [vmem:[#allocation4 + $0x98] sm:$0xf] }
  0x53   : > { %1210 = vmatpush.bf16.msrb.mxu3 %v2030_v45  ;;  %v2065_v40 = vld [vmem:[#allocation4 + $0xac] sm:$0xf0]  ;;  %v1934_v41 = vor.u32 %v2110_v36, %v1931_v38  ;;  %v1929_v43 = vld [vmem:[#allocation4 + $0x218] sm:$0xf]  ;;  %v241_v47 = vld [vmem:[%s2443_s20 + $0x60] sm:$0xff] }
  0x54   : > { %1064 = vmatpush.bf16.msrb.mxu0 %v1810_v60  ;;  %v1738_v42 = vor.u32 %v2065_v40, %v1737_v39  ;;  %v2113_v45 = vld [vmem:[#allocation4 + $0x22c] sm:$0xf0]  ;;  %v242_v50 = vld [vmem:[%s2443_s20 + $0x68] sm:$0xff]  ;;  %v244_v51 = vld [vmem:[%s2443_s20 + $0x78] sm:$0xff] }
  0x55   : > { %1113 = vmatpush.bf16.msrb.mxu1 %v2002_v0  ;;  %v1930_v46 = vor.u32 %v2113_v45, %v1929_v43  ;;  %v243_v48 = vld [vmem:[%s2443_s20 + $0x70] sm:$0xff]  ;;  %v2495_v53 = vpack.c.bf16 %v244_v51, %v242_v50  ;;  %v1715_v55 = vld [vmem:[#allocation4 + $0x80] sm:$0xf0]  ;;  %v2104_v56 = vld [vmem:[#allocation4 + $0x1ec] sm:$0xf] }
  0x56   : > { %1162 = vmatpush.bf16.msrb.mxu2 %v1814_v54  ;;  %v2493_v52 = vpack.c.bf16 %v243_v48, %v241_v47  ;;  %v2056_v54 = vld [vmem:[#allocation4 + $0x6c] sm:$0xf]  ;;  %v1907_v58 = vld [vmem:[#allocation4 + $0x200] sm:$0xf0]  ;;  %v1713_v59 = vld [vmem:[#allocation4 + $0x68] sm:$0xf] }
  0x57   : > { %1211 = vmatpush.bf16.msrb.mxu3 %v2006_v57  ;;  %v1718_v57 = vor.u32 %v2056_v54, %v1715_v55  ;;  %v2059_v60 = vld [vmem:[#allocation4 + $0x7c] sm:$0xf0]  ;;  %v1910_v61 = vor.u32 %v2104_v56, %v1907_v58  ;;  %v1905_v63 = vld [vmem:[#allocation4 + $0x1e8] sm:$0xf]  ;;  %v247_v3 = vld [vmem:[%s2443_s20 + $0x90] sm:$0xff] }
  0x58   : > { %1065 = vmatpush.bf16.msrb.mxu0 %v1786_v8  ;;  %v1714_v62 = vor.u32 %v2059_v60, %v1713_v59  ;;  %v2107_v0 = vld [vmem:[#allocation4 + $0x1fc] sm:$0xf0]  ;;  %v246_v4 = vld [vmem:[%s2443_s20 + $0x88] sm:$0xff]  ;;  %v2050_v8 = vld [vmem:[#allocation4 + $0x3c] sm:$0xf] }
  0x59   : > { %1114 = vmatpush.bf16.msrb.mxu1 %v1978_v9  ;;  %v245_v2 = vld [vmem:[%s2443_s20 + $0x80] sm:$0xff]  ;;  %v1691_v9 = vld [vmem:[#allocation4 + $0x50] sm:$0xf0]  ;;  %v2098_v10 = vld [vmem:[#allocation4 + $0x1bc] sm:$0xf] }
  0x5a   : > { %1163 = vmatpush.bf16.msrb.mxu2 %v1790_v1  ;;  %v1906_v1 = vor.u32 %v2107_v0, %v1905_v63  ;;  %v2505_v6 = vpack.c.bf16 %v247_v3, %v245_v2  ;;  %v1694_v11 = vor.u32 %v2050_v8, %v1691_v9  ;;  %v1883_v12 = vld [vmem:[#allocation4 + $0x1d0] sm:$0xf0]  ;;  %v1689_v13 = vld [vmem:[#allocation4 + $0x38] sm:$0xf]  ;;  %v2053_v16 = vld [vmem:[#allocation4 + $0x4c] sm:$0xf0] }
  0x5b   : > { %1212 = vmatpush.bf16.msrb.mxu3 %v1982_v5  ;;  %v248_v5 = vld [vmem:[%s2443_s20 + $0x98] sm:$0xff]  ;;  %v1886_v17 = vor.u32 %v2098_v10, %v1883_v12  ;;  %v1690_v18 = vor.u32 %v2053_v16, %v1689_v13  ;;  %v2101_v20 = vld [vmem:[#allocation4 + $0x1cc] sm:$0xf0]  ;;  %v249_v22 = vld [vmem:[%s2443_s20 + $0xa0] sm:$0xff] }
  0x5c   : > { %1066 = vmatpush.bf16.msrb.mxu0 %v1762_v24  ;;  %v2507_v7 = vpack.c.bf16 %v248_v5, %v246_v4  ;;  %v250_v24 = vld [vmem:[%s2443_s20 + $0xa8] sm:$0xff]  ;;  %v252_v25 = vld [vmem:[%s2443_s20 + $0xb8] sm:$0xff]  ;;  %v1667_v29 = vld [vmem:[#allocation4 + $0x20] sm:$0xf0] }
  0x5d   : > { %1115 = vmatpush.bf16.msrb.mxu1 %v1954_v27  ;;  %v2519_v27 = vpack.c.bf16 %v252_v25, %v250_v24  ;;  %v2044_v28 = vld [vmem:[#allocation4 + $0xc] sm:$0xf]  ;;  %v1859_v34 = vld [vmem:[#allocation4 + $0x1a0] sm:$0xf0]  ;;  %v1665_v35 = vld [vmem:[#allocation4 + $0x8] sm:$0xf] }
  0x5e   : > { %1164 = vmatpush.bf16.msrb.mxu2 %v1766_v19  ;;  %v1881_v19 = vld [vmem:[#allocation4 + $0x1b8] sm:$0xf]  ;;  %v2092_v30 = vld [vmem:[#allocation4 + $0x18c] sm:$0xf]  ;;  %v1670_v31 = vor.u32 %v2044_v28, %v1667_v29  ;;  %v2047_v36 = vld [vmem:[#allocation4 + $0x1c] sm:$0xf0] }
  0x5f   : > { %880 = vmatmul.bf16.gmra.mxu0 %v2469_v14  ;;  %1213 = vmatpush.bf16.msrb.mxu3 %v1958_v23  ;;  %v1882_v21 = vor.u32 %v2101_v20, %v1881_v19  ;;  %v251_v23 = vld [vmem:[%s2443_s20 + $0xb0] sm:$0xff]  ;;  %v1666_v38 = vor.u32 %v2047_v36, %v1665_v35  ;;  %v1857_v39 = vld [vmem:[#allocation4 + $0x188] sm:$0xf]  ;;  %v2095_v40 = vld [vmem:[#allocation4 + $0x19c] sm:$0xf0] }
  0x60   : > { %929 = vmatmul.bf16.gmra.mxu1 %v2471_v15  ;;  %1067 = vmatpush.bf16.msrb.mxu0 %v1738_v42  ;;  %v2517_v26 = vpack.c.bf16 %v251_v23, %v249_v22  ;;  %v253_v42 = vld [vmem:[%s2443_s20 + $0xc0] sm:$0xff]  ;;  %v255_v43 = vld [vmem:[%s2443_s20 + $0xd0] sm:$0xff]  ;;  %v254_v45 = vld [vmem:[%s2443_s20 + $0xc8] sm:$0xff] }
  0x61   : > { %978 = vmatmul.bf16.gmra.mxu2 %v2469_v14  ;;  %1116 = vmatpush.bf16.msrb.mxu1 %v1930_v46  ;;  %v256_v46 = vld [vmem:[%s2443_s20 + $0xd8] sm:$0xff]  ;;  %v2529_v47 = vpack.c.bf16 %v255_v43, %v253_v42  ;;  %v2087_v50 = vld [vmem:[#allocation4 + $0x164] sm:$0xf]  ;;  %v259_v59 = vld [vmem:[%s2443_s20 + $0xf0] sm:$0xff] }
  0x62   : > { %1027 = vmatmul.bf16.gmra.mxu3 %v2471_v15  ;;  %1165 = vmatpush.bf16.msrb.mxu2 %v1742_v37  ;;  %v1862_v37 = vor.u32 %v2092_v30, %v1859_v34  ;;  %v2531_v48 = vpack.c.bf16 %v256_v46, %v254_v45  ;;  %v1843_v51 = vld [vmem:[#allocation4 + $0x178] sm:$0xf0]  ;;  %v2135_v54 = vld [vmem:[#allocation4 + $0x2e4] sm:$0xf]  ;;  %v258_v60 = vld [vmem:[%s2443_s20 + $0xe8] sm:$0xff] }
  0x63   : > { %1214 = vmatpush.bf16.msrb.mxu3 %v1934_v41  ;;  %v1858_v41 = vor.u32 %v2095_v40, %v1857_v39  ;;  %v1846_v55 = vor.u32 %v2087_v50, %v1843_v51  ;;  %v2035_v56 = vld [vmem:[#allocation4 + $0x2f8] sm:$0xf0]  ;;  %v257_v58 = vld [vmem:[%s2443_s20 + $0xe0] sm:$0xff]  ;;  %v2090_v63 = vld [vmem:[#allocation4 + $0x174] sm:$0xf0] }
  0x64   : > { %1068 = vmatpush.bf16.msrb.mxu0 %v1714_v62  ;;  %v1841_v62 = vld [vmem:[#allocation4 + $0x160] sm:$0xf]  ;;  %v2138_v3 = vld [vmem:[#allocation4 + $0x2f4] sm:$0xf0]  ;;  %v2081_v8 = vld [vmem:[#allocation4 + $0x134] sm:$0xf] }
  0x65   : > { %1117 = vmatpush.bf16.msrb.mxu1 %v1906_v1  ;;  %v2033_v0 = vld [vmem:[#allocation4 + $0x2e0] sm:$0xf]  ;;  %v2541_v1 = vpack.c.bf16 %v259_v59, %v257_v58  ;;  %v1842_v2 = vor.u32 %v2090_v63, %v1841_v62  ;;  %v1819_v9 = vld [vmem:[#allocation4 + $0x148] sm:$0xf0]  ;;  %v2129_v10 = vld [vmem:[#allocation4 + $0x2b4] sm:$0xf] }
  0x66   : > { %1166 = vmatpush.bf16.msrb.mxu2 %v1718_v57  ;;  %v2038_v57 = vor.u32 %v2135_v54, %v2035_v56  ;;  %v2034_v5 = vor.u32 %v2138_v3, %v2033_v0  ;;  %v2011_v12 = vld [vmem:[#allocation4 + $0x2c8] sm:$0xf0]  ;;  %v2551_v16 = vld [vmem:[#allocation6] sm:$0x3f]  ;;  %v2009_v19 = vld [vmem:[#allocation4 + $0x2b0] sm:$0xf] }
  0x67   : > { %1215 = vmatpush.bf16.msrb.mxu3 %v1910_v61  ;;  %v260_v61 = vld [vmem:[%s2443_s20 + $0xf8] sm:$0xff]  ;;  %v2014_v13 = vor.u32 %v2129_v10, %v2011_v12  ;;  %v2554_v22 = vperm.slane %v2551_v16, 0  ;;  %v2561_v29 = vperm.slane %v2551_v16, 1  ;;  %v2075_v30 = vld [vmem:[#allocation4 + $0x104] sm:$0xf] }
  0x68   : > { %1069 = vmatpush.bf16.msrb.mxu0 %v1690_v18  ;;  %v2543_v4 = vpack.c.bf16 %v260_v61, %v258_v60  ;;  %v2084_v18 = vld [vmem:[#allocation4 + $0x144] sm:$0xf0]  ;;  %v2123_v34 = vld [vmem:[#allocation4 + $0x284] sm:$0xf]  ;;  %v1793_v51 = vld [vmem:[#allocation4 + $0x100] sm:$0xf] }
  0x69   : > { %1118 = vmatpush.bf16.msrb.mxu1 %v1882_v21  ;;  %v2132_v21 = vld [vmem:[#allocation4 + $0x2c4] sm:$0xf0]  ;;  %v2078_v54 = vld [vmem:[#allocation4 + $0x114] sm:$0xf0]  ;;  %v2117_v12 = vld [vmem:[#allocation4 + $0x254] sm:$0xf] }
  0x6a   : > { %1167 = vmatpush.bf16.msrb.mxu2 %v1694_v11  ;;  %v1822_v11 = vor.u32 %v2081_v8, %v1819_v9  ;;  %v2010_v24 = vor.u32 %v2132_v21, %v2009_v19  ;;  %v2126_v58 = vld [vmem:[#allocation4 + $0x294] sm:$0xf0]  ;;  %v2069_v8 = vld [vmem:[#allocation4 + $0xd4] sm:$0xf]  ;;  %v1771_v9 = vld [vmem:[#allocation4 + $0xe8] sm:$0xf0] }
  0x6b   : > { %1216 = vmatpush.bf16.msrb.mxu3 %v1886_v17  ;;  %v1817_v17 = vld [vmem:[#allocation4 + $0x130] sm:$0xf] }
  0x6c   : > { %1070 = vmatpush.bf16.msrb.mxu0 %v1666_v38  ;;  %v1818_v20 = vor.u32 %v2084_v18, %v1817_v17 }
  0x6d   : > { %1119 = vmatpush.bf16.msrb.mxu1 %v1858_v41 }
  0x6e   : > { %1168 = vmatpush.bf16.msrb.mxu2 %v1670_v31  ;;  %v1795_v31 = vld [vmem:[#allocation4 + $0x118] sm:$0xf0] }
  0x6f   : > { %885 = vmatmul.bf16.gmra.mxu0 %v2481_v32  ;;  %1217 = vmatpush.bf16.msrb.mxu3 %v1862_v37  ;;  %v1798_v36 = vor.u32 %v2075_v30, %v1795_v31  ;;  %v1987_v37 = vld [vmem:[#allocation4 + $0x298] sm:$0xf0]  ;;  %v1769_v30 = vld [vmem:[#allocation4 + $0xd0] sm:$0xf]  ;;  %v2072_v31 = vld [vmem:[#allocation4 + $0xe4] sm:$0xf0] }
  0x70   : > { %934 = vmatmul.bf16.gmra.mxu1 %v2483_v33  ;;  %1259 = vmatpush.bf16.msra.mxu0 %v1842_v2  ;;  %v1990_v42 = vor.u32 %v2123_v34, %v1987_v37  ;;  %v2120_v37 = vld [vmem:[#allocation4 + $0x264] sm:$0xf0] }
  0x71   : > { %983 = vmatmul.bf16.gmra.mxu2 %v2481_v32  ;;  %1308 = vmatpush.bf16.msra.mxu1 %v2034_v5 }
  0x72   : > { %1032 = vmatmul.bf16.gmra.mxu3 %v2483_v33  ;;  %1357 = vmatpush.bf16.msra.mxu2 %v1846_v55  ;;  %v1985_v55 = vld [vmem:[#allocation4 + $0x280] sm:$0xf] }
  0x73   : > { %1406 = vmatpush.bf16.msra.mxu3 %v2038_v57  ;;  %v1794_v57 = vor.u32 %v2078_v54, %v1793_v51  ;;  %v1986_v62 = vor.u32 %v2126_v58, %v1985_v55  ;;  %v2063_v51 = vld [vmem:[#allocation4 + $0xa4] sm:$0xf]  ;;  %v1747_v54 = vld [vmem:[#allocation4 + $0xb8] sm:$0xf0] }
  0x74   : > { %1260 = vmatpush.bf16.msra.mxu0 %v1818_v20  ;;  %v1939_v58 = vld [vmem:[#allocation4 + $0x238] sm:$0xf0] }
  0x75   : > { %1309 = vmatpush.bf16.msra.mxu1 %v2010_v24 }
  0x76   : > { %1358 = vmatpush.bf16.msra.mxu2 %v1822_v11  ;;  %v1774_v11 = vor.u32 %v2069_v8, %v1771_v9  ;;  %v1745_v8 = vld [vmem:[#allocation4 + $0xa0] sm:$0xf]  ;;  %v2066_v9 = vld [vmem:[#allocation4 + $0xb4] sm:$0xf0] }
  0x77   : > { %1407 = vmatpush.bf16.msra.mxu3 %v2014_v13  ;;  %v1963_v13 = vld [vmem:[#allocation4 + $0x268] sm:$0xf0] }
  0x78   : > { %1261 = vmatpush.bf16.msra.mxu0 %v1794_v57  ;;  %v1966_v21 = vor.u32 %v2117_v12, %v1963_v13  ;;  %v2111_v57 = vld [vmem:[#allocation4 + $0x224] sm:$0xf]  ;;  %v1937_v12 = vld [vmem:[#allocation4 + $0x220] sm:$0xf]  ;;  %v2114_v13 = vld [vmem:[#allocation4 + $0x234] sm:$0xf0] }
  0x79   : > { %1310 = vmatpush.bf16.msra.mxu1 %v1986_v62 }
  0x7a   : > { %1359 = vmatpush.bf16.msra.mxu2 %v1798_v36  ;;  %v1961_v36 = vld [vmem:[#allocation4 + $0x250] sm:$0xf] }
  0x7b   : > { %1408 = vmatpush.bf16.msra.mxu3 %v1990_v42 }
  0x7e   : > { %1360 = vmatpush.bf16.msra.mxu2 %v1774_v11  ;;  %v1746_v11 = vor.u32 %v2066_v9, %v1745_v8  ;;  %v2051_v8 = vld [vmem:[#allocation4 + $0x44] sm:$0xf]  ;;  %v1699_v9 = vld [vmem:[#allocation4 + $0x58] sm:$0xf0] }
  0x7f   : > { %890 = vmatmul.bf16.gmra.mxu0 %v2493_v52  ;;  %1409 = vmatpush.bf16.msra.mxu3 %v1966_v21 }
  0x80   : > { %939 = vmatmul.bf16.gmra.mxu1 %v2495_v53 }
  0x81   : > { %988 = vmatmul.bf16.gmra.mxu2 %v2493_v52 }
  0x82   : > { %1037 = vmatmul.bf16.gmra.mxu3 %v2495_v53 }
  0x8f   : > { %895 = vmatmul.bf16.gmra.mxu0 %v2505_v6 }
  0x90   : > { %944 = vmatmul.bf16.gmra.mxu1 %v2507_v7 }
  0x91   : > { %993 = vmatmul.bf16.gmra.mxu2 %v2505_v6 }
  0x92   : > { %1042 = vmatmul.bf16.gmra.mxu3 %v2507_v7 }
  0x9f   : > { %900 = vmatmul.bf16.gmra.mxu0 %v2517_v26 }
  0xa0   : > { %949 = vmatmul.bf16.gmra.mxu1 %v2519_v27 }
  0xa1   : > { %998 = vmatmul.bf16.gmra.mxu2 %v2517_v26 }
  0xa2   : > { %1047 = vmatmul.bf16.gmra.mxu3 %v2519_v27 }
  0xaf   : > { %905 = vmatmul.bf16.gmra.mxu0 %v2529_v47 }
  0xb0   : > { %954 = vmatmul.bf16.gmra.mxu1 %v2531_v48 }
  0xb1   : > { %1003 = vmatmul.bf16.gmra.mxu2 %v2529_v47 }
  0xb2   : > { %1052 = vmatmul.bf16.gmra.mxu3 %v2531_v48 }
  0xbf   : > { %910 = vmatmul.bf16.gmra.mxu0 %v2541_v1 }
  0xc0   : > { %959 = vmatmul.bf16.gmra.mxu1 %v2543_v4 }
  0xc1   : > { %1008 = vmatmul.bf16.gmra.mxu2 %v2541_v1 }
  0xc2   : > { %1057 = vmatmul.bf16.gmra.mxu3 %v2543_v4 }
  0xcc   : > { %v876_v23 = vpop.f32.mrf.mxu0 }
  0xcd   : > { %v925_v25 = vpop.f32.mrf.mxu1  ;;  %v877_v28 = vadd.f32 %v876_v23, %v2554_v22 }
  0xcf   : > { %1071 = vmatmul.bf16.vlgmr.msrb.gmra.mxu0 %v2457_v44  ;;  %v926_v38 = vadd.f32 %v925_v25, %v877_v28 }
  0xd0   : > { %1120 = vmatmul.bf16.vlgmr.msrb.gmra.mxu1 %v2459_v49 }
  0xd1   : > { %1169 = vmatmul.bf16.vlgmr.msrb.gmra.mxu2 %v2457_v44 }
  0xd2   : > { %1218 = vmatmul.bf16.vlgmr.msrb.gmra.mxu3 %v2459_v49 }
  0xd4   : > { %v974_v35 = vpop.f32.mrf.mxu2  ;;  %v878_v41 = vpop.f32.mrf.mxu0 }
  0xd5   : > { %v975_v39 = vadd.f32 %v974_v35, %v2561_v29  ;;  %v1023_v40 = vpop.f32.mrf.mxu3  ;;  %v927_v43 = vpop.f32.mrf.mxu1  ;;  %v879_v50 = vadd.f32 %v878_v41, %v2554_v22  ;;  %v1770_v35 = vor.u32 %v2072_v31, %v1769_v30  ;;  %v1962_v41 = vor.u32 %v2120_v37, %v1961_v36  ;;  %v2057_v30 = vld [vmem:[#allocation4 + $0x74] sm:$0xf]  ;;  %v1723_v31 = vld [vmem:[#allocation4 + $0x88] sm:$0xf0] }
  0xd6   : > { %v2105_v36 = vld [vmem:[#allocation4 + $0x1f4] sm:$0xf]  ;;  %v1915_v37 = vld [vmem:[#allocation4 + $0x208] sm:$0xf0] }
  0xd7   : > { %v1024_v45 = vadd.f32 %v1023_v40, %v975_v39  ;;  %v928_v0 = vadd.f32 %v927_v43, %v879_v50  ;;  %1262 = vmatpush.bf16.msra.mxu0 %v1770_v35  ;;  %1311 = vmatpush.bf16.msra.mxu1 %v1962_v41  ;;  %v1726_v35 = vor.u32 %v2057_v30, %v1723_v31  ;;  %v1697_v30 = vld [vmem:[#allocation4 + $0x40] sm:$0xf]  ;;  %v2054_v31 = vld [vmem:[#allocation4 + $0x54] sm:$0xf0] }
  0xd9   : > { %v1455_v46 = vpack.c.bf16 %v1024_v45, %v926_v38 }
  0xdb   : > { %1503 = vst [vmem:[%s2568_s22] sm:$0xff] %v1455_v46  ;;  %1263 = vmatpush.bf16.msra.mxu0 %v1746_v11  ;;  %v1702_v11 = vor.u32 %v2051_v8, %v1699_v9  ;;  %v1673_v8 = vld [vmem:[#allocation4 + $0x10] sm:$0xf]  ;;  %v2048_v9 = vld [vmem:[#allocation4 + $0x24] sm:$0xf0] }
  0xdc   : > { %v976_v56 = vpop.f32.mrf.mxu2  ;;  %v881_v61 = vpop.f32.mrf.mxu0 }
  0xdd   : > { %v977_v59 = vadd.f32 %v976_v56, %v2561_v29  ;;  %v1025_v60 = vpop.f32.mrf.mxu3  ;;  %v930_v63 = vpop.f32.mrf.mxu1  ;;  %v882_v5 = vadd.f32 %v881_v61, %v2554_v22  ;;  %v1750_v56 = vor.u32 %v2063_v51, %v1747_v54  ;;  %v1721_v51 = vld [vmem:[#allocation4 + $0x70] sm:$0xf]  ;;  %v2060_v54 = vld [vmem:[#allocation4 + $0x84] sm:$0xf0] }
  0xdf   : > { %v1026_v2 = vadd.f32 %v1025_v60, %v977_v59  ;;  %1076 = vmatmul.bf16.gmra.mxu0 %v2469_v14  ;;  %v931_v17 = vadd.f32 %v930_v63, %v882_v5  ;;  %v1942_v63 = vor.u32 %v2111_v57, %v1939_v58  ;;  %1361 = vmatpush.bf16.msra.mxu2 %v1750_v56  ;;  %v1913_v57 = vld [vmem:[#allocation4 + $0x1f0] sm:$0xf]  ;;  %v2108_v58 = vld [vmem:[#allocation4 + $0x204] sm:$0xf0] }
  0xe0   : > { %1125 = vmatmul.bf16.gmra.mxu1 %v2471_v15  ;;  %v1722_v56 = vor.u32 %v2060_v54, %v1721_v51  ;;  %v2045_v51 = vld [vmem:[#allocation4 + $0x14] sm:$0xf]  ;;  %v1675_v54 = vld [vmem:[#allocation4 + $0x28] sm:$0xf0] }
  0xe1   : > { %v1458_v3 = vpack.c.bf16 %v1026_v2, %v928_v0  ;;  %1174 = vmatmul.bf16.gmra.mxu2 %v2469_v14  ;;  %1410 = vmatpush.bf16.msra.mxu3 %v1942_v63 }
  0xe2   : > { %1223 = vmatmul.bf16.gmra.mxu3 %v2471_v15  ;;  %1264 = vmatpush.bf16.msra.mxu0 %v1722_v56  ;;  %v1678_v56 = vor.u32 %v2045_v51, %v1675_v54 }
  0xe3   : > { %1506 = vst [vmem:[%s2568_s22 + $0x18] sm:$0xff] %v1458_v3  ;;  %1362 = vmatpush.bf16.msra.mxu2 %v1726_v35  ;;  %v1698_v35 = vor.u32 %v2054_v31, %v1697_v30 }
  0xe4   : > { %v979_v10 = vpop.f32.mrf.mxu2  ;;  %v883_v20 = vpop.f32.mrf.mxu0 }
  0xe5   : > { %v980_v18 = vadd.f32 %v979_v10, %v2561_v29  ;;  %v1028_v19 = vpop.f32.mrf.mxu3  ;;  %v932_v23 = vpop.f32.mrf.mxu1  ;;  %v884_v28 = vadd.f32 %v883_v20, %v2554_v22  ;;  %v1938_v20 = vor.u32 %v2114_v13, %v1937_v12  ;;  %v2099_v12 = vld [vmem:[#allocation4 + $0x1c4] sm:$0xf]  ;;  %v1891_v13 = vld [vmem:[#allocation4 + $0x1d8] sm:$0xf0] }
  0xe6   : > { %1265 = vmatpush.bf16.msra.mxu0 %v1698_v35 }
  0xe7   : > { %v1029_v24 = vadd.f32 %v1028_v19, %v980_v18  ;;  %v933_v43 = vadd.f32 %v932_v23, %v884_v28  ;;  %1312 = vmatpush.bf16.msra.mxu1 %v1938_v20  ;;  %1363 = vmatpush.bf16.msra.mxu2 %v1702_v11  ;;  %v1674_v11 = vor.u32 %v2048_v9, %v1673_v8  ;;  %v2644_v8 = vperm.slane %v2551_v16, 2 }
  0xe9   : > { %v1461_v25 = vpack.c.bf16 %v1029_v24, %v931_v17 }
  0xea   : > { %1266 = vmatpush.bf16.msra.mxu0 %v1674_v11 }
  0xeb   : > { %1509 = vst [vmem:[%s2568_s22 + $0x30] sm:$0xff] %v1461_v25  ;;  %1364 = vmatpush.bf16.msra.mxu2 %v1678_v56 }
  0xec   : > { %v981_v34 = vpop.f32.mrf.mxu2  ;;  %v886_v40 = vpop.f32.mrf.mxu0 }
  0xed   : > { %v982_v38 = vadd.f32 %v981_v34, %v2561_v29  ;;  %v1030_v39 = vpop.f32.mrf.mxu3  ;;  %v935_v42 = vpop.f32.mrf.mxu1  ;;  %v887_v50 = vadd.f32 %v886_v40, %v2554_v22 }
  0xef   : > { %v1031_v45 = vadd.f32 %v1030_v39, %v982_v38  ;;  %1081 = vmatmul.bf16.gmra.mxu0 %v2481_v32  ;;  %v936_v59 = vadd.f32 %v935_v42, %v887_v50  ;;  %v1918_v42 = vor.u32 %v2105_v36, %v1915_v37  ;;  %v1889_v36 = vld [vmem:[#allocation4 + $0x1c0] sm:$0xf]  ;;  %v2102_v37 = vld [vmem:[#allocation4 + $0x1d4] sm:$0xf0] }
  0xf0   : > { %1130 = vmatmul.bf16.gmra.mxu1 %v2483_v33 }
  0xf1   : > { %v1464_v46 = vpack.c.bf16 %v1031_v45, %v933_v43  ;;  %1179 = vmatmul.bf16.gmra.mxu2 %v2481_v32  ;;  %1411 = vmatpush.bf16.msra.mxu3 %v1918_v42 }
  0xf2   : > { %1228 = vmatmul.bf16.gmra.mxu3 %v2483_v33 }
  0xf3   : > { %1512 = vst [vmem:[%s2568_s22 + $0x48] sm:$0xff] %v1464_v46 }
  0xf4   : > { %v984_v55 = vpop.f32.mrf.mxu2  ;;  %v888_v62 = vpop.f32.mrf.mxu0 }
  0xf5   : > { %v985_v60 = vadd.f32 %v984_v55, %v2561_v29  ;;  %v1033_v61 = vpop.f32.mrf.mxu3  ;;  %v937_v0 = vpop.f32.mrf.mxu1  ;;  %v889_v5 = vadd.f32 %v888_v62, %v2554_v22  ;;  %v1914_v62 = vor.u32 %v2108_v58, %v1913_v57  ;;  %v2093_v57 = vld [vmem:[#allocation4 + $0x194] sm:$0xf]  ;;  %v1867_v58 = vld [vmem:[#allocation4 + $0x1a8] sm:$0xf0] }
  0xf7   : > { %v1034_v2 = vadd.f32 %v1033_v61, %v985_v60  ;;  %v938_v23 = vadd.f32 %v937_v0, %v889_v5  ;;  %1313 = vmatpush.bf16.msra.mxu1 %v1914_v62 }
  0xf9   : > { %v1467_v3 = vpack.c.bf16 %v1034_v2, %v936_v59 }
  0xfb   : > { %1515 = vst [vmem:[%s2568_s22 + $0x60] sm:$0xff] %v1467_v3 }
  0xfc   : > { %v986_v10 = vpop.f32.mrf.mxu2  ;;  %v891_v19 = vpop.f32.mrf.mxu0 }
  0xfd   : > { %v987_v17 = vadd.f32 %v986_v10, %v2561_v29  ;;  %v1035_v18 = vpop.f32.mrf.mxu3  ;;  %v940_v21 = vpop.f32.mrf.mxu1  ;;  %v892_v28 = vadd.f32 %v891_v19, %v2554_v22 }
  0xff   : > { %v1036_v24 = vadd.f32 %v1035_v18, %v987_v17  ;;  %1086 = vmatmul.bf16.gmra.mxu0 %v2493_v52  ;;  %v941_v38 = vadd.f32 %v940_v21, %v892_v28  ;;  %v1894_v21 = vor.u32 %v2099_v12, %v1891_v13  ;;  %v1865_v12 = vld [vmem:[#allocation4 + $0x190] sm:$0xf]  ;;  %v2096_v13 = vld [vmem:[#allocation4 + $0x1a4] sm:$0xf0] }
 0x100   : > { %1135 = vmatmul.bf16.gmra.mxu1 %v2495_v53 }
 0x101   : > { %v1470_v25 = vpack.c.bf16 %v1036_v24, %v938_v23  ;;  %1184 = vmatmul.bf16.gmra.mxu2 %v2493_v52  ;;  %1412 = vmatpush.bf16.msra.mxu3 %v1894_v21 }
 0x102   : > { %1233 = vmatmul.bf16.gmra.mxu3 %v2495_v53 }
 0x103   : > { %1518 = vst [vmem:[%s2568_s22 + $0x78] sm:$0xff] %v1470_v25 }
 0x104   : > { %v989_v34 = vpop.f32.mrf.mxu2  ;;  %v893_v41 = vpop.f32.mrf.mxu0 }
 0x105   : > { %v990_v39 = vadd.f32 %v989_v34, %v2561_v29  ;;  %v1038_v40 = vpop.f32.mrf.mxu3  ;;  %v942_v43 = vpop.f32.mrf.mxu1  ;;  %v894_v50 = vadd.f32 %v893_v41, %v2554_v22  ;;  %v1890_v41 = vor.u32 %v2102_v37, %v1889_v36 }
 0x107   : > { %v1039_v45 = vadd.f32 %v1038_v40, %v990_v39  ;;  %v943_v0 = vadd.f32 %v942_v43, %v894_v50  ;;  %1314 = vmatpush.bf16.msra.mxu1 %v1890_v41 }
 0x109   : > { %v1473_v46 = vpack.c.bf16 %v1039_v45, %v941_v38 }
 0x10b   : > { %1521 = vst [vmem:[%s2568_s22 + $0x90] sm:$0xff] %v1473_v46 }
 0x10c   : > { %v991_v55 = vpop.f32.mrf.mxu2  ;;  %v896_v61 = vpop.f32.mrf.mxu0 }
 0x10d   : > { %v992_v59 = vadd.f32 %v991_v55, %v2561_v29  ;;  %v1040_v60 = vpop.f32.mrf.mxu3  ;;  %v945_v63 = vpop.f32.mrf.mxu1  ;;  %v897_v5 = vadd.f32 %v896_v61, %v2554_v22 }
 0x10f   : > { %v1041_v2 = vadd.f32 %v1040_v60, %v992_v59  ;;  %1091 = vmatmul.bf16.gmra.mxu0 %v2505_v6  ;;  %v946_v17 = vadd.f32 %v945_v63, %v897_v5  ;;  %v1870_v63 = vor.u32 %v2093_v57, %v1867_v58 }
 0x110   : > { %1140 = vmatmul.bf16.gmra.mxu1 %v2507_v7 }
 0x111   : > { %v1476_v3 = vpack.c.bf16 %v1041_v2, %v943_v0  ;;  %1189 = vmatmul.bf16.gmra.mxu2 %v2505_v6  ;;  %1413 = vmatpush.bf16.msra.mxu3 %v1870_v63 }
 0x112   : > { %1238 = vmatmul.bf16.gmra.mxu3 %v2507_v7 }
 0x113   : > { %1524 = vst [vmem:[%s2568_s22 + $0xa8] sm:$0xff] %v1476_v3 }
 0x114   : > { %v994_v10 = vpop.f32.mrf.mxu2  ;;  %v898_v20 = vpop.f32.mrf.mxu0 }
 0x115   : > { %v995_v18 = vadd.f32 %v994_v10, %v2561_v29  ;;  %v1043_v19 = vpop.f32.mrf.mxu3  ;;  %v947_v23 = vpop.f32.mrf.mxu1  ;;  %v899_v28 = vadd.f32 %v898_v20, %v2554_v22  ;;  %v1866_v20 = vor.u32 %v2096_v13, %v1865_v12 }
 0x117   : > { %v1044_v24 = vadd.f32 %v1043_v19, %v995_v18  ;;  %v948_v43 = vadd.f32 %v947_v23, %v899_v28  ;;  %1315 = vmatpush.bf16.msra.mxu1 %v1866_v20 }
 0x119   : > { %v1479_v25 = vpack.c.bf16 %v1044_v24, %v946_v17 }
 0x11b   : > { %1527 = vst [vmem:[%s2568_s22 + $0xc0] sm:$0xff] %v1479_v25 }
 0x11c   : > { %v996_v34 = vpop.f32.mrf.mxu2  ;;  %v901_v40 = vpop.f32.mrf.mxu0 }
 0x11d   : > { %v997_v38 = vadd.f32 %v996_v34, %v2561_v29  ;;  %v1045_v39 = vpop.f32.mrf.mxu3  ;;  %v950_v42 = vpop.f32.mrf.mxu1  ;;  %v902_v50 = vadd.f32 %v901_v40, %v2554_v22 }
 0x11f   : > { %v1046_v45 = vadd.f32 %v1045_v39, %v997_v38  ;;  %1096 = vmatmul.bf16.gmra.mxu0 %v2517_v26  ;;  %v951_v59 = vadd.f32 %v950_v42, %v902_v50 }
 0x120   : > { %1145 = vmatmul.bf16.gmra.mxu1 %v2519_v27 }
 0x121   : > { %v1482_v46 = vpack.c.bf16 %v1046_v45, %v948_v43  ;;  %1194 = vmatmul.bf16.gmra.mxu2 %v2517_v26 }
 0x122   : > { %1243 = vmatmul.bf16.gmra.mxu3 %v2519_v27 }
 0x123   : > { %1530 = vst [vmem:[%s2568_s22 + $0xd8] sm:$0xff] %v1482_v46 }
 0x124   : > { %v999_v55 = vpop.f32.mrf.mxu2  ;;  %v903_v62 = vpop.f32.mrf.mxu0 }
 0x125   : > { %v1000_v60 = vadd.f32 %v999_v55, %v2561_v29  ;;  %v1048_v61 = vpop.f32.mrf.mxu3  ;;  %v952_v0 = vpop.f32.mrf.mxu1  ;;  %v904_v5 = vadd.f32 %v903_v62, %v2554_v22 }
 0x127   : > { %v1049_v2 = vadd.f32 %v1048_v61, %v1000_v60  ;;  %v953_v23 = vadd.f32 %v952_v0, %v904_v5 }
 0x129   : > { %v1485_v3 = vpack.c.bf16 %v1049_v2, %v951_v59 }
 0x12b   : > { %1533 = vst [vmem:[%s2568_s22 + $0xf0] sm:$0xff] %v1485_v3 }
 0x12c   : > { %v1001_v10 = vpop.f32.mrf.mxu2  ;;  %v906_v19 = vpop.f32.mrf.mxu0 }
 0x12d   : > { %v1002_v17 = vadd.f32 %v1001_v10, %v2561_v29  ;;  %v1050_v18 = vpop.f32.mrf.mxu3  ;;  %v955_v21 = vpop.f32.mrf.mxu1  ;;  %v907_v28 = vadd.f32 %v906_v19, %v2554_v22 }
 0x12f   : > { %v1051_v24 = vadd.f32 %v1050_v18, %v1002_v17  ;;  %1101 = vmatmul.bf16.gmra.mxu0 %v2529_v47  ;;  %v956_v31 = vadd.f32 %v955_v21, %v907_v28 }
 0x130   : > { %1150 = vmatmul.bf16.gmra.mxu1 %v2531_v48 }
 0x131   : > { %v1488_v25 = vpack.c.bf16 %v1051_v24, %v953_v23  ;;  %1199 = vmatmul.bf16.gmra.mxu2 %v2529_v47 }
 0x132   : > { %1248 = vmatmul.bf16.gmra.mxu3 %v2531_v48 }
 0x133   : > { %1536 = vst [vmem:[%s2568_s22 + $0x108] sm:$0xff] %v1488_v25 }
 0x134   : > { %v1004_v30 = vpop.f32.mrf.mxu2  ;;  %v908_v36 = vpop.f32.mrf.mxu0 }
 0x135   : > { %v1005_v34 = vadd.f32 %v1004_v30, %v2561_v29  ;;  %v1053_v35 = vpop.f32.mrf.mxu3  ;;  %v957_v37 = vpop.f32.mrf.mxu1  ;;  %v909_v40 = vadd.f32 %v908_v36, %v2554_v22 }
 0x137   : > { %v1054_v38 = vadd.f32 %v1053_v35, %v1005_v34  ;;  %v958_v50 = vadd.f32 %v957_v37, %v909_v40 }
 0x139   : > { %v1491_v39 = vpack.c.bf16 %v1054_v38, %v956_v31 }
 0x13b   : > { %1539 = vst [vmem:[%s2568_s22 + $0x120] sm:$0xff] %v1491_v39 }
 0x13c   : > { %v1006_v41 = vpop.f32.mrf.mxu2  ;;  %v911_v45 = vpop.f32.mrf.mxu0 }
 0x13d   : > { %v1007_v42 = vadd.f32 %v1006_v41, %v2561_v29  ;;  %v1055_v43 = vpop.f32.mrf.mxu3  ;;  %v960_v46 = vpop.f32.mrf.mxu1  ;;  %v912_v55 = vadd.f32 %v911_v45, %v2554_v22 }
 0x13f   : > { %v1056_v51 = vadd.f32 %v1055_v43, %v1007_v42  ;;  %1106 = vmatmul.bf16.gmra.mxu0 %v2541_v1  ;;  %v961_v57 = vadd.f32 %v960_v46, %v912_v55 }
 0x140   : > { %1155 = vmatmul.bf16.gmra.mxu1 %v2543_v4 }
 0x141   : > { %v1494_v54 = vpack.c.bf16 %v1056_v51, %v958_v50  ;;  %1204 = vmatmul.bf16.gmra.mxu2 %v2541_v1 }
 0x142   : > { %1253 = vmatmul.bf16.gmra.mxu3 %v2543_v4 }
 0x143   : > { %1542 = vst [vmem:[%s2568_s22 + $0x138] sm:$0xff] %v1494_v54 }
 0x144   : > { %v1009_v56 = vpop.f32.mrf.mxu2  ;;  %v913_v60 = vpop.f32.mrf.mxu0 }
 0x145   : > { %v1010_v58 = vadd.f32 %v1009_v56, %v2561_v29  ;;  %v1058_v59 = vpop.f32.mrf.mxu3  ;;  %v962_v61 = vpop.f32.mrf.mxu1  ;;  %v914_v0 = vadd.f32 %v913_v60, %v2554_v22  ;;  %v2651_v22 = vperm.slane %v2551_v16, 3 }
 0x147   : > { %v1059_v62 = vadd.f32 %v1058_v59, %v1010_v58  ;;  %v963_v11 = vadd.f32 %v962_v61, %v914_v0 }
 0x149   : > { %v1497_v63 = vpack.c.bf16 %v1059_v62, %v961_v57 }
 0x14b   : > { %1545 = vst [vmem:[%s2568_s22 + $0x150] sm:$0xff] %v1497_v63 }
 0x14c   : > { %v1011_v2 = vpop.f32.mrf.mxu2  ;;  %v1072_v9 = vpop.f32.mrf.mxu0 }
 0x14d   : > { %v1012_v3 = vadd.f32 %v1011_v2, %v2561_v29  ;;  %v1060_v5 = vpop.f32.mrf.mxu3  ;;  %v1121_v10 = vpop.f32.mrf.mxu1  ;;  %v1073_v17 = vadd.f32 %v1072_v9, %v2644_v8 }
 0x14f   : > { %v1061_v12 = vadd.f32 %v1060_v5, %v1012_v3  ;;  %1267 = vmatmul.bf16.vlgmr.msra.gmra.mxu0 %v2457_v44  ;;  %v1122_v18 = vadd.f32 %v1121_v10, %v1073_v17 }
 0x150   : > { %1316 = vmatmul.bf16.vlgmr.msra.gmra.mxu1 %v2459_v49 }
 0x151   : > { %v1500_v13 = vpack.c.bf16 %v1061_v12, %v963_v11  ;;  %1365 = vmatmul.bf16.vlgmr.msra.gmra.mxu2 %v2457_v44 }
 0x152   : > { %1414 = vmatmul.bf16.vlgmr.msra.gmra.mxu3 %v2459_v49 }
 0x153   : > { %1548 = vst [vmem:[%s2568_s22 + $0x168] sm:$0xff] %v1500_v13 }
 0x154   : > { %v1170_v29 = vpop.f32.mrf.mxu2  ;;  %v1074_v21 = vpop.f32.mrf.mxu0 }
 0x155   : > { %v1171_v19 = vadd.f32 %v1170_v29, %v2651_v22  ;;  %v1219_v20 = vpop.f32.mrf.mxu3  ;;  %v1123_v23 = vpop.f32.mrf.mxu1  ;;  %v1075_v28 = vadd.f32 %v1074_v21, %v2644_v8 }
 0x157   : > { %v1220_v24 = vadd.f32 %v1219_v20, %v1171_v19  ;;  %v1124_v35 = vadd.f32 %v1123_v23, %v1075_v28 }
 0x159   : > { %v1456_v25 = vpack.c.bf16 %v1220_v24, %v1122_v18 }
 0x15b   : > { %1504 = vst [vmem:[%s2568_s22 + $0x8] sm:$0xff] %v1456_v25 }
 0x15c   : > { %v1172_v44 = vpop.f32.mrf.mxu2  ;;  %v1077_v34 = vpop.f32.mrf.mxu0 }
 0x15d   : > { %v1173_v30 = vadd.f32 %v1172_v44, %v2651_v22  ;;  %v1221_v31 = vpop.f32.mrf.mxu3  ;;  %v1126_v49 = vpop.f32.mrf.mxu1  ;;  %v1078_v38 = vadd.f32 %v1077_v34, %v2644_v8 }
 0x15f   : > { %v1222_v36 = vadd.f32 %v1221_v31, %v1173_v30  ;;  %1272 = vmatmul.bf16.gmra.mxu0 %v2469_v14  ;;  %v1127_v40 = vadd.f32 %v1126_v49, %v1078_v38 }
 0x160   : > { %1321 = vmatmul.bf16.gmra.mxu1 %v2471_v15 }
 0x161   : > { %v1459_v37 = vpack.c.bf16 %v1222_v36, %v1124_v35  ;;  %1370 = vmatmul.bf16.gmra.mxu2 %v2469_v14 }
 0x162   : > { %1419 = vmatmul.bf16.gmra.mxu3 %v2471_v15 }
 0x163   : > { %1507 = vst [vmem:[%s2568_s22 + $0x20] sm:$0xff] %v1459_v37 }
 0x164   : > { %v1175_v39 = vpop.f32.mrf.mxu2  ;;  %v1079_v43 = vpop.f32.mrf.mxu0 }
 0x165   : > { %v1176_v41 = vadd.f32 %v1175_v39, %v2651_v22  ;;  %v1224_v42 = vpop.f32.mrf.mxu3  ;;  %v1128_v45 = vpop.f32.mrf.mxu1  ;;  %v1080_v51 = vadd.f32 %v1079_v43, %v2644_v8 }
 0x167   : > { %v1225_v46 = vadd.f32 %v1224_v42, %v1176_v41  ;;  %v1129_v57 = vadd.f32 %v1128_v45, %v1080_v51 }
 0x169   : > { %v1462_v50 = vpack.c.bf16 %v1225_v46, %v1127_v40 }
 0x16b   : > { %1510 = vst [vmem:[%s2568_s22 + $0x38] sm:$0xff] %v1462_v50 }
 0x16c   : > { %v1177_v54 = vpop.f32.mrf.mxu2  ;;  %v1082_v56 = vpop.f32.mrf.mxu0 }
 0x16d   : > { %v1178_v55 = vadd.f32 %v1177_v54, %v2651_v22  ;;  %v1226_v14 = vpop.f32.mrf.mxu3  ;;  %v1131_v15 = vpop.f32.mrf.mxu1  ;;  %v1083_v60 = vadd.f32 %v1082_v56, %v2644_v8 }
 0x16f   : > { %v1227_v58 = vadd.f32 %v1226_v14, %v1178_v55  ;;  %1277 = vmatmul.bf16.gmra.mxu0 %v2481_v32  ;;  %v1132_v62 = vadd.f32 %v1131_v15, %v1083_v60 }
 0x170   : > { %1326 = vmatmul.bf16.gmra.mxu1 %v2483_v33 }
 0x171   : > { %v1465_v59 = vpack.c.bf16 %v1227_v58, %v1129_v57  ;;  %1375 = vmatmul.bf16.gmra.mxu2 %v2481_v32 }
 0x172   : > { %1424 = vmatmul.bf16.gmra.mxu3 %v2483_v33 }
 0x173   : > { %1513 = vst [vmem:[%s2568_s22 + $0x50] sm:$0xff] %v1465_v59 }
 0x174   : > { %v1180_v61 = vpop.f32.mrf.mxu2  ;;  %v1084_v2 = vpop.f32.mrf.mxu0 }
 0x175   : > { %v1181_v63 = vadd.f32 %v1180_v61, %v2651_v22  ;;  %v1229_v0 = vpop.f32.mrf.mxu3  ;;  %v1133_v3 = vpop.f32.mrf.mxu1  ;;  %v1085_v10 = vadd.f32 %v1084_v2, %v2644_v8 }
 0x177   : > { %v1230_v5 = vadd.f32 %v1229_v0, %v1181_v63  ;;  %v1134_v17 = vadd.f32 %v1133_v3, %v1085_v10 }
 0x179   : > { %v1468_v9 = vpack.c.bf16 %v1230_v5, %v1132_v62 }
 0x17b   : > { %1516 = vst [vmem:[%s2568_s22 + $0x68] sm:$0xff] %v1468_v9 }
 0x17c   : > { %v1182_v11 = vpop.f32.mrf.mxu2  ;;  %v1087_v13 = vpop.f32.mrf.mxu0 }
 0x17d   : > { %v1183_v12 = vadd.f32 %v1182_v11, %v2651_v22  ;;  %v1231_v32 = vpop.f32.mrf.mxu3  ;;  %v1136_v33 = vpop.f32.mrf.mxu1  ;;  %v1088_v19 = vadd.f32 %v1087_v13, %v2644_v8 }
 0x17f   : > { %v1232_v29 = vadd.f32 %v1231_v32, %v1183_v12  ;;  %1282 = vmatmul.bf16.gmra.mxu0 %v2493_v52  ;;  %v1137_v21 = vadd.f32 %v1136_v33, %v1088_v19 }
 0x180   : > { %1331 = vmatmul.bf16.gmra.mxu1 %v2495_v53 }
 0x181   : > { %v1471_v18 = vpack.c.bf16 %v1232_v29, %v1134_v17  ;;  %1380 = vmatmul.bf16.gmra.mxu2 %v2493_v52 }
 0x182   : > { %1429 = vmatmul.bf16.gmra.mxu3 %v2495_v53 }
 0x183   : > { %1519 = vst [vmem:[%s2568_s22 + $0x80] sm:$0xff] %v1471_v18 }
 0x184   : > { %v1185_v20 = vpop.f32.mrf.mxu2  ;;  %v1089_v25 = vpop.f32.mrf.mxu0 }
 0x185   : > { %v1186_v23 = vadd.f32 %v1185_v20, %v2651_v22  ;;  %v1234_v24 = vpop.f32.mrf.mxu3  ;;  %v1138_v28 = vpop.f32.mrf.mxu1  ;;  %v1090_v31 = vadd.f32 %v1089_v25, %v2644_v8 }
 0x187   : > { %v1235_v44 = vadd.f32 %v1234_v24, %v1186_v23  ;;  %v1139_v36 = vadd.f32 %v1138_v28, %v1090_v31 }
 0x189   : > { %v1474_v30 = vpack.c.bf16 %v1235_v44, %v1137_v21 }
 0x18b   : > { %1522 = vst [vmem:[%s2568_s22 + $0x98] sm:$0xff] %v1474_v30 }
 0x18c   : > { %v1187_v34 = vpop.f32.mrf.mxu2  ;;  %v1092_v35 = vpop.f32.mrf.mxu0 }
 0x18d   : > { %v1188_v49 = vadd.f32 %v1187_v34, %v2651_v22  ;;  %v1236_v52 = vpop.f32.mrf.mxu3  ;;  %v1141_v53 = vpop.f32.mrf.mxu1  ;;  %v1093_v39 = vadd.f32 %v1092_v35, %v2644_v8 }
 0x18f   : > { %v1237_v37 = vadd.f32 %v1236_v52, %v1188_v49  ;;  %1287 = vmatmul.bf16.gmra.mxu0 %v2505_v6  ;;  %v1142_v41 = vadd.f32 %v1141_v53, %v1093_v39 }
 0x190   : > { %1336 = vmatmul.bf16.gmra.mxu1 %v2507_v7 }
 0x191   : > { %v1477_v38 = vpack.c.bf16 %v1237_v37, %v1139_v36  ;;  %1385 = vmatmul.bf16.gmra.mxu2 %v2505_v6 }
 0x192   : > { %1434 = vmatmul.bf16.gmra.mxu3 %v2507_v7 }
 0x193   : > { %1525 = vst [vmem:[%s2568_s22 + $0xb0] sm:$0xff] %v1477_v38 }
 0x194   : > { %v1190_v40 = vpop.f32.mrf.mxu2  ;;  %v1094_v45 = vpop.f32.mrf.mxu0 }
 0x195   : > { %v1191_v42 = vadd.f32 %v1190_v40, %v2651_v22  ;;  %v1239_v43 = vpop.f32.mrf.mxu3  ;;  %v1143_v46 = vpop.f32.mrf.mxu1  ;;  %v1095_v54 = vadd.f32 %v1094_v45, %v2644_v8 }
 0x197   : > { %v1240_v50 = vadd.f32 %v1239_v43, %v1191_v42  ;;  %v1144_v15 = vadd.f32 %v1143_v46, %v1095_v54 }
 0x199   : > { %v1480_v51 = vpack.c.bf16 %v1240_v50, %v1142_v41 }
 0x19b   : > { %1528 = vst [vmem:[%s2568_s22 + $0xc8] sm:$0xff] %v1480_v51 }
 0x19c   : > { %v1192_v55 = vpop.f32.mrf.mxu2  ;;  %v1097_v56 = vpop.f32.mrf.mxu0 }
 0x19d   : > { %v1193_v14 = vadd.f32 %v1192_v55, %v2651_v22  ;;  %v1241_v6 = vpop.f32.mrf.mxu3  ;;  %v1146_v7 = vpop.f32.mrf.mxu1  ;;  %v1098_v59 = vadd.f32 %v1097_v56, %v2644_v8  ;;  %v2734_v56 = vperm.slane %v2551_v16, 5 }
 0x19f   : > { %v1242_v57 = vadd.f32 %v1241_v6, %v1193_v14  ;;  %1292 = vmatmul.bf16.gmra.mxu0 %v2517_v26  ;;  %v1147_v61 = vadd.f32 %v1146_v7, %v1098_v59 }
 0x1a0   : > { %1341 = vmatmul.bf16.gmra.mxu1 %v2519_v27 }
 0x1a1   : > { %v1483_v58 = vpack.c.bf16 %v1242_v57, %v1144_v15  ;;  %1390 = vmatmul.bf16.gmra.mxu2 %v2517_v26 }
 0x1a2   : > { %1439 = vmatmul.bf16.gmra.mxu3 %v2519_v27 }
 0x1a3   : > { %1531 = vst [vmem:[%s2568_s22 + $0xe0] sm:$0xff] %v1483_v58 }
 0x1a4   : > { %v1195_v60 = vpop.f32.mrf.mxu2  ;;  %v1099_v0 = vpop.f32.mrf.mxu0 }
 0x1a5   : > { %v1196_v62 = vadd.f32 %v1195_v60, %v2651_v22  ;;  %v1244_v63 = vpop.f32.mrf.mxu3  ;;  %v1148_v2 = vpop.f32.mrf.mxu1  ;;  %v1100_v9 = vadd.f32 %v1099_v0, %v2644_v8 }
 0x1a7   : > { %v1245_v3 = vadd.f32 %v1244_v63, %v1196_v62  ;;  %v1149_v32 = vadd.f32 %v1148_v2, %v1100_v9 }
 0x1a9   : > { %v1486_v5 = vpack.c.bf16 %v1245_v3, %v1147_v61 }
 0x1ab   : > { %1534 = vst [vmem:[%s2568_s22 + $0xf8] sm:$0xff] %v1486_v5 }
 0x1ac   : > { %v1197_v10 = vpop.f32.mrf.mxu2  ;;  %v1102_v12 = vpop.f32.mrf.mxu0 }
 0x1ad   : > { %v1198_v11 = vadd.f32 %v1197_v10, %v2651_v22  ;;  %v1246_v26 = vpop.f32.mrf.mxu3  ;;  %v1151_v27 = vpop.f32.mrf.mxu1  ;;  %v1103_v17 = vadd.f32 %v1102_v12, %v2644_v8 }
 0x1af   : > { %v1247_v13 = vadd.f32 %v1246_v26, %v1198_v11  ;;  %1297 = vmatmul.bf16.gmra.mxu0 %v2529_v47  ;;  %v1152_v18 = vadd.f32 %v1151_v27, %v1103_v17 }
 0x1b0   : > { %1346 = vmatmul.bf16.gmra.mxu1 %v2531_v48 }
 0x1b1   : > { %v1489_v33 = vpack.c.bf16 %v1247_v13, %v1149_v32  ;;  %1395 = vmatmul.bf16.gmra.mxu2 %v2529_v47 }
 0x1b2   : > { %1444 = vmatmul.bf16.gmra.mxu3 %v2531_v48 }
 0x1b3   : > { %1537 = vst [vmem:[%s2568_s22 + $0x110] sm:$0xff] %v1489_v33 }
 0x1b4   : > { %v1200_v29 = vpop.f32.mrf.mxu2  ;;  %v1104_v21 = vpop.f32.mrf.mxu0 }
 0x1b5   : > { %v1201_v19 = vadd.f32 %v1200_v29, %v2651_v22  ;;  %v1249_v20 = vpop.f32.mrf.mxu3  ;;  %v1153_v23 = vpop.f32.mrf.mxu1  ;;  %v1105_v28 = vadd.f32 %v1104_v21, %v2644_v8 }
 0x1b7   : > { %v1250_v24 = vadd.f32 %v1249_v20, %v1201_v19  ;;  %v1154_v34 = vadd.f32 %v1153_v23, %v1105_v28 }
 0x1b9   : > { %v1492_v25 = vpack.c.bf16 %v1250_v24, %v1152_v18 }
 0x1bb   : > { %1540 = vst [vmem:[%s2568_s22 + $0x128] sm:$0xff] %v1492_v25 }
 0x1bc   : > { %v1202_v44 = vpop.f32.mrf.mxu2  ;;  %v1107_v31 = vpop.f32.mrf.mxu0 }
 0x1bd   : > { %v1203_v30 = vadd.f32 %v1202_v44, %v2651_v22  ;;  %v1251_v47 = vpop.f32.mrf.mxu3  ;;  %v1156_v48 = vpop.f32.mrf.mxu1  ;;  %v1108_v35 = vadd.f32 %v1107_v31, %v2644_v8 }
 0x1bf   : > { %v1252_v49 = vadd.f32 %v1251_v47, %v1203_v30  ;;  %1302 = vmatmul.bf16.gmra.mxu0 %v2541_v1  ;;  %v1157_v36 = vadd.f32 %v1156_v48, %v1108_v35 }
 0x1c0   : > { %1351 = vmatmul.bf16.gmra.mxu1 %v2543_v4 }
 0x1c1   : > { %v1495_v52 = vpack.c.bf16 %v1252_v49, %v1154_v34  ;;  %1400 = vmatmul.bf16.gmra.mxu2 %v2541_v1 }
 0x1c2   : > { %1449 = vmatmul.bf16.gmra.mxu3 %v2543_v4  ;;  %v2730_v4 = vperm.slane %v2551_v16, 4 }
 0x1c3   : > { %1543 = vst [vmem:[%s2568_s22 + $0x140] sm:$0xff] %v1495_v52 }
 0x1c4   : > { %v1205_v53 = vpop.f32.mrf.mxu2  ;;  %v1109_v39 = vpop.f32.mrf.mxu0 }
 0x1c5   : > { %v1206_v37 = vadd.f32 %v1205_v53, %v2651_v22  ;;  %v1254_v38 = vpop.f32.mrf.mxu3  ;;  %v1158_v40 = vpop.f32.mrf.mxu1  ;;  %v1110_v43 = vadd.f32 %v1109_v39, %v2644_v8 }
 0x1c7   : > { %v1255_v41 = vadd.f32 %v1254_v38, %v1206_v37  ;;  %v1159_v54 = vadd.f32 %v1158_v40, %v1110_v43 }
 0x1c9   : > { %v1498_v42 = vpack.c.bf16 %v1255_v41, %v1157_v36 }
 0x1cb   : > { %1546 = vst [vmem:[%s2568_s22 + $0x158] sm:$0xff] %v1498_v42 }
 0x1cc   : > { %v1207_v45 = vpop.f32.mrf.mxu2  ;;  %v1268_v50 = vpop.f32.mrf.mxu0 }
 0x1cd   : > { %v1208_v46 = vadd.f32 %v1207_v45, %v2651_v22  ;;  %v1256_v1 = vpop.f32.mrf.mxu3  ;;  %v1317_v51 = vpop.f32.mrf.mxu1  ;;  %v1269_v6 = vadd.f32 %v1268_v50, %v2730_v4 }
 0x1cf   : > { %v1257_v55 = vadd.f32 %v1256_v1, %v1208_v46  ;;  %v1318_v7 = vadd.f32 %v1317_v51, %v1269_v6 }
 0x1d1   : > { %v1501_v14 = vpack.c.bf16 %v1257_v55, %v1159_v54 }
 0x1d3   : > { %1549 = vst [vmem:[%s2568_s22 + $0x170] sm:$0xff] %v1501_v14 }
 0x1d4   : > { %v1366_v8 = vpop.f32.mrf.mxu2  ;;  %v1270_v57 = vpop.f32.mrf.mxu0 }
 0x1d5   : > { %v1367_v22 = vadd.f32 %v1366_v8, %v2734_v56  ;;  %v1415_v15 = vpop.f32.mrf.mxu3  ;;  %v1319_v58 = vpop.f32.mrf.mxu1  ;;  %v1271_v61 = vadd.f32 %v1270_v57, %v2730_v4 }
 0x1d7   : > { %v1416_v59 = vadd.f32 %v1415_v15, %v1367_v22  ;;  %v1320_v3 = vadd.f32 %v1319_v58, %v1271_v61 }
 0x1d9   : > { %v1457_v60 = vpack.c.bf16 %v1416_v59, %v1318_v7 }
 0x1db   : > { %1505 = vst [vmem:[%s2568_s22 + $0x10] sm:$0xff] %v1457_v60 }
 0x1dc   : > { %v1368_v62 = vpop.f32.mrf.mxu2  ;;  %v1273_v16 = vpop.f32.mrf.mxu0 }
 0x1dd   : > { %v1369_v63 = vadd.f32 %v1368_v62, %v2734_v56  ;;  %v1417_v0 = vpop.f32.mrf.mxu3  ;;  %v1322_v2 = vpop.f32.mrf.mxu1  ;;  %v1274_v10 = vadd.f32 %v1273_v16, %v2730_v4 }
 0x1df   : > { %v1418_v5 = vadd.f32 %v1417_v0, %v1369_v63  ;;  %v1323_v26 = vadd.f32 %v1322_v2, %v1274_v10 }
 0x1e1   : > { %v1460_v9 = vpack.c.bf16 %v1418_v5, %v1320_v3 }
 0x1e3   : > { %1508 = vst [vmem:[%s2568_s22 + $0x28] sm:$0xff] %v1460_v9 }
 0x1e4   : > { %v1371_v11 = vpop.f32.mrf.mxu2  ;;  %v1275_v32 = vpop.f32.mrf.mxu0 }
 0x1e5   : > { %v1372_v12 = vadd.f32 %v1371_v11, %v2734_v56  ;;  %v1420_v27 = vpop.f32.mrf.mxu3  ;;  %v1324_v13 = vpop.f32.mrf.mxu1  ;;  %v1276_v29 = vadd.f32 %v1275_v32, %v2730_v4 }
 0x1e7   : > { %v1421_v33 = vadd.f32 %v1420_v27, %v1372_v12  ;;  %v1325_v24 = vadd.f32 %v1324_v13, %v1276_v29 }
 0x1e9   : > { %v1463_v17 = vpack.c.bf16 %v1421_v33, %v1323_v26 }
 0x1eb   : > { %1511 = vst [vmem:[%s2568_s22 + $0x40] sm:$0xff] %v1463_v17 }
 0x1ec   : > { %v1373_v18 = vpop.f32.mrf.mxu2  ;;  %v1278_v21 = vpop.f32.mrf.mxu0 }
 0x1ed   : > { %v1374_v19 = vadd.f32 %v1373_v18, %v2734_v56  ;;  %v1422_v20 = vpop.f32.mrf.mxu3  ;;  %v1327_v23 = vpop.f32.mrf.mxu1  ;;  %v1279_v44 = vadd.f32 %v1278_v21, %v2730_v4 }
 0x1ef   : > { %v1423_v25 = vadd.f32 %v1422_v20, %v1374_v19  ;;  %v1328_v47 = vadd.f32 %v1327_v23, %v1279_v44 }
 0x1f1   : > { %v1466_v28 = vpack.c.bf16 %v1423_v25, %v1325_v24 }
 0x1f3   : > { %1514 = vst [vmem:[%s2568_s22 + $0x58] sm:$0xff] %v1466_v28 }
 0x1f4   : > { %v1376_v30 = vpop.f32.mrf.mxu2  ;;  %v1280_v34 = vpop.f32.mrf.mxu0 }
 0x1f5   : > { %v1377_v31 = vadd.f32 %v1376_v30, %v2734_v56  ;;  %v1425_v48 = vpop.f32.mrf.mxu3  ;;  %v1329_v49 = vpop.f32.mrf.mxu1  ;;  %v1281_v53 = vadd.f32 %v1280_v34, %v2730_v4 }
 0x1f7   : > { %v1426_v52 = vadd.f32 %v1425_v48, %v1377_v31  ;;  %v1330_v41 = vadd.f32 %v1329_v49, %v1281_v53 }
 0x1f9   : > { %v1469_v35 = vpack.c.bf16 %v1426_v52, %v1328_v47 }
 0x1fb   : > { %1517 = vst [vmem:[%s2568_s22 + $0x70] sm:$0xff] %v1469_v35 }
 0x1fc   : > { %v1378_v36 = vpop.f32.mrf.mxu2  ;;  %v1283_v39 = vpop.f32.mrf.mxu0 }
 0x1fd   : > { %v1379_v37 = vadd.f32 %v1378_v36, %v2734_v56  ;;  %v1427_v38 = vpop.f32.mrf.mxu3  ;;  %v1332_v40 = vpop.f32.mrf.mxu1  ;;  %v1284_v45 = vadd.f32 %v1283_v39, %v2730_v4 }
 0x1ff   : > { %v1428_v42 = vadd.f32 %v1427_v38, %v1379_v37  ;;  %v1333_v1 = vadd.f32 %v1332_v40, %v1284_v45 }
 0x201   : > { %v1472_v43 = vpack.c.bf16 %v1428_v42, %v1330_v41 }
 0x203   : > { %1520 = vst [vmem:[%s2568_s22 + $0x88] sm:$0xff] %v1472_v43 }
 0x204   : > { %v1381_v46 = vpop.f32.mrf.mxu2  ;;  %v1285_v54 = vpop.f32.mrf.mxu0 }
 0x205   : > { %v1382_v50 = vadd.f32 %v1381_v46, %v2734_v56  ;;  %v1430_v51 = vpop.f32.mrf.mxu3  ;;  %v1334_v55 = vpop.f32.mrf.mxu1  ;;  %v1286_v8 = vadd.f32 %v1285_v54, %v2730_v4 }
 0x207   : > { %v1431_v14 = vadd.f32 %v1430_v51, %v1382_v50  ;;  %v1335_v59 = vadd.f32 %v1334_v55, %v1286_v8 }
 0x209   : > { %v1475_v6 = vpack.c.bf16 %v1431_v14, %v1333_v1 }
 0x20b   : > { %1523 = vst [vmem:[%s2568_s22 + $0xa0] sm:$0xff] %v1475_v6 }
 0x20c   : > { %v1383_v7 = vpop.f32.mrf.mxu2  ;;  %v1288_v57 = vpop.f32.mrf.mxu0 }
 0x20d   : > { %v1384_v22 = vadd.f32 %v1383_v7, %v2734_v56  ;;  %v1432_v15 = vpop.f32.mrf.mxu3  ;;  %v1337_v58 = vpop.f32.mrf.mxu1  ;;  %v1289_v62 = vadd.f32 %v1288_v57, %v2730_v4 }
 0x20f   : > { %v1433_v60 = vadd.f32 %v1432_v15, %v1384_v22  ;;  %v1338_v0 = vadd.f32 %v1337_v58, %v1289_v62 }
 0x211   : > { %v1478_v61 = vpack.c.bf16 %v1433_v60, %v1335_v59 }
 0x213   : > { %1526 = vst [vmem:[%s2568_s22 + $0xb8] sm:$0xff] %v1478_v61 }
 0x214   : > { %v1386_v63 = vpop.f32.mrf.mxu2  ;;  %v1290_v3 = vpop.f32.mrf.mxu0 }
 0x215   : > { %v1387_v16 = vadd.f32 %v1386_v63, %v2734_v56  ;;  %v1435_v2 = vpop.f32.mrf.mxu3  ;;  %v1339_v5 = vpop.f32.mrf.mxu1  ;;  %v1291_v11 = vadd.f32 %v1290_v3, %v2730_v4 }
 0x217   : > { %v1436_v9 = vadd.f32 %v1435_v2, %v1387_v16  ;;  %v1340_v33 = vadd.f32 %v1339_v5, %v1291_v11 }
 0x219   : > { %v1481_v10 = vpack.c.bf16 %v1436_v9, %v1338_v0 }
 0x21b   : > { %1529 = vst [vmem:[%s2568_s22 + $0xd0] sm:$0xff] %v1481_v10 }
 0x21c   : > { %v1388_v26 = vpop.f32.mrf.mxu2  ;;  %v1293_v32 = vpop.f32.mrf.mxu0 }
 0x21d   : > { %v1389_v12 = vadd.f32 %v1388_v26, %v2734_v56  ;;  %v1437_v27 = vpop.f32.mrf.mxu3  ;;  %v1342_v13 = vpop.f32.mrf.mxu1  ;;  %v1294_v18 = vadd.f32 %v1293_v32, %v2730_v4 }
 0x21f   : > { %v1438_v17 = vadd.f32 %v1437_v27, %v1389_v12  ;;  %v1343_v20 = vadd.f32 %v1342_v13, %v1294_v18 }
 0x221   : > { %v1484_v29 = vpack.c.bf16 %v1438_v17, %v1340_v33 }
 0x223   : > { %1532 = vst [vmem:[%s2568_s22 + $0xe8] sm:$0xff] %v1484_v29 }
 0x224   : > { %v1391_v19 = vpop.f32.mrf.mxu2  ;;  %v1295_v24 = vpop.f32.mrf.mxu0 }
 0x225   : > { %v1392_v21 = vadd.f32 %v1391_v19, %v2734_v56  ;;  %v1440_v23 = vpop.f32.mrf.mxu3  ;;  %v1344_v25 = vpop.f32.mrf.mxu1  ;;  %v1296_v30 = vadd.f32 %v1295_v24, %v2730_v4 }
 0x227   : > { %v1441_v28 = vadd.f32 %v1440_v23, %v1392_v21  ;;  %v1345_v49 = vadd.f32 %v1344_v25, %v1296_v30 }
 0x229   : > { %v1487_v44 = vpack.c.bf16 %v1441_v28, %v1343_v20 }
 0x22b   : > { %1535 = vst [vmem:[%s2568_s22 + $0x100] sm:$0xff] %v1487_v44 }
 0x22c   : > { %v1393_v47 = vpop.f32.mrf.mxu2  ;;  %v1298_v34 = vpop.f32.mrf.mxu0 }
 0x22d   : > { %v1394_v31 = vadd.f32 %v1393_v47, %v2734_v56  ;;  %v1442_v48 = vpop.f32.mrf.mxu3  ;;  %v1347_v35 = vpop.f32.mrf.mxu1  ;;  %v1299_v36 = vadd.f32 %v1298_v34, %v2730_v4 }
 0x22f   : > { %v1443_v52 = vadd.f32 %v1442_v48, %v1394_v31  ;;  %v1348_v38 = vadd.f32 %v1347_v35, %v1299_v36 }
 0x231   : > { %v1490_v53 = vpack.c.bf16 %v1443_v52, %v1345_v49 }
 0x233   : > { %1538 = vst [vmem:[%s2568_s22 + $0x118] sm:$0xff] %v1490_v53 }
 0x234   : > { %v1396_v37 = vpop.f32.mrf.mxu2  ;;  %v1300_v41 = vpop.f32.mrf.mxu0 }
 0x235   : > { %v1397_v39 = vadd.f32 %v1396_v37, %v2734_v56  ;;  %v1445_v40 = vpop.f32.mrf.mxu3  ;;  %v1349_v45 = vpop.f32.mrf.mxu1  ;;  %v1301_v46 = vadd.f32 %v1300_v41, %v2730_v4 }
 0x237   : > { %v1446_v42 = vadd.f32 %v1445_v40, %v1397_v39  ;;  %v1350_v55 = vadd.f32 %v1349_v45, %v1301_v46 }
 0x239   : > { %v1493_v43 = vpack.c.bf16 %v1446_v42, %v1348_v38 }
 0x23b   : > { %1541 = vst [vmem:[%s2568_s22 + $0x130] sm:$0xff] %v1493_v43 }
 0x23c   : > { %v1398_v1 = vpop.f32.mrf.mxu2  ;;  %v1303_v54 = vpop.f32.mrf.mxu0 }
 0x23d   : > { %v1399_v50 = vadd.f32 %v1398_v1, %v2734_v56  ;;  %v1447_v51 = vpop.f32.mrf.mxu3  ;;  %v1304_v8 = vadd.f32 %v1303_v54, %v2730_v4  ;;  %v1352_v7 = vpop.f32.mrf.mxu1 }
 0x23f   : > { %v1448_v14 = vadd.f32 %v1447_v51, %v1399_v50  ;;  %v1353_v15 = vadd.f32 %v1352_v7, %v1304_v8 }
 0x241   : > { %v1496_v6 = vpack.c.bf16 %v1448_v14, %v1350_v55 }
 0x243   : > { %1544 = vst [vmem:[%s2568_s22 + $0x148] sm:$0xff] %v1496_v6 }
 0x244   : > { %v1401_v22 = vpop.f32.mrf.mxu2  ;;  %v1305_v60 = vpop.f32.mrf.mxu0 }
 0x245   : > { %v1402_v57 = vadd.f32 %v1401_v22, %v2734_v56  ;;  %v1450_v58 = vpop.f32.mrf.mxu3  ;;  %v1306_v62 = vadd.f32 %v1305_v60, %v2730_v4  ;;  %v1354_v16 = vpop.f32.mrf.mxu1 }
 0x247   : > { %v1451_v59 = vadd.f32 %v1450_v58, %v1402_v57  ;;  %v1355_v3 = vadd.f32 %v1354_v16, %v1306_v62 }
 0x249   : > { %v1499_v61 = vpack.c.bf16 %v1451_v59, %v1353_v15 }
 0x24b   : > { %1547 = vst [vmem:[%s2568_s22 + $0x160] sm:$0xff] %v1499_v61 }
 0x24c   : > { %v1403_v63 = vpop.f32.mrf.mxu2 }
 0x24d   : > { %v1404_v0 = vadd.f32 %v1403_v63, %v2734_v56  ;;  %v1452_v2 = vpop.f32.mrf.mxu3 }
 0x24f   : > { %v1453_v5 = vadd.f32 %v1452_v2, %v1404_v0 }
 0x251   : > { %v1502_v9 = vpack.c.bf16 %v1453_v5, %v1355_v3 }
 0x253   : > { %1550 = vst [vmem:[%s2568_s22 + $0x178] sm:$0xff] %v1502_v9 }
 0x254 PF: > { %p14_p4 = scmp.ge.s32.totalorder %s2409_s5, 4   ;;  %s2805_s12 = smov %s2324_s13 }
 0x255   : > { %s2806_s13 = smov %s2328_s14  ;;  %s2807_s14 = smov %s2420_s9 }
 0x256   : > { %s2808_s15 = smov %s2409_s5  ;;  %16 = sbr.rel (!%p14_p4) target bundleno = 4 (0x4), region = 80 }
 0x25b   :  { %1575 = vsyncpa [#allocation3], 1 }
 0x25c   :  { %1577 = vsyncpa [#allocation3 + $0x1], 1 }
 0x25d   :  { %1578 = vsyncpa [#allocation5], 1 }

// kernel: attention_m_forward.4
= control target key start
LH: loop header
LB: loop body
LE: loop exit
PB: predicated region body
PF: predicated region fallthrough
CT: control target
= control target key end

     0   :  { %s2120_s0 = inlined_call_operand.vmem [shape: bf16[256,768], index: 0, kind: input, shape index: {}, may-alias: {0,1,2}]   ;;  %s2121_s1 = inlined_call_operand.vmem [shape: bf16[256,768], index: 1, kind: input, shape index: {}, may-alias: {0,1,2}]   ;;  %s2122_s2 = inlined_call_operand.vmem [shape: bf16[256,768], index: 2, kind: input, shape index: {}, may-alias: {0,1,2}]   ;;  %s2123_s3 = inlined_call_operand.vmem [shape: bf16[256,256], index: 3, kind: output, shape index: {}]  }
   0x1   :  { %2125 = sst [smem:[#allocation7_spill]] %s2123_s3 }
   0x2   :  { %s1776_s12 = smov 0   ;;  %s1778_s13 = smov 0  }
   0x3   :  { %s1780_s14 = smov 0   ;;  %s1782_s15 = smov 0  }
   0x4   :  { %s1784_s16 = smov 0   ;;  %s1786_s17 = smov 0  }
   0x5   :  { %s1788_s18 = smov 0   ;;  %s1790_s19 = smov 0  }
   0x6   :  { %s1792_s20 = smov 0   ;;  %s1794_s21 = smov 0  }
   0x7   :  { %s1796_s22 = smov 0  }
   0x8 LB: > { %s28_s24 = sadd.s32 1, %s1746_s20  ;;  %s32_s25 = sadd.s32 1, %s1750_s21  ;;  %s1754_s22 = sphi %s1796_s22, %s13_s22   ;;  %s1750_s21 = sphi %s1794_s21, %s2143_s21   ;;  %s1746_s20 = sphi %s1792_s20, %s2142_s20   ;;  %s1742_s19 = sphi %s1790_s19, %s2141_s19   ;;  %s1738_s18 = sphi %s1788_s18, %s2140_s18   ;;  %s1734_s17 = sphi %s1786_s17, %s2139_s17   ;;  %s1730_s16 = sphi %s1784_s16, %s2138_s16   ;;  %s1726_s15 = sphi %s1782_s15, %s2137_s15   ;;  %s1722_s14 = sphi %s1780_s14, %s2136_s14   ;;  %s1718_s13 = sphi %s1778_s13, %s2135_s13   ;;  %s1714_s12 = sphi %s1776_s12, %s2134_s12  }
   0x9   : > { %p30_p0 = scmp.ge.s32.totalorder %s28_s24, 2  ;;  %s43_s26 = sadd.s32 1, %s1734_s17 }
   0xa   : > { %p50_p1 = scmp.ne.s32.totalorder %s1734_s17, %s1730_s16  ;;  %p51_p2 = scmp.eq.s32.totalorder %s1754_s22, 0 }
   0xb   : > { %s2145_s24 = smov (%p30_p0, %s28_s24), 0  ;;  %s2147_s25 = smov (!%p30_p0, %s32_s25), %s1750_s21 }
   0xc   : > { %s39_s27 = ssub.s32 %s1746_s20, %s2145_s24  ;;  %p34_p3 = scmp.ge.s32.totalorder %s2147_s25, 2 }
   0xd   : > { %s66_s28 = sadd.s32 2, %s1746_s20  ;;  %p1849_p4 = por %p51_p2, %p50_p1 }
   0xe   : > { %s67_s30 = sadd.s32 2, %s2145_s24  ;;  %s2149_s25 = smov (%p34_p3, %s2147_s25), 0 }
   0xf   : > { %2127 = sst [smem:[#allocation6_spill]] %s2149_s25  ;;  %s69_s4 = ssub.s32 %s66_s28, %s67_s30 }
  0x10   : > { %s73_s5 = sadd.s32 1, %s1726_s15  ;;  %s38_s6 = ssub.s32 %s1750_s21, %s2149_s25 }
  0x11   : > { %p80_p5 = scmp.ne.s32.totalorder %s1726_s15, %s1722_s14  ;;  %s40_s7 = sor.u32 %s39_s27, %s38_s6 }
  0x12   : > { %s70_s8 = sor.u32 %s69_s4, %s38_s6  ;;  %p41_p6 = scmp.eq.s32.totalorder %s40_s7, 0 }
  0x13   : > { %p71_p7 = scmp.eq.s32.totalorder %s70_s8, 0  ;;  %p1863_p8 = por %p80_p5, %p51_p2 }
  0x14   : > { %s96_s10 = sadd.s32 4, %s1746_s20  ;;  %s97_s30 = sadd.s32 4, %s2145_s24 }
  0x15   : > { %s1869_s11 = scalar_select %p41_p6, %s1734_s17, %s43_s26  }
  0x16   : > { %s1872_s28 = scalar_select %p71_p7, %s1726_s15, %s73_s5  }
  0x17   : > { %s103_s23 = sadd.s32 1, %s1718_s13  ;;  %s99_s25 = ssub.s32 %s96_s10, %s97_s30 }
  0x18   : > { %p110_p9 = scmp.ne.s32.totalorder %s1718_s13, %s1714_s12  ;;  %s100_s27 = sor.u32 %s99_s25, %s38_s6 }
  0x19   : > { %s2129_s3 = sadd.s32 4294967295, %s1754_s22   ;;  %p101_p11 = scmp.eq.s32.totalorder %s100_s27, 0 }
  0x1a   : > { %p144_p10 = scmp.eq.s32.totalorder %s2129_s3, 3  ;;  %p1882_p12 = por %p110_p9, %p51_p2 }
  0x1b   : > { %s1894_s26 = scalar_select %p101_p11, %s1718_s13, %s103_s23  }
  0x1c   : > { %p1889_p13 = por %p144_p10, %p50_p1  ;;  %p1279_p0 = scmp.ge.s32.totalorder %s1754_s22, 4 }
  0x1e   : > { %166 = sbr.rel (%p1279_p0) target bundleno = 104 (0x68), region = 16 }
  0x23   : > { %169 = sbr.rel (!%p1849_p4) target bundleno = 58 (0x3a), region = 20  ;;  %s171_s3 = sand.u32 (%p1849_p4), 1, %s1734_s17  }
  0x24   : > { %s1515_s25 = smul.u32 (%p1849_p4), 96, %s1750_s21  ;;  %s1280_s5 = sshll.u32 (%p1849_p4), %s171_s3, 6 }
  0x25   : > { %s173_s23 = scalar_lea.vmem (%p1849_p4), [#allocation2], %s1280_s5 }
  0x26   : > { %s177_s6 = sadd.s32 (%p1849_p4), %s1746_s20, %s1515_s25 }
  0x27   : > { %s1283_s8 = sshll.u32 (%p1849_p4), %s177_s6, 2 }
  0x28   : > { %s1905_s27 = scalar_lea.vmem %s2120_s0, %s1283_s8 }
  0x29   : > { %v196_v0 = vld [vmem:[%s1905_s27] sm:$0xf]  ;;  %v198_v1 = vld [vmem:[%s1905_s27 + $0x18] sm:$0xf]  ;;  %v200_v2 = vld [vmem:[%s1905_s27 + $0x30] sm:$0xf] }
  0x2a   : > { %197 = vst [vmem:[%s173_s23] sm:$0xf] %v196_v0  ;;  %v202_v3 = vld [vmem:[%s1905_s27 + $0x48] sm:$0xf]  ;;  %v204_v4 = vld [vmem:[%s1905_s27 + $0x60] sm:$0xf] }
  0x2b   : > { %199 = vst [vmem:[%s173_s23 + $0x4] sm:$0xf] %v198_v1  ;;  %v206_v5 = vld [vmem:[%s1905_s27 + $0x78] sm:$0xf]  ;;  %v208_v6 = vld [vmem:[%s1905_s27 + $0x90] sm:$0xf] }
  0x2c   : > { %201 = vst [vmem:[%s173_s23 + $0x8] sm:$0xf] %v200_v2  ;;  %v210_v7 = vld [vmem:[%s1905_s27 + $0xa8] sm:$0xf]  ;;  %v212_v8 = vld [vmem:[%s1905_s27 + $0xc0] sm:$0xf] }
  0x2d   : > { %203 = vst [vmem:[%s173_s23 + $0xc] sm:$0xf] %v202_v3  ;;  %v214_v9 = vld [vmem:[%s1905_s27 + $0xd8] sm:$0xf]  ;;  %v216_v10 = vld [vmem:[%s1905_s27 + $0xf0] sm:$0xf] }
  0x2e   : > { %205 = vst [vmem:[%s173_s23 + $0x10] sm:$0xf] %v204_v4  ;;  %v218_v11 = vld [vmem:[%s1905_s27 + $0x108] sm:$0xf]  ;;  %v220_v12 = vld [vmem:[%s1905_s27 + $0x120] sm:$0xf] }
  0x2f   : > { %207 = vst [vmem:[%s173_s23 + $0x14] sm:$0xf] %v206_v5  ;;  %v222_v13 = vld [vmem:[%s1905_s27 + $0x138] sm:$0xf]  ;;  %v224_v14 = vld [vmem:[%s1905_s27 + $0x150] sm:$0xf] }
  0x30   : > { %209 = vst [vmem:[%s173_s23 + $0x18] sm:$0xf] %v208_v6  ;;  %v226_v15 = vld [vmem:[%s1905_s27 + $0x168] sm:$0xf] }
  0x31   : > { %211 = vst [vmem:[%s173_s23 + $0x1c] sm:$0xf] %v210_v7 }
  0x32   : > { %213 = vst [vmem:[%s173_s23 + $0x20] sm:$0xf] %v212_v8 }
  0x33   : > { %215 = vst [vmem:[%s173_s23 + $0x24] sm:$0xf] %v214_v9 }
  0x34   : > { %217 = vst [vmem:[%s173_s23 + $0x28] sm:$0xf] %v216_v10 }
  0x35   : > { %219 = vst [vmem:[%s173_s23 + $0x2c] sm:$0xf] %v218_v11 }
  0x36   : > { %221 = vst [vmem:[%s173_s23 + $0x30] sm:$0xf] %v220_v12 }
  0x37   : > { %223 = vst [vmem:[%s173_s23 + $0x34] sm:$0xf] %v222_v13 }
  0x38   : > { %225 = vst [vmem:[%s173_s23 + $0x38] sm:$0xf] %v224_v14 }
  0x39   : > { %227 = vst [vmem:[%s173_s23 + $0x3c] sm:$0xf] %v226_v15 }
  0x3a PF: > { %283 = sbr.rel (!%p1863_p8) target bundleno = 81 (0x51), region = 61  ;;  %s285_s29 = sand.u32 (%p1863_p8), 1, %s1726_s15  }
  0x3b   : > { %s1178_s3 = smul.u32 (%p1863_p8), 96, %s1750_s21  ;;  %s1284_s25 = sshll.u32 (%p1863_p8), %s285_s29, 6 }
  0x3c   : > { %s287_s9 = scalar_lea.vmem (%p1863_p8), [#allocation3], %s1284_s25 }
  0x3d   : > { %s1179_s5 = sadd.s32 (%p1863_p8), %s1746_s20, %s1178_s3 }
  0x3e   : > { %s1285_s6 = sshll.u32 (%p1863_p8), %s1179_s5, 2 }
  0x3f   : > { %s1931_s30 = scalar_lea.vmem %s2121_s1, %s1285_s6 }
  0x40   : > { %v1286_v16 = vld [vmem:[%s1931_s30 + $0x8] sm:$0xf]  ;;  %v1287_v17 = vld [vmem:[%s1931_s30 + $0x20] sm:$0xf]  ;;  %v1288_v18 = vld [vmem:[%s1931_s30 + $0x38] sm:$0xf] }
  0x41   : > { %311 = vst [vmem:[%s287_s9] sm:$0xf] %v1286_v16  ;;  %v1289_v19 = vld [vmem:[%s1931_s30 + $0x50] sm:$0xf]  ;;  %v1290_v20 = vld [vmem:[%s1931_s30 + $0x68] sm:$0xf] }
  0x42   : > { %313 = vst [vmem:[%s287_s9 + $0x4] sm:$0xf] %v1287_v17  ;;  %v1291_v21 = vld [vmem:[%s1931_s30 + $0x80] sm:$0xf]  ;;  %v1292_v22 = vld [vmem:[%s1931_s30 + $0x98] sm:$0xf] }
  0x43   : > { %315 = vst [vmem:[%s287_s9 + $0x8] sm:$0xf] %v1288_v18  ;;  %v1293_v23 = vld [vmem:[%s1931_s30 + $0xb0] sm:$0xf]  ;;  %v1294_v24 = vld [vmem:[%s1931_s30 + $0xc8] sm:$0xf] }
  0x44   : > { %317 = vst [vmem:[%s287_s9 + $0xc] sm:$0xf] %v1289_v19  ;;  %v1295_v25 = vld [vmem:[%s1931_s30 + $0xe0] sm:$0xf]  ;;  %v1296_v26 = vld [vmem:[%s1931_s30 + $0xf8] sm:$0xf] }
  0x45   : > { %319 = vst [vmem:[%s287_s9 + $0x10] sm:$0xf] %v1290_v20  ;;  %v1297_v27 = vld [vmem:[%s1931_s30 + $0x110] sm:$0xf]  ;;  %v1298_v28 = vld [vmem:[%s1931_s30 + $0x128] sm:$0xf] }
  0x46   : > { %321 = vst [vmem:[%s287_s9 + $0x14] sm:$0xf] %v1291_v21  ;;  %v1299_v29 = vld [vmem:[%s1931_s30 + $0x140] sm:$0xf]  ;;  %v1300_v30 = vld [vmem:[%s1931_s30 + $0x158] sm:$0xf] }
  0x47   : > { %323 = vst [vmem:[%s287_s9 + $0x18] sm:$0xf] %v1292_v22  ;;  %v1301_v31 = vld [vmem:[%s1931_s30 + $0x170] sm:$0xf] }
  0x48   : > { %325 = vst [vmem:[%s287_s9 + $0x1c] sm:$0xf] %v1293_v23 }
  0x49   : > { %327 = vst [vmem:[%s287_s9 + $0x20] sm:$0xf] %v1294_v24 }
  0x4a   : > { %329 = vst [vmem:[%s287_s9 + $0x24] sm:$0xf] %v1295_v25 }
  0x4b   : > { %331 = vst [vmem:[%s287_s9 + $0x28] sm:$0xf] %v1296_v26 }
  0x4c   : > { %333 = vst [vmem:[%s287_s9 + $0x2c] sm:$0xf] %v1297_v27 }
  0x4d   : > { %335 = vst [vmem:[%s287_s9 + $0x30] sm:$0xf] %v1298_v28 }
  0x4e   : > { %337 = vst [vmem:[%s287_s9 + $0x34] sm:$0xf] %v1299_v29 }
  0x4f   : > { %339 = vst [vmem:[%s287_s9 + $0x38] sm:$0xf] %v1300_v30 }
  0x50   : > { %341 = vst [vmem:[%s287_s9 + $0x3c] sm:$0xf] %v1301_v31 }
  0x51 PF: > { %397 = sbr.rel (!%p1882_p12) target bundleno = 104 (0x68), region = 102  ;;  %s399_s27 = sand.u32 (%p1882_p12), 1, %s1718_s13  }
  0x52   : > { %s1185_s23 = smul.u32 (%p1882_p12), 96, %s1750_s21  ;;  %s1302_s29 = sshll.u32 (%p1882_p12), %s399_s27, 6 }
  0x53   : > { %s401_s4 = scalar_lea.vmem (%p1882_p12), [#allocation4], %s1302_s29 }
  0x54   : > { %s1186_s3 = sadd.s32 (%p1882_p12), %s1746_s20, %s1185_s23 }
  0x55   : > { %s1303_s25 = sshll.u32 (%p1882_p12), %s1186_s3, 2 }
  0x56   : > { %s1957_s8 = scalar_lea.vmem %s2122_s2, %s1303_s25 }
  0x57   : > { %v1304_v32 = vld [vmem:[%s1957_s8 + $0x10] sm:$0xf]  ;;  %v1305_v33 = vld [vmem:[%s1957_s8 + $0x28] sm:$0xf]  ;;  %v1306_v34 = vld [vmem:[%s1957_s8 + $0x40] sm:$0xf] }
  0x58   : > { %425 = vst [vmem:[%s401_s4] sm:$0xf] %v1304_v32  ;;  %v1307_v35 = vld [vmem:[%s1957_s8 + $0x58] sm:$0xf]  ;;  %v1308_v36 = vld [vmem:[%s1957_s8 + $0x70] sm:$0xf] }
  0x59   : > { %427 = vst [vmem:[%s401_s4 + $0x4] sm:$0xf] %v1305_v33  ;;  %v1309_v37 = vld [vmem:[%s1957_s8 + $0x88] sm:$0xf]  ;;  %v1310_v38 = vld [vmem:[%s1957_s8 + $0xa0] sm:$0xf] }
  0x5a   : > { %429 = vst [vmem:[%s401_s4 + $0x8] sm:$0xf] %v1306_v34  ;;  %v1311_v39 = vld [vmem:[%s1957_s8 + $0xb8] sm:$0xf]  ;;  %v1312_v40 = vld [vmem:[%s1957_s8 + $0xd0] sm:$0xf] }
  0x5b   : > { %431 = vst [vmem:[%s401_s4 + $0xc] sm:$0xf] %v1307_v35  ;;  %v1313_v41 = vld [vmem:[%s1957_s8 + $0xe8] sm:$0xf]  ;;  %v1314_v42 = vld [vmem:[%s1957_s8 + $0x100] sm:$0xf] }
  0x5c   : > { %433 = vst [vmem:[%s401_s4 + $0x10] sm:$0xf] %v1308_v36  ;;  %v1315_v43 = vld [vmem:[%s1957_s8 + $0x118] sm:$0xf]  ;;  %v1316_v44 = vld [vmem:[%s1957_s8 + $0x130] sm:$0xf] }
  0x5d   : > { %435 = vst [vmem:[%s401_s4 + $0x14] sm:$0xf] %v1309_v37  ;;  %v1317_v45 = vld [vmem:[%s1957_s8 + $0x148] sm:$0xf]  ;;  %v1318_v46 = vld [vmem:[%s1957_s8 + $0x160] sm:$0xf] }
  0x5e   : > { %437 = vst [vmem:[%s401_s4 + $0x18] sm:$0xf] %v1310_v38  ;;  %v1319_v47 = vld [vmem:[%s1957_s8 + $0x178] sm:$0xf] }
  0x5f   : > { %439 = vst [vmem:[%s401_s4 + $0x1c] sm:$0xf] %v1311_v39 }
  0x60   : > { %441 = vst [vmem:[%s401_s4 + $0x20] sm:$0xf] %v1312_v40 }
  0x61   : > { %443 = vst [vmem:[%s401_s4 + $0x24] sm:$0xf] %v1313_v41 }
  0x62   : > { %445 = vst [vmem:[%s401_s4 + $0x28] sm:$0xf] %v1314_v42 }
  0x63   : > { %447 = vst [vmem:[%s401_s4 + $0x2c] sm:$0xf] %v1315_v43 }
  0x64   : > { %449 = vst [vmem:[%s401_s4 + $0x30] sm:$0xf] %v1316_v44 }
  0x65   : > { %451 = vst [vmem:[%s401_s4 + $0x34] sm:$0xf] %v1317_v45 }
  0x66   : > { %453 = vst [vmem:[%s401_s4 + $0x38] sm:$0xf] %v1318_v46 }
  0x67   : > { %455 = vst [vmem:[%s401_s4 + $0x3c] sm:$0xf] %v1319_v47 }
  0x68 PF: > { %p1320_p1 = scmp.ge.s32.totalorder %s1754_s22, 1  ;;  %p510_p2 = scmp.lt.s32.totalorder %s1754_s22, 5 }
  0x6a   : > { %p511_p3 = pnand %p1320_p1, %p510_p2 }
  0x6b   : > { %s524_s10 = sand.u32 (!%p511_p3), 1, %s1722_s14   ;;  %s517_s14 = sand.u32 (!%p511_p3), 1, %s1730_s16  }
  0x6c   : > { %514 = sbr.rel (%p511_p3) target bundleno = 665 (0x299), region = 143  ;;  %s1322_s30 = sshll.u32 (!%p511_p3), %s524_s10, 6 }
  0x6d   : > { %s526_s9 = scalar_lea.vmem (!%p511_p3), [#allocation3], %s1322_s30  ;;  %s1979_s27 = sshll.u32 (!%p511_p3), %s517_s14, 6 }
  0x6e   : > { %s519_s23 = scalar_lea.vmem (!%p511_p3), [#allocation2], %s1979_s27  ;;  %s531_s16 = sand.u32 (!%p511_p3), 1, %s1714_s12  }
  0x6f   : > { %s1323_s29 = sshll.u32 (!%p511_p3), %s531_s16, 6  ;;  %s2054_s12 = scalar_lea.vmem (!%p511_p3), [#allocation5], %s1979_s27 }
  0x70   : > { %s2012_s3 = scalar_lea.vmem (!%p511_p3), [#allocation4], %s1323_s29 }
  0x71   : > { %v1442_v48 = vld [vmem:[%s526_s9 + $0x38] sm:$0xff]  ;;  %v1441_v49 = vld [vmem:[%s526_s9 + $0x30] sm:$0xff]  ;;  %v1440_v50 = vld [vmem:[%s526_s9 + $0x28] sm:$0xff]  ;;  %s1451_s25 = sshll.u32 (%p1889_p13), %s1742_s19, 5  ;;  %s2132_s7 = sld [smem:[#allocation7_spill]] (%p1889_p13) }
  0x72   : > { %697 = vmatpush.bf16.xpose.msra.mxu0 %v1442_v48  ;;  %1499 = vmatpush.bf16.xpose.msra.mxu2 %v1442_v48  ;;  %v1439_v51 = vld [vmem:[%s526_s9 + $0x20] sm:$0xff]  ;;  %v1438_v52 = vld [vmem:[%s526_s9 + $0x18] sm:$0xff]  ;;  %v1437_v53 = vld [vmem:[%s526_s9 + $0x10] sm:$0xff]  ;;  %s1053_s5 = sadd.s32 (%p1889_p13), %s1738_s18, %s1451_s25 }
  0x73   : > { %v1436_v54 = vld [vmem:[%s526_s9 + $0x8] sm:$0xff]  ;;  %v1435_v55 = vld [vmem:[%s526_s9] sm:$0xff]  ;;  %v1430_v57 = vld [vmem:[%s519_s23 + $0x18] sm:$0xff]  ;;  %s1424_s6 = sshll.u32 (%p1889_p13), %s1053_s5, 2 }
  0x74   : > { %v1427_v56 = vld [vmem:[%s519_s23] sm:$0xff]  ;;  %v1428_v58 = vld [vmem:[%s519_s23 + $0x8] sm:$0xff]  ;;  %v1429_v60 = vld [vmem:[%s519_s23 + $0x10] sm:$0xff] }
  0x75   : > { %v1431_v59 = vld [vmem:[%s519_s23 + $0x20] sm:$0xff]  ;;  %v1432_v61 = vld [vmem:[%s519_s23 + $0x28] sm:$0xff]  ;;  %v1433_v62 = vld [vmem:[%s519_s23 + $0x30] sm:$0xff] }
  0x76   : > { %v1434_v63 = vld [vmem:[%s519_s23 + $0x38] sm:$0xff]  ;;  %v1449_v13 = vld [vmem:[%s2012_s3 + $0x30] sm:$0xff]  ;;  %v1448_v14 = vld [vmem:[%s2012_s3 + $0x28] sm:$0xff] }
  0x77   : > { %v1450_v12 = vld [vmem:[%s2012_s3 + $0x38] sm:$0xff]  ;;  %v1447_v19 = vld [vmem:[%s2012_s3 + $0x20] sm:$0xff]  ;;  %v1445_v21 = vld [vmem:[%s2012_s3 + $0x10] sm:$0xff]  ;;  %s1055_s10 = scalar_lea.vmem (%p1889_p13), %s2132_s7, %s1424_s6 }
  0x78   : > { %930 = vmatpush.bf16.msra.mxu1 %v1450_v12  ;;  %1507 = vmatpush.bf16.msra.mxu3 %v1450_v12  ;;  %v1446_v20 = vld [vmem:[%s2012_s3 + $0x18] sm:$0xff]  ;;  %v1444_v22 = vld [vmem:[%s2012_s3 + $0x8] sm:$0xff]  ;;  %v1443_v23 = vld [vmem:[%s2012_s3] sm:$0xff] }
  0x7a   : > { %698 = vmatpush.bf16.xpose.msra.mxu0 %v1441_v49  ;;  %1500 = vmatpush.bf16.xpose.msra.mxu2 %v1441_v49 }
  0x7c   : > { %931 = vmatpush.bf16.msra.mxu1 %v1449_v13  ;;  %1508 = vmatpush.bf16.msra.mxu3 %v1449_v13 }
  0x80   : > { %932 = vmatpush.bf16.msra.mxu1 %v1448_v14  ;;  %1509 = vmatpush.bf16.msra.mxu3 %v1448_v14 }
  0x82   : > { %699 = vmatpush.bf16.xpose.msra.mxu0 %v1440_v50  ;;  %1501 = vmatpush.bf16.xpose.msra.mxu2 %v1440_v50 }
  0x84   : > { %933 = vmatpush.bf16.msra.mxu1 %v1447_v19  ;;  %1510 = vmatpush.bf16.msra.mxu3 %v1447_v19 }
  0x88   : > { %934 = vmatpush.bf16.msra.mxu1 %v1446_v20  ;;  %1511 = vmatpush.bf16.msra.mxu3 %v1446_v20 }
  0x8a   : > { %700 = vmatpush.bf16.xpose.msra.mxu0 %v1439_v51  ;;  %1502 = vmatpush.bf16.xpose.msra.mxu2 %v1439_v51 }
  0x8c   : > { %935 = vmatpush.bf16.msra.mxu1 %v1445_v21  ;;  %1512 = vmatpush.bf16.msra.mxu3 %v1445_v21 }
  0x90   : > { %936 = vmatpush.bf16.msra.mxu1 %v1444_v22  ;;  %1513 = vmatpush.bf16.msra.mxu3 %v1444_v22 }
  0x92   : > { %701 = vmatpush.bf16.xpose.msra.mxu0 %v1438_v52  ;;  %1503 = vmatpush.bf16.xpose.msra.mxu2 %v1438_v52 }
  0x94   : > { %937 = vmatpush.bf16.msra.mxu1 %v1443_v23  ;;  %1514 = vmatpush.bf16.msra.mxu3 %v1443_v23 }
  0x9a   : > { %702 = vmatpush.bf16.xpose.msra.mxu0 %v1437_v53  ;;  %1504 = vmatpush.bf16.xpose.msra.mxu2 %v1437_v53 }
  0xa2   : > { %703 = vmatpush.bf16.xpose.msra.mxu0 %v1436_v54  ;;  %1505 = vmatpush.bf16.xpose.msra.mxu2 %v1436_v54 }
  0xaa   : > { %704 = vmatpush.bf16.xpose.msra.mxu0 %v1435_v55  ;;  %1506 = vmatpush.bf16.xpose.msra.mxu2 %v1435_v55 }
  0xb1   : > { %705 = vmatmul.bf16.vlgmr.msra.gmra.mxu0 %v1427_v56  ;;  %720 = vmatmul.bf16.vlgmr.msra.gmra.mxu2 %v1430_v57 }
  0xc1   : > { %710 = vmatmul.bf16.gmra.mxu0 %v1428_v58  ;;  %725 = vmatmul.bf16.gmra.mxu2 %v1431_v59 }
  0xd1   : > { %715 = vmatmul.bf16.gmra.mxu0 %v1429_v60  ;;  %730 = vmatmul.bf16.gmra.mxu2 %v1432_v61 }
  0xe1   : > { %735 = vmatmul.bf16.gmra.mxu2 %v1433_v62 }
  0xf1   : > { %740 = vmatmul.bf16.gmra.mxu2 %v1434_v63 }
 0x12e   : > { %v706_v0 = vpop.f32.mrf.mxu0 }
 0x12f   : > { %746 = vmax.xlane.f32.xlu0 %v706_v0 }
 0x134   : > { %v1982_v1 = vpop.f32.mrf.mxu2 }
 0x136   : > { %v1984_v2 = vpop.f32.mrf.mxu0 }
 0x137   : > { %748 = vmax.xlane.f32.xlu0 %v1984_v2 }
 0x13c   : > { %v1987_v3 = vpop.f32.mrf.mxu2 }
 0x13e   : > { %v1989_v4 = vpop.f32.mrf.mxu0 }
 0x13f   : > { %750 = vmax.xlane.f32.xlu1 %v1989_v4 }
 0x144   : > { %v1992_v5 = vpop.f32.mrf.mxu2 }
 0x146   : > { %v1994_v6 = vpop.f32.mrf.mxu0 }
 0x147   : > { %752 = vmax.xlane.f32.xlu1 %v1994_v6 }
 0x14c   : > { %v1997_v7 = vpop.f32.mrf.mxu2 }
 0x14e   : > { %v1999_v8 = vpop.f32.mrf.mxu0 }
 0x14f   : > { %754 = vmax.xlane.f32.xlu0 %v1999_v8 }
 0x154   : > { %v2002_v9 = vpop.f32.mrf.mxu2 }
 0x155   : > { %766 = vmax.xlane.f32.xlu2 %v2002_v9 }
 0x156   : > { %v2006_v10 = vpop.f32.mrf.mxu0 }
 0x157   : > { %756 = vmax.xlane.f32.xlu1 %v2006_v10 }
 0x15c   : > { %v2009_v11 = vpop.f32.mrf.mxu2 }
 0x15d   : > { %768 = vmax.xlane.f32.xlu2 %v2009_v11 }
 0x15f   : > { %758 = vmax.xlane.f32.xlu1 %v1982_v1 }
 0x164   : > { %v2018_v15 = vpop.f32.mrf.mxu2 }
 0x165   : > { %770 = vmax.xlane.f32.xlu2 %v2018_v15 }
 0x16c   : > { %v2021_v16 = vpop.f32.mrf.mxu2 }
 0x16d   : > { %760 = vmax.xlane.f32.xlu2 %v1987_v3  ;;  %772 = vmax.xlane.f32.xlu0 %v2021_v16 }
 0x174   : > { %v2025_v17 = vpop.f32.mrf.mxu2 }
 0x175   : > { %762 = vmax.xlane.f32.xlu2 %v1992_v5  ;;  %774 = vmax.xlane.f32.xlu0 %v2025_v17 }
 0x17c   : > { %v2029_v18 = vpop.f32.mrf.mxu2 }
 0x17d   : > { %764 = vmax.xlane.f32.xlu0 %v1997_v7  ;;  %776 = vmax.xlane.f32.xlu1 %v2029_v18 }
 0x1a2   : > { %v747_v24 = vpop.xlane.xlu0 %746 }
 0x1a3   : > { %v778_v25 = vsub.f32 %v706_v0, %v747_v24 }
 0x1a5   : > { %v794_v26 = vmul.f32 1.442695, %v778_v25 }
 0x1a7   : > { %1604 = vpow2.f32 %v794_v26 }
 0x1aa   : > { %v749_v27 = vpop.xlane.xlu0 %748 }
 0x1ab   : > { %v779_v28 = vsub.f32 %v1984_v2, %v749_v27 }
 0x1ad   : > { %v1605_v29 = vpop.eup %1604  ;;  %v796_v30 = vmul.f32 1.442695, %v779_v28 }
 0x1ae   : > { %826 = vadd.xlane.f32.xlu1 %v1605_v29 }
 0x1af   : > { %1606 = vpow2.f32 %v796_v30 }
 0x1b2   : > { %v751_v31 = vpop.xlane.xlu1 %750 }
 0x1b3   : > { %v780_v32 = vsub.f32 %v1989_v4, %v751_v31 }
 0x1b5   : > { %v1607_v33 = vpop.eup %1606  ;;  %v798_v34 = vmul.f32 1.442695, %v780_v32 }
 0x1b6   : > { %828 = vadd.xlane.f32.xlu2 %v1607_v33  ;;  %v858_v35 = vpack.c.bf16 %v1607_v33, %v1605_v29 }
 0x1b7   : > { %1608 = vpow2.f32 %v798_v34 }
 0x1b8   : > { %938 = vmatmul.bf16.vlgmr.msra.gmra.mxu1 %v858_v35 }
 0x1ba   : > { %v753_v36 = vpop.xlane.xlu1 %752 }
 0x1bb   : > { %v781_v37 = vsub.f32 %v1994_v6, %v753_v36 }
 0x1bd   : > { %v1609_v38 = vpop.eup %1608  ;;  %v800_v39 = vmul.f32 1.442695, %v781_v37 }
 0x1be   : > { %830 = vadd.xlane.f32.xlu0 %v1609_v38 }
 0x1bf   : > { %1610 = vpow2.f32 %v800_v39 }
 0x1c2   : > { %v755_v40 = vpop.xlane.xlu0 %754 }
 0x1c3   : > { %v782_v42 = vsub.f32 %v1999_v8, %v755_v40 }
 0x1c5   : > { %v1611_v41 = vpop.eup %1610  ;;  %v802_v45 = vmul.f32 1.442695, %v782_v42 }
 0x1c6   : > { %v859_v43 = vpack.c.bf16 %v1611_v41, %v1609_v38 }
 0x1c7   : > { %1612 = vpow2.f32 %v802_v45 }
 0x1c8   : > { %v767_v44 = vpop.xlane.xlu2 %766  ;;  %943 = vmatmul.bf16.gmra.mxu1 %v859_v43 }
 0x1c9   : > { %v788_v48 = vsub.f32 %v2002_v9, %v767_v44 }
 0x1ca   : > { %v757_v46 = vpop.xlane.xlu1 %756 }
 0x1cb   : > { %v783_v47 = vsub.f32 %v2006_v10, %v757_v46  ;;  %v814_v50 = vmul.f32 1.442695, %v788_v48 }
 0x1cd   : > { %v804_v49 = vmul.f32 1.442695, %v783_v47  ;;  %v1613_v56 = vpop.eup %1612 }
 0x1cf   : > { %1614 = vpow2.f32 %v804_v49 }
 0x1d0   : > { %v769_v51 = vpop.xlane.xlu2 %768  ;;  %1616 = vpow2.f32 %v814_v50 }
 0x1d1   : > { %v789_v52 = vsub.f32 %v2009_v11, %v769_v51 }
 0x1d2   : > { %v759_v53 = vpop.xlane.xlu1 %758 }
 0x1d3   : > { %v816_v54 = vmul.f32 1.442695, %v789_v52  ;;  %v784_v55 = vsub.f32 %v1982_v1, %v759_v53 }
 0x1d5   : > { %v1615_v57 = vpop.eup %1614  ;;  %1618 = vpow2.f32 %v816_v54  ;;  %v806_v58 = vmul.f32 1.442695, %v784_v55 }
 0x1d6   : > { %v860_v59 = vpack.c.bf16 %v1615_v57, %v1613_v56  ;;  %v1617_v61 = vpop.eup %1616 }
 0x1d7   : > { %1620 = vpow2.f32 %v806_v58 }
 0x1d8   : > { %v771_v60 = vpop.xlane.xlu2 %770  ;;  %948 = vmatmul.bf16.gmra.mxu1 %v860_v59 }
 0x1d9   : > { %v790_v63 = vsub.f32 %v2018_v15, %v771_v60 }
 0x1db   : > { %v1619_v62 = vpop.eup %1618  ;;  %v818_v4 = vmul.f32 1.442695, %v790_v63 }
 0x1dc   : > { %v863_v0 = vpack.c.bf16 %v1619_v62, %v1617_v61 }
 0x1dd   : > { %v1621_v2 = vpop.eup %1620  ;;  %1622 = vpow2.f32 %v818_v4 }
 0x1de   : > { %963 = vmatmul.bf16.vlgmr.msra.gmra.mxu3 %v863_v0  ;;  %838 = vadd.xlane.f32.xlu1 %v1621_v2 }
 0x1e0   : > { %v761_v6 = vpop.xlane.xlu2 %760  ;;  %v773_v1 = vpop.xlane.xlu0 %772 }
 0x1e1   : > { %v785_v8 = vsub.f32 %v1987_v3, %v761_v6  ;;  %v791_v9 = vsub.f32 %v2021_v16, %v773_v1 }
 0x1e3   : > { %v808_v10 = vmul.f32 1.442695, %v785_v8  ;;  %v820_v11 = vmul.f32 1.442695, %v791_v9  ;;  %v1623_v15 = vpop.eup %1622 }
 0x1e5   : > { %1624 = vpow2.f32 %v808_v10 }
 0x1e6   : > { %1626 = vpow2.f32 %v820_v11  ;;  %832 = vadd.xlane.f32.xlu1 %v1611_v41 }
 0x1e8   : > { %v763_v12 = vpop.xlane.xlu2 %762  ;;  %v775_v13 = vpop.xlane.xlu0 %774 }
 0x1e9   : > { %v786_v14 = vsub.f32 %v1992_v5, %v763_v12  ;;  %v792_v22 = vsub.f32 %v2025_v17, %v775_v13 }
 0x1eb   : > { %v1625_v19 = vpop.eup %1624  ;;  %v810_v20 = vmul.f32 1.442695, %v786_v14  ;;  %v822_v23 = vmul.f32 1.442695, %v792_v22 }
 0x1ec   : > { %v1627_v21 = vpop.eup %1626  ;;  %840 = vadd.xlane.f32.xlu2 %v1625_v19  ;;  %v861_v3 = vpack.c.bf16 %v1625_v19, %v1621_v2 }
 0x1ed   : > { %1628 = vpow2.f32 %v810_v20  ;;  %v864_v16 = vpack.c.bf16 %v1627_v21, %v1623_v15 }
 0x1ee   : > { %953 = vmatmul.bf16.gmra.mxu1 %v861_v3  ;;  %1630 = vpow2.f32 %v822_v23 }
 0x1ef   : > { %968 = vmatmul.bf16.gmra.mxu3 %v864_v16 }
 0x1f0   : > { %v765_v24 = vpop.xlane.xlu0 %764  ;;  %v777_v25 = vpop.xlane.xlu1 %776 }
 0x1f1   : > { %v787_v26 = vsub.f32 %v1997_v7, %v765_v24  ;;  %v793_v27 = vsub.f32 %v2029_v18, %v777_v25 }
 0x1f3   : > { %v1629_v5 = vpop.eup %1628  ;;  %v812_v28 = vmul.f32 1.442695, %v787_v26  ;;  %v824_v29 = vmul.f32 1.442695, %v793_v27 }
 0x1f4   : > { %842 = vadd.xlane.f32.xlu0 %v1629_v5  ;;  %834 = vadd.xlane.f32.xlu2 %v1613_v56  ;;  %v1631_v17 = vpop.eup %1630 }
 0x1f5   : > { %1632 = vpow2.f32 %v812_v28 }
 0x1f6   : > { %1634 = vpow2.f32 %v824_v29 }
 0x1fb   : > { %v1633_v30 = vpop.eup %1632 }
 0x1fc   : > { %v1635_v31 = vpop.eup %1634  ;;  %846 = vadd.xlane.f32.xlu2 %v1617_v61  ;;  %836 = vadd.xlane.f32.xlu0 %v1615_v57  ;;  %v862_v32 = vpack.c.bf16 %v1633_v30, %v1629_v5 }
 0x1fd   : > { %844 = vadd.xlane.f32.xlu1 %v1633_v30  ;;  %v865_v33 = vpack.c.bf16 %v1635_v31, %v1631_v17 }
 0x1fe   : > { %958 = vmatmul.bf16.gmra.mxu1 %v862_v32 }
 0x1ff   : > { %973 = vmatmul.bf16.gmra.mxu3 %v865_v33 }
 0x204   : > { %852 = vadd.xlane.f32.xlu2 %v1627_v21  ;;  %848 = vadd.xlane.f32.xlu0 %v1619_v62 }
 0x205   : > { %850 = vadd.xlane.f32.xlu1 %v1623_v15 }
 0x20c   : > { %854 = vadd.xlane.f32.xlu0 %v1631_v17 }
 0x20d   : > { %856 = vadd.xlane.f32.xlu1 %v1635_v31 }
 0x221   : > { %v827_v7 = vpop.xlane.xlu1 %826 }
 0x222   : > { %1636 = vrcp.f32 %v827_v7 }
 0x228   : > { %v1637_v35 = vpop.eup %1636 }
 0x229   : > { %v829_v18 = vpop.xlane.xlu2 %828 }
 0x22a   : > { %1638 = vrcp.f32 %v829_v18 }
 0x230   : > { %v1639_v36 = vpop.eup %1638 }
 0x231   : > { %v831_v44 = vpop.xlane.xlu0 %830 }
 0x232   : > { %1640 = vrcp.f32 %v831_v44 }
 0x235   : > { %v939_v34 = vpop.f32.mrf.mxu1 }
 0x236   : > { %v995_v38 = vmul.f32 %v1637_v35, %v939_v34 }
 0x238   : > { %v1641_v47 = vpop.eup %1640 }
 0x23d   : > { %v941_v37 = vpop.f32.mrf.mxu1 }
 0x23e   : > { %v996_v39 = vmul.f32 %v1639_v36, %v941_v37 }
 0x240   : > { %v1455_v40 = vpack.c.bf16 %v996_v39, %v995_v38 }
 0x242   : > { %1456 = vst [vmem:[%s2054_s12] sm:$0xff] %v1455_v40  }
 0x245   : > { %v944_v41 = vpop.f32.mrf.mxu1 }
 0x246   : > { %v997_v50 = vmul.f32 %v1641_v47, %v944_v41 }
 0x249   : > { %v1072_v40 = vld [vmem:[%s2054_s12] sm:$0xf] (%p1889_p13)  ;;  %v1074_v41 = vld [vmem:[%s2054_s12 + $0x4] sm:$0xf] (%p1889_p13) }
 0x24a   : > { %1073 = vst [vmem:[%s1055_s10] sm:$0xf] (%p1889_p13), %v1072_v40 }
 0x24b   : > { %1075 = vst [vmem:[%s1055_s10 + $0x8] sm:$0xf] (%p1889_p13), %v1074_v41 }
 0x24d   : > { %v946_v42 = vpop.f32.mrf.mxu1 }
 0x251   : > { %v839_v43 = vpop.xlane.xlu1 %838 }
 0x255   : > { %v949_v45 = vpop.f32.mrf.mxu1 }
 0x259   : > { %v833_v46 = vpop.xlane.xlu1 %832 }
 0x25a   : > { %1642 = vrcp.f32 %v833_v46 }
 0x25b   : > { %1644 = vrcp.f32 %v839_v43 }
 0x25d   : > { %v951_v54 = vpop.f32.mrf.mxu1 }
 0x25f   : > { %v841_v48 = vpop.xlane.xlu2 %840 }
 0x260   : > { %v1643_v49 = vpop.eup %1642  ;;  %1646 = vrcp.f32 %v841_v48 }
 0x261   : > { %v998_v51 = vmul.f32 %v1643_v49, %v946_v42  ;;  %v964_v52 = vpop.f32.mrf.mxu3  ;;  %v1645_v62 = vpop.eup %1644 }
 0x263   : > { %v1460_v53 = vpack.c.bf16 %v998_v51, %v997_v50 }
 0x265   : > { %1492 = vst [vmem:[%s2054_s12 + $0x8] sm:$0xff] %v1460_v53  }
 0x266   : > { %v1647_v0 = vpop.eup %1646 }
 0x267   : > { %v835_v55 = vpop.xlane.xlu2 %834  ;;  %v843_v56 = vpop.xlane.xlu0 %842 }
 0x268   : > { %1648 = vrcp.f32 %v835_v55 }
 0x269   : > { %v966_v57 = vpop.f32.mrf.mxu3 }
 0x26b   : > { %v954_v58 = vpop.f32.mrf.mxu1 }
 0x26c   : > { %v1001_v4 = vmul.f32 %v1645_v62, %v954_v58  ;;  %v1076_v42 = vld [vmem:[%s2054_s12 + $0x8] sm:$0xf] (%p1889_p13)  ;;  %v1078_v43 = vld [vmem:[%s2054_s12 + $0xc] sm:$0xf] (%p1889_p13) }
 0x26d   : > { %1077 = vst [vmem:[%s1055_s10 + $0x10] sm:$0xf] (%p1889_p13), %v1076_v42 }
 0x26e   : > { %v1649_v1 = vpop.eup %1648  ;;  %1079 = vst [vmem:[%s1055_s10 + $0x18] sm:$0xf] (%p1889_p13), %v1078_v43 }
 0x26f   : > { %v847_v59 = vpop.xlane.xlu2 %846  ;;  %v837_v60 = vpop.xlane.xlu0 %836  ;;  %v999_v12 = vmul.f32 %v1649_v1, %v949_v45 }
 0x270   : > { %v845_v61 = vpop.xlane.xlu1 %844  ;;  %1650 = vrcp.f32 %v837_v60 }
 0x271   : > { %1652 = vrcp.f32 %v847_v59 }
 0x272   : > { %v969_v63 = vpop.f32.mrf.mxu3 }
 0x273   : > { %v956_v2 = vpop.f32.mrf.mxu1 }
 0x274   : > { %v1002_v6 = vmul.f32 %v1647_v0, %v956_v2 }
 0x276   : > { %v1470_v8 = vpack.c.bf16 %v1002_v6, %v1001_v4  ;;  %v1651_v9 = vpop.eup %1650 }
 0x277   : > { %v853_v10 = vpop.xlane.xlu2 %852  ;;  %v849_v11 = vpop.xlane.xlu0 %848  ;;  %v1000_v13 = vmul.f32 %v1651_v9, %v951_v54 }
 0x278   : > { %1494 = vst [vmem:[%s2054_s12 + $0x18] sm:$0xff] %v1470_v8   ;;  %1654 = vrcp.f32 %v853_v10  ;;  %v851_v14 = vpop.xlane.xlu1 %850  ;;  %v1653_v21 = vpop.eup %1652 }
 0x279   : > { %1656 = vrcp.f32 %v849_v11  ;;  %v1465_v15 = vpack.c.bf16 %v1000_v13, %v999_v12  ;;  %v1005_v25 = vmul.f32 %v1653_v21, %v964_v52 }
 0x27a   : > { %1658 = vrcp.f32 %v851_v14  ;;  %v971_v19 = vpop.f32.mrf.mxu3 }
 0x27b   : > { %v959_v20 = vpop.f32.mrf.mxu1  ;;  %1660 = vrcp.f32 %v843_v56  ;;  %1493 = vst [vmem:[%s2054_s12 + $0x10] sm:$0xff] %v1465_v15  }
 0x27c   : > { %1662 = vrcp.f32 %v845_v61 }
 0x27e   : > { %v1655_v22 = vpop.eup %1654 }
 0x27f   : > { %v1657_v3 = vpop.eup %1656  ;;  %v1008_v16 = vmul.f32 %v1655_v22, %v971_v19  ;;  %v855_v23 = vpop.xlane.xlu0 %854  ;;  %v1084_v46 = vld [vmem:[%s2054_s12 + $0x18] sm:$0xf] (%p1889_p13)  ;;  %v1086_v47 = vld [vmem:[%s2054_s12 + $0x1c] sm:$0xf] (%p1889_p13) }
 0x280   : > { %v1659_v24 = vpop.eup %1658  ;;  %v1006_v26 = vmul.f32 %v1657_v3, %v966_v57  ;;  %v857_v5 = vpop.xlane.xlu1 %856  ;;  %1664 = vrcp.f32 %v855_v23  ;;  %1085 = vst [vmem:[%s1055_s10 + $0x30] sm:$0xf] (%p1889_p13), %v1084_v46 }
 0x281   : > { %v1007_v27 = vmul.f32 %v1659_v24, %v969_v63  ;;  %v1661_v28 = vpop.eup %1660  ;;  %1666 = vrcp.f32 %v857_v5  ;;  %1087 = vst [vmem:[%s1055_s10 + $0x38] sm:$0xf] (%p1889_p13), %v1086_v47 }
 0x282   : > { %v1480_v29 = vpack.c.bf16 %v1006_v26, %v1005_v25  ;;  %v974_v17 = vpop.f32.mrf.mxu3  ;;  %v1663_v30 = vpop.eup %1662  ;;  %v1003_v33 = vmul.f32 %v1661_v28, %v959_v20  ;;  %v1080_v44 = vld [vmem:[%s2054_s12 + $0x10] sm:$0xf] (%p1889_p13)  ;;  %v1082_v45 = vld [vmem:[%s2054_s12 + $0x14] sm:$0xf] (%p1889_p13) }
 0x283   : > { %v1485_v31 = vpack.c.bf16 %v1008_v16, %v1007_v27  ;;  %v961_v32 = vpop.f32.mrf.mxu1  ;;  %1081 = vst [vmem:[%s1055_s10 + $0x20] sm:$0xf] (%p1889_p13), %v1080_v44 }
 0x284   : > { %1496 = vst [vmem:[%s2054_s12 + $0x28] sm:$0xff] %v1480_v29   ;;  %v1004_v7 = vmul.f32 %v1663_v30, %v961_v32 }
 0x285   : > { %1497 = vst [vmem:[%s2054_s12 + $0x30] sm:$0xff] %v1485_v31  }
 0x286   : > { %v1475_v18 = vpack.c.bf16 %v1004_v7, %v1003_v33  ;;  %v1665_v34 = vpop.eup %1664  ;;  %1083 = vst [vmem:[%s1055_s10 + $0x28] sm:$0xf] (%p1889_p13), %v1082_v45 }
 0x287   : > { %v1667_v35 = vpop.eup %1666  ;;  %v1009_v37 = vmul.f32 %v1665_v34, %v974_v17 }
 0x288   : > { %1495 = vst [vmem:[%s2054_s12 + $0x20] sm:$0xff] %v1475_v18  }
 0x28a   : > { %v976_v36 = vpop.f32.mrf.mxu3 }
 0x28b   : > { %v1010_v38 = vmul.f32 %v1667_v35, %v976_v36  ;;  %1049 = sbr.rel (!%p1889_p13) target bundleno = 665 (0x299), region = 159  ;;  %v1092_v50 = vld [vmem:[%s2054_s12 + $0x28] sm:$0xf] (%p1889_p13)  ;;  %v1094_v51 = vld [vmem:[%s2054_s12 + $0x2c] sm:$0xf] (%p1889_p13) }
 0x28c   : > { %v1096_v52 = vld [vmem:[%s2054_s12 + $0x30] sm:$0xf] (%p1889_p13)  ;;  %1093 = vst [vmem:[%s1055_s10 + $0x50] sm:$0xf] (%p1889_p13), %v1092_v50  ;;  %v1098_v53 = vld [vmem:[%s2054_s12 + $0x34] sm:$0xf] (%p1889_p13) }
 0x28d   : > { %v1490_v39 = vpack.c.bf16 %v1010_v38, %v1009_v37  ;;  %1095 = vst [vmem:[%s1055_s10 + $0x58] sm:$0xf] (%p1889_p13), %v1094_v51 }
 0x28e   : > { %1097 = vst [vmem:[%s1055_s10 + $0x60] sm:$0xf] (%p1889_p13), %v1096_v52 }
 0x28f   : > { %1498 = vst [vmem:[%s2054_s12 + $0x38] sm:$0xff] %v1490_v39   ;;  %v1088_v48 = vld [vmem:[%s2054_s12 + $0x20] sm:$0xf] (%p1889_p13)  ;;  %v1090_v49 = vld [vmem:[%s2054_s12 + $0x24] sm:$0xf] (%p1889_p13) }
 0x290   : > { %1089 = vst [vmem:[%s1055_s10 + $0x40] sm:$0xf] %v1088_v48 }
 0x291   : > { %1091 = vst [vmem:[%s1055_s10 + $0x48] sm:$0xf] %v1090_v49 }
 0x292   : > { %1099 = vst [vmem:[%s1055_s10 + $0x68] sm:$0xf] %v1098_v53 }
 0x296   : > { %v1100_v54 = vld [vmem:[%s2054_s12 + $0x38] sm:$0xf]  ;;  %v1102_v55 = vld [vmem:[%s2054_s12 + $0x3c] sm:$0xf] }
 0x297   : > { %1101 = vst [vmem:[%s1055_s10 + $0x70] sm:$0xf] %v1100_v54 }
 0x298   : > { %1103 = vst [vmem:[%s1055_s10 + $0x78] sm:$0xf] %v1102_v55 }
 0x299 PF: > { %s13_s22 = sadd.s32 1, %s1754_s22   ;;  %s2133_s30 = sld [smem:[#allocation6_spill]] }
 0x29a   : > { %p10_p4 = scmp.ge.s32.totalorder %s13_s22, 6   ;;  %s2134_s12 = smov %s1718_s13 }
 0x29b   : > { %s2135_s13 = smov %s1894_s26  ;;  %s2136_s14 = smov %s1726_s15 }
 0x29c   : > { %s2137_s15 = smov %s1872_s28  ;;  %s2138_s16 = smov %s1734_s17 }
 0x29d   : > { %s2139_s17 = smov %s1869_s11  ;;  %s2140_s18 = smov %s1746_s20 }
 0x29e   : > { %s2141_s19 = smov %s1750_s21  ;;  %s2142_s20 = smov %s2145_s24 }
 0x29f   : > { %s2143_s21 = smov %s2133_s30  ;;  %12 = sbr.rel (!%p10_p4) target bundleno = 8 (0x8), region = 247 }

</bundles_post_ra>
